<compile_context>
chip_gen: v5e
topology: v5e:2x2
jax: 0.10.0
libtpu: 0.0.40
codegen_flags: <defaults>
</compile_context>

<pallas_src>
import functools

import jax
import jax.numpy as jnp
from jax.experimental import pallas as pl
from jax.experimental.pallas import tpu as pltpu

# ----------------------------- config ---------------------------------------
HIDDEN = 128
HEADS = 4
HEAD_DIM = HIDDEN // HEADS
FFN = 256
LAYERS = 2
VOCAB = 64
MAX_POS = 16
LN_EPS = 1e-12          # BERT default
CLS_PAD = 128           # lane-padded classifier output width


# ----------------------------- in-kernel helpers -----------------------------
def _layernorm(y, g, b, eps):
    mu = jnp.mean(y, axis=-1, keepdims=True)
    d = y - mu
    var = jnp.mean(d * d, axis=-1, keepdims=True)
    return d * jax.lax.rsqrt(var + eps) * g + b


def _gelu(y):
    # TODO(synk): HF BERT uses exact erf-GELU; tanh approximation used here.
    return 0.5 * y * (1.0 + jnp.tanh(0.7978845608028654 * (y + 0.044715 * y * y * y)))


# ----------------------------- kernels ---------------------------------------
def _embed_ln_kernel(x_ref, g_ref, b_ref, o_ref, *, eps):
    """LayerNorm(x) over the last axis (no residual)."""
    o_ref[...] = _layernorm(x_ref[...], g_ref[...], b_ref[...], eps).astype(o_ref.dtype)


def _layer_kernel(x_ref, wqkv_ref, bqkv_ref, wo_ref, bo_ref,
                  ln1g_ref, ln1b_ref, w1_ref, b1_ref, w2_ref, b2_ref,
                  ln2g_ref, ln2b_ref, o_ref,
                  *, heads, head_dim, scale, eps):
    """One full BERT encoder layer for one batch element, entirely in VMEM."""
    x = x_ref[0]                                    # (S, H) f32
    H = heads * head_dim

    # ---- fused QKV projection (bf16 MXU, f32 accumulate) ----
    qkv = jnp.dot(x.astype(jnp.bfloat16), wqkv_ref[...],
                  preferred_element_type=jnp.float32) + bqkv_ref[...]   # (S, 3H)

    # ---- multi-head self-attention, heads statically unrolled ----
    # concat_h(ctx_h) @ Wo == sum_h ctx_h @ Wo[h*Dh:(h+1)*Dh, :]  (avoids concat)
    attn = None
    for h in range(heads):
        lo = h * head_dim
        qh = qkv[:, lo:lo + head_dim]               # (S, Dh)
        kh = qkv[:, H + lo:H + lo + head_dim]
        vh = qkv[:, 2 * H + lo:2 * H + lo + head_dim]
        s = jnp.dot(qh, kh.T, preferred_element_type=jnp.float32) * scale   # (S, S)
        s = s - jnp.max(s, axis=-1, keepdims=True)
        p = jnp.exp(s)
        p = p * pl.reciprocal(jnp.sum(p, axis=-1, keepdims=True), approx=True)
        ctx_h = jnp.dot(p, vh, preferred_element_type=jnp.float32)          # (S, Dh)
        part = jnp.dot(ctx_h.astype(jnp.bfloat16), wo_ref[lo:lo + head_dim, :],
                       preferred_element_type=jnp.float32)                  # (S, H)
        attn = part if attn is None else attn + part
    attn = attn + bo_ref[...]

    # ---- residual + LayerNorm ----
    x1 = _layernorm(attn + x, ln1g_ref[...], ln1b_ref[...], eps)

    # ---- FFN (gelu) -> FFN2 -> residual + LayerNorm ----
    hdn = jnp.dot(x1.astype(jnp.bfloat16), w1_ref[...],
                  preferred_element_type=jnp.float32) + b1_ref[...]
    hdn = _gelu(hdn)
    ffn = jnp.dot(hdn.astype(jnp.bfloat16), w2_ref[...],
                  preferred_element_type=jnp.float32) + b2_ref[...]
    x2 = _layernorm(ffn + x1, ln2g_ref[...], ln2b_ref[...], eps)

    o_ref[0] = x2.astype(o_ref.dtype)


def _pool_cls_kernel(cls_ref, wp_ref, bp_ref, wc_ref, bc_ref, o_ref):
    """pooled = tanh(cls @ Wp + bp); out = sigmoid(pooled @ Wc_pad + bc_pad)."""
    pooled = jnp.tanh(
        jnp.dot(cls_ref[...].astype(jnp.bfloat16), wp_ref[...],
                preferred_element_type=jnp.float32) + bp_ref[...])
    logits = jnp.dot(pooled.astype(jnp.bfloat16), wc_ref[...],
                     preferred_element_type=jnp.float32) + bc_ref[...]
    o_ref[...] = (1.0 / (1.0 + jnp.exp(-logits))).astype(o_ref.dtype)


# ----------------------------- wrappers ---------------------------------------
def embed_layernorm(x, g, b):
    M, H = x.shape
    return pl.pallas_call(
        functools.partial(_embed_ln_kernel, eps=LN_EPS),
        out_shape=jax.ShapeDtypeStruct((M, H), jnp.float32),
        grid=(1,),
        in_specs=[pl.BlockSpec((M, H), lambda i: (0, 0)),
                  pl.BlockSpec((1, H), lambda i: (0, 0)),
                  pl.BlockSpec((1, H), lambda i: (0, 0))],
        out_specs=pl.BlockSpec((M, H), lambda i: (0, 0)),
    )(x, g, b)


def encoder_layer(x, lp):
    B, S, H = x.shape

    def rep(shape):
        n = len(shape)
        return pl.BlockSpec(shape, lambda b, _n=None: (0,) * n)

    return pl.pallas_call(
        functools.partial(_layer_kernel, heads=HEADS, head_dim=HEAD_DIM,
                          scale=1.0 / HEAD_DIM ** 0.5, eps=LN_EPS),
        out_shape=jax.ShapeDtypeStruct((B, S, H), jnp.float32),
        grid=(B,),
        in_specs=[
            pl.BlockSpec((1, S, H), lambda b: (b, 0, 0)),
            rep((H, 3 * H)), rep((1, 3 * H)),
            rep((H, H)), rep((1, H)),
            rep((1, H)), rep((1, H)),
            rep((H, FFN)), rep((1, FFN)),
            rep((FFN, H)), rep((1, H)),
            rep((1, H)), rep((1, H)),
        ],
        out_specs=pl.BlockSpec((1, S, H), lambda b: (b, 0, 0)),
        compiler_params=pltpu.CompilerParams(dimension_semantics=("parallel",)),
    )(x, lp["wqkv"], lp["bqkv"], lp["wo"], lp["bo"], lp["ln1_g"], lp["ln1_b"],
      lp["w1"], lp["b1"], lp["w2"], lp["b2"], lp["ln2_g"], lp["ln2_b"])


def pool_and_classify(cls, wp, bp, wc_pad, bc_pad):
    B, H = cls.shape
    return pl.pallas_call(
        _pool_cls_kernel,
        out_shape=jax.ShapeDtypeStruct((B, CLS_PAD), jnp.float32),
        grid=(1,),
        in_specs=[pl.BlockSpec((B, H), lambda i: (0, 0)),
                  pl.BlockSpec((H, H), lambda i: (0, 0)),
                  pl.BlockSpec((1, H), lambda i: (0, 0)),
                  pl.BlockSpec((H, CLS_PAD), lambda i: (0, 0)),
                  pl.BlockSpec((1, CLS_PAD), lambda i: (0, 0))],
        out_specs=pl.BlockSpec((B, CLS_PAD), lambda i: (0, 0)),
    )(cls, wp, bp, wc_pad, bc_pad)


# ----------------------------- parameters -------------------------------------
def init_params(key):
    def nrm(k, shape, scale=0.02):
        return scale * jax.random.normal(k, shape, dtype=jnp.float32)

    keys = iter(jax.random.split(key, 8 + LAYERS * 8))
    p = {
        "word_emb": nrm(next(keys), (VOCAB, HIDDEN)),
        "pos_emb": nrm(next(keys), (MAX_POS, HIDDEN)),
        "type_emb": nrm(next(keys), (2, HIDDEN)),
        "emb_ln_g": jnp.ones((1, HIDDEN), jnp.float32),
        "emb_ln_b": jnp.zeros((1, HIDDEN), jnp.float32),
        "wp": nrm(next(keys), (HIDDEN, HIDDEN)).astype(jnp.bfloat16),
        "bp": jnp.zeros((1, HIDDEN), jnp.float32),
        "wc_pad": jnp.pad(nrm(next(keys), (HIDDEN, 1)),
                          ((0, 0), (0, CLS_PAD - 1))).astype(jnp.bfloat16),
        "bc_pad": jnp.zeros((1, CLS_PAD), jnp.float32),
        "layers": [],
    }
    for _ in range(LAYERS):
        lp = {
            "wqkv": nrm(next(keys), (HIDDEN, 3 * HIDDEN)).astype(jnp.bfloat16),
            "bqkv": jnp.zeros((1, 3 * HIDDEN), jnp.float32),
            "wo": nrm(next(keys), (HIDDEN, HIDDEN)).astype(jnp.bfloat16),
            "bo": jnp.zeros((1, HIDDEN), jnp.float32),
            "ln1_g": jnp.ones((1, HIDDEN), jnp.float32),
            "ln1_b": jnp.zeros((1, HIDDEN), jnp.float32),
            "w1": nrm(next(keys), (HIDDEN, FFN)).astype(jnp.bfloat16),
            "b1": jnp.zeros((1, FFN), jnp.float32),
            "w2": nrm(next(keys), (FFN, HIDDEN)).astype(jnp.bfloat16),
            "b2": jnp.zeros((1, HIDDEN), jnp.float32),
            "ln2_g": jnp.ones((1, HIDDEN), jnp.float32),
            "ln2_b": jnp.zeros((1, HIDDEN), jnp.float32),
        }
        p["layers"].append(lp)
    return p


# ----------------------------- forward ----------------------------------------
def bert_encoder(params, words):
    """Returns (last_hidden_state (B,S,H), sigmoid(classifier(pooler_output)) (B,1))."""
    B, S = words.shape
    H = HIDDEN

    # Embedding gather is plain-JAX glue; everything else runs in Pallas.
    # TODO(synk): no attention_mask / token_type input path (type 0 assumed).
    emb = (params["word_emb"][words]
           + params["pos_emb"][:S][None, :, :]
           + params["type_emb"][0][None, None, :]).astype(jnp.float32)
    x = embed_layernorm(emb.reshape(B * S, H), params["emb_ln_g"], params["emb_ln_b"])
    x = x.reshape(B, S, H)

    for lp in params["layers"]:
        x = encoder_layer(x, lp)            # one fused pallas_call per layer

    h = x                                   # last_hidden_state (B, S, H)
    cls = h[:, 0, :]                        # [CLS] token
    out_full = pool_and_classify(cls, params["wp"], params["bp"],
                                 params["wc_pad"], params["bc_pad"])
    out = out_full[:, :1]                   # (B, 1)
    return h, out


# ----------------------------- main ---------------------------------------------
if __name__ == "__main__":
    B, S = 2, 8
    words = jax.random.randint(jax.random.PRNGKey(0), (B, S), 0, VOCAB, dtype=jnp.int32)
    params = init_params(jax.random.PRNGKey(1))

    h, out = jax.jit(bert_encoder)(params, words)
    jax.block_until_ready((h, out))

    assert h.shape == (B, S, HIDDEN) and h.dtype == jnp.float32
    assert out.shape == (B, 1) and out.dtype == jnp.float32
    assert bool(jnp.all(jnp.isfinite(h))) and bool(jnp.all((out > 0.0) & (out < 1.0)))
    print("KERNEL_OK")
</pallas_src>

<mosaic_0001>
module attributes {stable_mosaic.version = 11 : i64} {
  func.func @_layer_kernel(%arg0: i32, %arg1: memref<1x8x128xf32, #tpu.memory_space<vmem>>, %arg2: memref<128x384xbf16, #tpu.memory_space<vmem>>, %arg3: memref<1x384xf32, #tpu.memory_space<vmem>>, %arg4: memref<128x128xbf16, #tpu.memory_space<vmem>>, %arg5: memref<1x128xf32, #tpu.memory_space<vmem>>, %arg6: memref<1x128xf32, #tpu.memory_space<vmem>>, %arg7: memref<1x128xf32, #tpu.memory_space<vmem>>, %arg8: memref<128x256xbf16, #tpu.memory_space<vmem>>, %arg9: memref<1x256xf32, #tpu.memory_space<vmem>>, %arg10: memref<256x128xbf16, #tpu.memory_space<vmem>>, %arg11: memref<1x128xf32, #tpu.memory_space<vmem>>, %arg12: memref<1x128xf32, #tpu.memory_space<vmem>>, %arg13: memref<1x128xf32, #tpu.memory_space<vmem>>, %arg14: memref<1x8x128xf32, #tpu.memory_space<vmem>>) attributes {dimension_semantics = [#tpu.dimension_semantics<parallel>], iteration_bounds = array<i64: 2>, scalar_prefetch = 0 : i64, scratch_operands = 0 : i64, tpu.core_type = #tpu.core_type<tc>, window_params = [{transform_indices = @transform_0, window_bounds = array<i64: 1, 8, 128>}, {pipeline_mode = #tpu.pipeline_mode<synchronous>, transform_indices = @transform_1, window_bounds = array<i64: 128, 384>}, {pipeline_mode = #tpu.pipeline_mode<synchronous>, transform_indices = @transform_2, window_bounds = array<i64: 1, 384>}, {pipeline_mode = #tpu.pipeline_mode<synchronous>, transform_indices = @transform_3, window_bounds = array<i64: 128, 128>}, {pipeline_mode = #tpu.pipeline_mode<synchronous>, transform_indices = @transform_4, window_bounds = array<i64: 1, 128>}, {pipeline_mode = #tpu.pipeline_mode<synchronous>, transform_indices = @transform_5, window_bounds = array<i64: 1, 128>}, {pipeline_mode = #tpu.pipeline_mode<synchronous>, transform_indices = @transform_6, window_bounds = array<i64: 1, 128>}, {pipeline_mode = #tpu.pipeline_mode<synchronous>, transform_indices = @transform_7, window_bounds = array<i64: 128, 256>}, {pipeline_mode = #tpu.pipeline_mode<synchronous>, transform_indices = @transform_8, window_bounds = array<i64: 1, 256>}, {pipeline_mode = #tpu.pipeline_mode<synchronous>, transform_indices = @transform_9, window_bounds = array<i64: 256, 128>}, {pipeline_mode = #tpu.pipeline_mode<synchronous>, transform_indices = @transform_10, window_bounds = array<i64: 1, 128>}, {pipeline_mode = #tpu.pipeline_mode<synchronous>, transform_indices = @transform_11, window_bounds = array<i64: 1, 128>}, {pipeline_mode = #tpu.pipeline_mode<synchronous>, transform_indices = @transform_12, window_bounds = array<i64: 1, 128>}, {transform_indices = @transform_13, window_bounds = array<i64: 1, 8, 128>}]} {
    %c0 = arith.constant 0 : index
    %c0_0 = arith.constant 0 : index
    %c0_1 = arith.constant 0 : index
    %0 = vector.load %arg1[%c0, %c0_0, %c0_1] : memref<1x8x128xf32, #tpu.memory_space<vmem>>, vector<1x8x128xf32>
    %1 = vector.shape_cast %0 : vector<1x8x128xf32> to vector<8x128xf32>
    %2 = arith.truncf %1 : vector<8x128xf32> to vector<8x128xbf16>
    %c0_2 = arith.constant 0 : index
    %c0_3 = arith.constant 0 : index
    %3 = vector.load %arg2[%c0_2, %c0_3] : memref<128x384xbf16, #tpu.memory_space<vmem>>, vector<128x384xbf16>
    %cst = arith.constant dense<0.000000e+00> : vector<8x384xf32>
    %4 = tpu.matmul %2, %3, %cst {dimension_numbers = #tpu.dot_dimension_numbers<[1], [0], [0], [1], [0, 0, 1, 1], [], []>} : vector<8x128xbf16>, vector<128x384xbf16>, vector<8x384xf32> -> vector<8x384xf32>
    %c0_4 = arith.constant 0 : index
    %c0_5 = arith.constant 0 : index
    %5 = vector.load %arg3[%c0_4, %c0_5] : memref<1x384xf32, #tpu.memory_space<vmem>>, vector<1x384xf32>
    %6 = vector.broadcast %5 : vector<1x384xf32> to vector<8x384xf32>
    %7 = arith.addf %4, %6 : vector<8x384xf32>
    %8 = vector.extract_strided_slice %7 {offsets = [0, 0], sizes = [8, 32], strides = [1, 1]} : vector<8x384xf32> to vector<8x32xf32>
    %9 = vector.extract_strided_slice %7 {offsets = [0, 128], sizes = [8, 32], strides = [1, 1]} : vector<8x384xf32> to vector<8x32xf32>
    %10 = vector.extract_strided_slice %7 {offsets = [0, 256], sizes = [8, 32], strides = [1, 1]} : vector<8x384xf32> to vector<8x32xf32>
    %11 = tpu.transpose %9, [1, 0] : vector<8x32xf32> -> vector<32x8xf32>
    %cst_6 = arith.constant dense<0.000000e+00> : vector<8x8xf32>
    %12 = tpu.matmul %8, %11, %cst_6 {dimension_numbers = #tpu.dot_dimension_numbers<[1], [0], [0], [1], [0, 0, 1, 1], [], []>} : vector<8x32xf32>, vector<32x8xf32>, vector<8x8xf32> -> vector<8x8xf32>
    %cst_7 = arith.constant 0.176776692 : f32
    %13 = vector.broadcast %cst_7 : f32 to vector<8x8xf32>
    %14 = arith.mulf %12, %13 : vector<8x8xf32>
    %cst_8 = arith.constant dense<0xFF800000> : vector<8xf32>
    %15 = vector.multi_reduction <maximumf>, %14, %cst_8 [1] : vector<8x8xf32> to vector<8xf32>
    %16 = vector.shape_cast %15 : vector<8xf32> to vector<8x1xf32>
    %17 = vector.broadcast %16 : vector<8x1xf32> to vector<8x8xf32>
    %18 = arith.subf %14, %17 : vector<8x8xf32>
    %19 = math.exp %18 : vector<8x8xf32>
    %cst_9 = arith.constant dense<0.000000e+00> : vector<8xf32>
    %20 = vector.multi_reduction <add>, %19, %cst_9 [1] : vector<8x8xf32> to vector<8xf32>
    %21 = vector.shape_cast %20 : vector<8xf32> to vector<8x1xf32>
    %22 = tpu.reciprocal %21 {approx = true} : vector<8x1xf32> -> vector<8x1xf32>
    %23 = vector.broadcast %22 : vector<8x1xf32> to vector<8x8xf32>
    %24 = arith.mulf %19, %23 : vector<8x8xf32>
    %cst_10 = arith.constant dense<0.000000e+00> : vector<8x32xf32>
    %25 = tpu.matmul %24, %10, %cst_10 {dimension_numbers = #tpu.dot_dimension_numbers<[1], [0], [0], [1], [0, 0, 1, 1], [], []>} : vector<8x8xf32>, vector<8x32xf32>, vector<8x32xf32> -> vector<8x32xf32>
    %26 = arith.truncf %25 : vector<8x32xf32> to vector<8x32xbf16>
    %c0_11 = arith.constant 0 : index
    %c0_12 = arith.constant 0 : index
    %27 = vector.load %arg4[%c0_11, %c0_12] : memref<128x128xbf16, #tpu.memory_space<vmem>>, vector<32x128xbf16>
    %cst_13 = arith.constant dense<0.000000e+00> : vector<8x128xf32>
    %28 = tpu.matmul %26, %27, %cst_13 {dimension_numbers = #tpu.dot_dimension_numbers<[1], [0], [0], [1], [0, 0, 1, 1], [], []>} : vector<8x32xbf16>, vector<32x128xbf16>, vector<8x128xf32> -> vector<8x128xf32>
    %29 = vector.extract_strided_slice %7 {offsets = [0, 32], sizes = [8, 32], strides = [1, 1]} : vector<8x384xf32> to vector<8x32xf32>
    %30 = vector.extract_strided_slice %7 {offsets = [0, 160], sizes = [8, 32], strides = [1, 1]} : vector<8x384xf32> to vector<8x32xf32>
    %31 = vector.extract_strided_slice %7 {offsets = [0, 288], sizes = [8, 32], strides = [1, 1]} : vector<8x384xf32> to vector<8x32xf32>
    %32 = tpu.transpose %30, [1, 0] : vector<8x32xf32> -> vector<32x8xf32>
    %cst_14 = arith.constant dense<0.000000e+00> : vector<8x8xf32>
    %33 = tpu.matmul %29, %32, %cst_14 {dimension_numbers = #tpu.dot_dimension_numbers<[1], [0], [0], [1], [0, 0, 1, 1], [], []>} : vector<8x32xf32>, vector<32x8xf32>, vector<8x8xf32> -> vector<8x8xf32>
    %cst_15 = arith.constant 0.176776692 : f32
    %34 = vector.broadcast %cst_15 : f32 to vector<8x8xf32>
    %35 = arith.mulf %33, %34 : vector<8x8xf32>
    %cst_16 = arith.constant dense<0xFF800000> : vector<8xf32>
    %36 = vector.multi_reduction <maximumf>, %35, %cst_16 [1] : vector<8x8xf32> to vector<8xf32>
    %37 = vector.shape_cast %36 : vector<8xf32> to vector<8x1xf32>
    %38 = vector.broadcast %37 : vector<8x1xf32> to vector<8x8xf32>
    %39 = arith.subf %35, %38 : vector<8x8xf32>
    %40 = math.exp %39 : vector<8x8xf32>
    %cst_17 = arith.constant dense<0.000000e+00> : vector<8xf32>
    %41 = vector.multi_reduction <add>, %40, %cst_17 [1] : vector<8x8xf32> to vector<8xf32>
    %42 = vector.shape_cast %41 : vector<8xf32> to vector<8x1xf32>
    %43 = tpu.reciprocal %42 {approx = true} : vector<8x1xf32> -> vector<8x1xf32>
    %44 = vector.broadcast %43 : vector<8x1xf32> to vector<8x8xf32>
    %45 = arith.mulf %40, %44 : vector<8x8xf32>
    %cst_18 = arith.constant dense<0.000000e+00> : vector<8x32xf32>
    %46 = tpu.matmul %45, %31, %cst_18 {dimension_numbers = #tpu.dot_dimension_numbers<[1], [0], [0], [1], [0, 0, 1, 1], [], []>} : vector<8x8xf32>, vector<8x32xf32>, vector<8x32xf32> -> vector<8x32xf32>
    %47 = arith.truncf %46 : vector<8x32xf32> to vector<8x32xbf16>
    %c32 = arith.constant 32 : index
    %c0_19 = arith.constant 0 : index
    %48 = vector.load %arg4[%c32, %c0_19] : memref<128x128xbf16, #tpu.memory_space<vmem>>, vector<32x128xbf16>
    %cst_20 = arith.constant dense<0.000000e+00> : vector<8x128xf32>
    %49 = tpu.matmul %47, %48, %cst_20 {dimension_numbers = #tpu.dot_dimension_numbers<[1], [0], [0], [1], [0, 0, 1, 1], [], []>} : vector<8x32xbf16>, vector<32x128xbf16>, vector<8x128xf32> -> vector<8x128xf32>
    %50 = arith.addf %28, %49 : vector<8x128xf32>
    %51 = vector.extract_strided_slice %7 {offsets = [0, 64], sizes = [8, 32], strides = [1, 1]} : vector<8x384xf32> to vector<8x32xf32>
    %52 = vector.extract_strided_slice %7 {offsets = [0, 192], sizes = [8, 32], strides = [1, 1]} : vector<8x384xf32> to vector<8x32xf32>
    %53 = vector.extract_strided_slice %7 {offsets = [0, 320], sizes = [8, 32], strides = [1, 1]} : vector<8x384xf32> to vector<8x32xf32>
    %54 = tpu.transpose %52, [1, 0] : vector<8x32xf32> -> vector<32x8xf32>
    %cst_21 = arith.constant dense<0.000000e+00> : vector<8x8xf32>
    %55 = tpu.matmul %51, %54, %cst_21 {dimension_numbers = #tpu.dot_dimension_numbers<[1], [0], [0], [1], [0, 0, 1, 1], [], []>} : vector<8x32xf32>, vector<32x8xf32>, vector<8x8xf32> -> vector<8x8xf32>
    %cst_22 = arith.constant 0.176776692 : f32
    %56 = vector.broadcast %cst_22 : f32 to vector<8x8xf32>
    %57 = arith.mulf %55, %56 : vector<8x8xf32>
    %cst_23 = arith.constant dense<0xFF800000> : vector<8xf32>
    %58 = vector.multi_reduction <maximumf>, %57, %cst_23 [1] : vector<8x8xf32> to vector<8xf32>
    %59 = vector.shape_cast %58 : vector<8xf32> to vector<8x1xf32>
    %60 = vector.broadcast %59 : vector<8x1xf32> to vector<8x8xf32>
    %61 = arith.subf %57, %60 : vector<8x8xf32>
    %62 = math.exp %61 : vector<8x8xf32>
    %cst_24 = arith.constant dense<0.000000e+00> : vector<8xf32>
    %63 = vector.multi_reduction <add>, %62, %cst_24 [1] : vector<8x8xf32> to vector<8xf32>
    %64 = vector.shape_cast %63 : vector<8xf32> to vector<8x1xf32>
    %65 = tpu.reciprocal %64 {approx = true} : vector<8x1xf32> -> vector<8x1xf32>
    %66 = vector.broadcast %65 : vector<8x1xf32> to vector<8x8xf32>
    %67 = arith.mulf %62, %66 : vector<8x8xf32>
    %cst_25 = arith.constant dense<0.000000e+00> : vector<8x32xf32>
    %68 = tpu.matmul %67, %53, %cst_25 {dimension_numbers = #tpu.dot_dimension_numbers<[1], [0], [0], [1], [0, 0, 1, 1], [], []>} : vector<8x8xf32>, vector<8x32xf32>, vector<8x32xf32> -> vector<8x32xf32>
    %69 = arith.truncf %68 : vector<8x32xf32> to vector<8x32xbf16>
    %c64 = arith.constant 64 : index
    %c0_26 = arith.constant 0 : index
    %70 = vector.load %arg4[%c64, %c0_26] : memref<128x128xbf16, #tpu.memory_space<vmem>>, vector<32x128xbf16>
    %cst_27 = arith.constant dense<0.000000e+00> : vector<8x128xf32>
    %71 = tpu.matmul %69, %70, %cst_27 {dimension_numbers = #tpu.dot_dimension_numbers<[1], [0], [0], [1], [0, 0, 1, 1], [], []>} : vector<8x32xbf16>, vector<32x128xbf16>, vector<8x128xf32> -> vector<8x128xf32>
    %72 = arith.addf %50, %71 : vector<8x128xf32>
    %73 = vector.extract_strided_slice %7 {offsets = [0, 96], sizes = [8, 32], strides = [1, 1]} : vector<8x384xf32> to vector<8x32xf32>
    %74 = vector.extract_strided_slice %7 {offsets = [0, 224], sizes = [8, 32], strides = [1, 1]} : vector<8x384xf32> to vector<8x32xf32>
    %75 = vector.extract_strided_slice %7 {offsets = [0, 352], sizes = [8, 32], strides = [1, 1]} : vector<8x384xf32> to vector<8x32xf32>
    %76 = tpu.transpose %74, [1, 0] : vector<8x32xf32> -> vector<32x8xf32>
    %cst_28 = arith.constant dense<0.000000e+00> : vector<8x8xf32>
    %77 = tpu.matmul %73, %76, %cst_28 {dimension_numbers = #tpu.dot_dimension_numbers<[1], [0], [0], [1], [0, 0, 1, 1], [], []>} : vector<8x32xf32>, vector<32x8xf32>, vector<8x8xf32> -> vector<8x8xf32>
    %cst_29 = arith.constant 0.176776692 : f32
    %78 = vector.broadcast %cst_29 : f32 to vector<8x8xf32>
    %79 = arith.mulf %77, %78 : vector<8x8xf32>
    %cst_30 = arith.constant dense<0xFF800000> : vector<8xf32>
    %80 = vector.multi_reduction <maximumf>, %79, %cst_30 [1] : vector<8x8xf32> to vector<8xf32>
    %81 = vector.shape_cast %80 : vector<8xf32> to vector<8x1xf32>
    %82 = vector.broadcast %81 : vector<8x1xf32> to vector<8x8xf32>
    %83 = arith.subf %79, %82 : vector<8x8xf32>
    %84 = math.exp %83 : vector<8x8xf32>
    %cst_31 = arith.constant dense<0.000000e+00> : vector<8xf32>
    %85 = vector.multi_reduction <add>, %84, %cst_31 [1] : vector<8x8xf32> to vector<8xf32>
    %86 = vector.shape_cast %85 : vector<8xf32> to vector<8x1xf32>
    %87 = tpu.reciprocal %86 {approx = true} : vector<8x1xf32> -> vector<8x1xf32>
    %88 = vector.broadcast %87 : vector<8x1xf32> to vector<8x8xf32>
    %89 = arith.mulf %84, %88 : vector<8x8xf32>
    %cst_32 = arith.constant dense<0.000000e+00> : vector<8x32xf32>
    %90 = tpu.matmul %89, %75, %cst_32 {dimension_numbers = #tpu.dot_dimension_numbers<[1], [0], [0], [1], [0, 0, 1, 1], [], []>} : vector<8x8xf32>, vector<8x32xf32>, vector<8x32xf32> -> vector<8x32xf32>
    %91 = arith.truncf %90 : vector<8x32xf32> to vector<8x32xbf16>
    %c96 = arith.constant 96 : index
    %c0_33 = arith.constant 0 : index
    %92 = vector.load %arg4[%c96, %c0_33] : memref<128x128xbf16, #tpu.memory_space<vmem>>, vector<32x128xbf16>
    %cst_34 = arith.constant dense<0.000000e+00> : vector<8x128xf32>
    %93 = tpu.matmul %91, %92, %cst_34 {dimension_numbers = #tpu.dot_dimension_numbers<[1], [0], [0], [1], [0, 0, 1, 1], [], []>} : vector<8x32xbf16>, vector<32x128xbf16>, vector<8x128xf32> -> vector<8x128xf32>
    %94 = arith.addf %72, %93 : vector<8x128xf32>
    %c0_35 = arith.constant 0 : index
    %c0_36 = arith.constant 0 : index
    %95 = vector.load %arg5[%c0_35, %c0_36] : memref<1x128xf32, #tpu.memory_space<vmem>>, vector<1x128xf32>
    %96 = vector.broadcast %95 : vector<1x128xf32> to vector<8x128xf32>
    %97 = arith.addf %94, %96 : vector<8x128xf32>
    %98 = arith.addf %97, %1 : vector<8x128xf32>
    %c0_37 = arith.constant 0 : index
    %c0_38 = arith.constant 0 : index
    %99 = vector.load %arg6[%c0_37, %c0_38] : memref<1x128xf32, #tpu.memory_space<vmem>>, vector<1x128xf32>
    %c0_39 = arith.constant 0 : index
    %c0_40 = arith.constant 0 : index
    %100 = vector.load %arg7[%c0_39, %c0_40] : memref<1x128xf32, #tpu.memory_space<vmem>>, vector<1x128xf32>
    %cst_41 = arith.constant dense<0.000000e+00> : vector<8xf32>
    %101 = vector.multi_reduction <add>, %98, %cst_41 [1] : vector<8x128xf32> to vector<8xf32>
    %102 = vector.shape_cast %101 : vector<8xf32> to vector<8x1xf32>
    %cst_42 = arith.constant 1.280000e+02 : f32
    %103 = vector.broadcast %cst_42 : f32 to vector<8x1xf32>
    %104 = arith.divf %102, %103 : vector<8x1xf32>
    %105 = vector.broadcast %104 : vector<8x1xf32> to vector<8x128xf32>
    %106 = arith.subf %98, %105 : vector<8x128xf32>
    %107 = arith.mulf %106, %106 : vector<8x128xf32>
    %cst_43 = arith.constant dense<0.000000e+00> : vector<8xf32>
    %108 = vector.multi_reduction <add>, %107, %cst_43 [1] : vector<8x128xf32> to vector<8xf32>
    %109 = vector.shape_cast %108 : vector<8xf32> to vector<8x1xf32>
    %cst_44 = arith.constant 1.280000e+02 : f32
    %110 = vector.broadcast %cst_44 : f32 to vector<8x1xf32>
    %111 = arith.divf %109, %110 : vector<8x1xf32>
    %cst_45 = arith.constant 9.99999996E-13 : f32
    %112 = vector.broadcast %cst_45 : f32 to vector<8x1xf32>
    %113 = arith.addf %111, %112 : vector<8x1xf32>
    %114 = math.rsqrt %113 : vector<8x1xf32>
    %115 = vector.broadcast %114 : vector<8x1xf32> to vector<8x128xf32>
    %116 = arith.mulf %106, %115 : vector<8x128xf32>
    %117 = vector.broadcast %99 : vector<1x128xf32> to vector<8x128xf32>
    %118 = arith.mulf %116, %117 : vector<8x128xf32>
    %119 = vector.broadcast %100 : vector<1x128xf32> to vector<8x128xf32>
    %120 = arith.addf %118, %119 : vector<8x128xf32>
    %121 = arith.truncf %120 : vector<8x128xf32> to vector<8x128xbf16>
    %c0_46 = arith.constant 0 : index
    %c0_47 = arith.constant 0 : index
    %122 = vector.load %arg8[%c0_46, %c0_47] : memref<128x256xbf16, #tpu.memory_space<vmem>>, vector<128x256xbf16>
    %cst_48 = arith.constant dense<0.000000e+00> : vector<8x256xf32>
    %123 = tpu.matmul %121, %122, %cst_48 {dimension_numbers = #tpu.dot_dimension_numbers<[1], [0], [0], [1], [0, 0, 1, 1], [], []>} : vector<8x128xbf16>, vector<128x256xbf16>, vector<8x256xf32> -> vector<8x256xf32>
    %c0_49 = arith.constant 0 : index
    %c0_50 = arith.constant 0 : index
    %124 = vector.load %arg9[%c0_49, %c0_50] : memref<1x256xf32, #tpu.memory_space<vmem>>, vector<1x256xf32>
    %125 = vector.broadcast %124 : vector<1x256xf32> to vector<8x256xf32>
    %126 = arith.addf %123, %125 : vector<8x256xf32>
    %cst_51 = arith.constant 5.000000e-01 : f32
    %127 = vector.broadcast %cst_51 : f32 to vector<8x256xf32>
    %128 = arith.mulf %127, %126 : vector<8x256xf32>
    %cst_52 = arith.constant 4.471500e-02 : f32
    %129 = vector.broadcast %cst_52 : f32 to vector<8x256xf32>
    %130 = arith.mulf %129, %126 : vector<8x256xf32>
    %131 = arith.mulf %130, %126 : vector<8x256xf32>
    %132 = arith.mulf %131, %126 : vector<8x256xf32>
    %133 = arith.addf %126, %132 : vector<8x256xf32>
    %cst_53 = arith.constant 0.797884583 : f32
    %134 = vector.broadcast %cst_53 : f32 to vector<8x256xf32>
    %135 = arith.mulf %134, %133 : vector<8x256xf32>
    %136 = math.tanh %135 : vector<8x256xf32>
    %cst_54 = arith.constant 1.000000e+00 : f32
    %137 = vector.broadcast %cst_54 : f32 to vector<8x256xf32>
    %138 = arith.addf %137, %136 : vector<8x256xf32>
    %139 = arith.mulf %128, %138 : vector<8x256xf32>
    %140 = arith.truncf %139 : vector<8x256xf32> to vector<8x256xbf16>
    %c0_55 = arith.constant 0 : index
    %c0_56 = arith.constant 0 : index
    %141 = vector.load %arg10[%c0_55, %c0_56] : memref<256x128xbf16, #tpu.memory_space<vmem>>, vector<256x128xbf16>
    %cst_57 = arith.constant dense<0.000000e+00> : vector<8x128xf32>
    %142 = tpu.matmul %140, %141, %cst_57 {dimension_numbers = #tpu.dot_dimension_numbers<[1], [0], [0], [1], [0, 0, 1, 1], [], []>} : vector<8x256xbf16>, vector<256x128xbf16>, vector<8x128xf32> -> vector<8x128xf32>
    %c0_58 = arith.constant 0 : index
    %c0_59 = arith.constant 0 : index
    %143 = vector.load %arg11[%c0_58, %c0_59] : memref<1x128xf32, #tpu.memory_space<vmem>>, vector<1x128xf32>
    %144 = vector.broadcast %143 : vector<1x128xf32> to vector<8x128xf32>
    %145 = arith.addf %142, %144 : vector<8x128xf32>
    %146 = arith.addf %145, %120 : vector<8x128xf32>
    %c0_60 = arith.constant 0 : index
    %c0_61 = arith.constant 0 : index
    %147 = vector.load %arg12[%c0_60, %c0_61] : memref<1x128xf32, #tpu.memory_space<vmem>>, vector<1x128xf32>
    %c0_62 = arith.constant 0 : index
    %c0_63 = arith.constant 0 : index
    %148 = vector.load %arg13[%c0_62, %c0_63] : memref<1x128xf32, #tpu.memory_space<vmem>>, vector<1x128xf32>
    %cst_64 = arith.constant dense<0.000000e+00> : vector<8xf32>
    %149 = vector.multi_reduction <add>, %146, %cst_64 [1] : vector<8x128xf32> to vector<8xf32>
    %150 = vector.shape_cast %149 : vector<8xf32> to vector<8x1xf32>
    %cst_65 = arith.constant 1.280000e+02 : f32
    %151 = vector.broadcast %cst_65 : f32 to vector<8x1xf32>
    %152 = arith.divf %150, %151 : vector<8x1xf32>
    %153 = vector.broadcast %152 : vector<8x1xf32> to vector<8x128xf32>
    %154 = arith.subf %146, %153 : vector<8x128xf32>
    %155 = arith.mulf %154, %154 : vector<8x128xf32>
    %cst_66 = arith.constant dense<0.000000e+00> : vector<8xf32>
    %156 = vector.multi_reduction <add>, %155, %cst_66 [1] : vector<8x128xf32> to vector<8xf32>
    %157 = vector.shape_cast %156 : vector<8xf32> to vector<8x1xf32>
    %cst_67 = arith.constant 1.280000e+02 : f32
    %158 = vector.broadcast %cst_67 : f32 to vector<8x1xf32>
    %159 = arith.divf %157, %158 : vector<8x1xf32>
    %cst_68 = arith.constant 9.99999996E-13 : f32
    %160 = vector.broadcast %cst_68 : f32 to vector<8x1xf32>
    %161 = arith.addf %159, %160 : vector<8x1xf32>
    %162 = math.rsqrt %161 : vector<8x1xf32>
    %163 = vector.broadcast %162 : vector<8x1xf32> to vector<8x128xf32>
    %164 = arith.mulf %154, %163 : vector<8x128xf32>
    %165 = vector.broadcast %147 : vector<1x128xf32> to vector<8x128xf32>
    %166 = arith.mulf %164, %165 : vector<8x128xf32>
    %167 = vector.broadcast %148 : vector<1x128xf32> to vector<8x128xf32>
    %168 = arith.addf %166, %167 : vector<8x128xf32>
    %c0_69 = arith.constant 0 : index
    %c0_70 = arith.constant 0 : index
    %c0_71 = arith.constant 0 : index
    %169 = vector.load %arg14[%c0_69, %c0_70, %c0_71] : memref<1x8x128xf32, #tpu.memory_space<vmem>>, vector<1x8x128xf32>
    %170 = vector.shape_cast %169 : vector<1x8x128xf32> to vector<8x128xf32>
    %171 = vector.shape_cast %168 : vector<8x128xf32> to vector<1x8x128xf32>
    tpu.vector_store %arg14[%c0_69, %c0_70, %c0_71], %171 {strides = array<i32>} : memref<1x8x128xf32, #tpu.memory_space<vmem>>, vector<1x8x128xf32>,
    return
  }
  func.func @transform_0(%arg0: i32) -> (i32, i32, i32) {
    %c0_i32 = arith.constant 0 : i32
    %c0_i32_0 = arith.constant 0 : i32
    %c0_i32_1 = arith.constant 0 : i32
    return %arg0, %c0_i32, %c0_i32_0 : i32, i32, i32
  }
  func.func @transform_1(%arg0: i32) -> (i32, i32) {
    %c0_i32 = arith.constant 0 : i32
    %c0_i32_0 = arith.constant 0 : i32
    %c0_i32_1 = arith.constant 0 : i32
    return %c0_i32, %c0_i32_0 : i32, i32
  }
  func.func @transform_2(%arg0: i32) -> (i32, i32) {
    %c0_i32 = arith.constant 0 : i32
    %c0_i32_0 = arith.constant 0 : i32
    %c0_i32_1 = arith.constant 0 : i32
    return %c0_i32, %c0_i32_0 : i32, i32
  }
  func.func @transform_3(%arg0: i32) -> (i32, i32) {
    %c0_i32 = arith.constant 0 : i32
    %c0_i32_0 = arith.constant 0 : i32
    %c0_i32_1 = arith.constant 0 : i32
    return %c0_i32, %c0_i32_0 : i32, i32
  }
  func.func @transform_4(%arg0: i32) -> (i32, i32) {
    %c0_i32 = arith.constant 0 : i32
    %c0_i32_0 = arith.constant 0 : i32
    %c0_i32_1 = arith.constant 0 : i32
    return %c0_i32, %c0_i32_0 : i32, i32
  }
  func.func @transform_5(%arg0: i32) -> (i32, i32) {
    %c0_i32 = arith.constant 0 : i32
    %c0_i32_0 = arith.constant 0 : i32
    %c0_i32_1 = arith.constant 0 : i32
    return %c0_i32, %c0_i32_0 : i32, i32
  }
  func.func @transform_6(%arg0: i32) -> (i32, i32) {
    %c0_i32 = arith.constant 0 : i32
    %c0_i32_0 = arith.constant 0 : i32
    %c0_i32_1 = arith.constant 0 : i32
    return %c0_i32, %c0_i32_0 : i32, i32
  }
  func.func @transform_7(%arg0: i32) -> (i32, i32) {
    %c0_i32 = arith.constant 0 : i32
    %c0_i32_0 = arith.constant 0 : i32
    %c0_i32_1 = arith.constant 0 : i32
    return %c0_i32, %c0_i32_0 : i32, i32
  }
  func.func @transform_8(%arg0: i32) -> (i32, i32) {
    %c0_i32 = arith.constant 0 : i32
    %c0_i32_0 = arith.constant 0 : i32
    %c0_i32_1 = arith.constant 0 : i32
    return %c0_i32, %c0_i32_0 : i32, i32
  }
  func.func @transform_9(%arg0: i32) -> (i32, i32) {
    %c0_i32 = arith.constant 0 : i32
    %c0_i32_0 = arith.constant 0 : i32
    %c0_i32_1 = arith.constant 0 : i32
    return %c0_i32, %c0_i32_0 : i32, i32
  }
  func.func @transform_10(%arg0: i32) -> (i32, i32) {
    %c0_i32 = arith.constant 0 : i32
    %c0_i32_0 = arith.constant 0 : i32
    %c0_i32_1 = arith.constant 0 : i32
    return %c0_i32, %c0_i32_0 : i32, i32
  }
  func.func @transform_11(%arg0: i32) -> (i32, i32) {
    %c0_i32 = arith.constant 0 : i32
    %c0_i32_0 = arith.constant 0 : i32
    %c0_i32_1 = arith.constant 0 : i32
    return %c0_i32, %c0_i32_0 : i32, i32
  }
  func.func @transform_12(%arg0: i32) -> (i32, i32) {
    %c0_i32 = arith.constant 0 : i32
    %c0_i32_0 = arith.constant 0 : i32
    %c0_i32_1 = arith.constant 0 : i32
    return %c0_i32, %c0_i32_0 : i32, i32
  }
  func.func @transform_13(%arg0: i32) -> (i32, i32, i32) {
    %c0_i32 = arith.constant 0 : i32
    %c0_i32_0 = arith.constant 0 : i32
    %c0_i32_1 = arith.constant 0 : i32
    return %arg0, %c0_i32, %c0_i32_0 : i32, i32, i32
  }
}

module attributes {stable_mosaic.version = 11 : i64} {
  func.func @_embed_ln_kernel(%arg0: i32, %arg1: memref<16x128xf32, #tpu.memory_space<vmem>>, %arg2: memref<1x128xf32, #tpu.memory_space<vmem>>, %arg3: memref<1x128xf32, #tpu.memory_space<vmem>>, %arg4: memref<16x128xf32, #tpu.memory_space<vmem>>) attributes {dimension_semantics = [#tpu.dimension_semantics<arbitrary>], iteration_bounds = array<i64: 1>, scalar_prefetch = 0 : i64, scratch_operands = 0 : i64, tpu.core_type = #tpu.core_type<tc>, window_params = [{pipeline_mode = #tpu.pipeline_mode<synchronous>, transform_indices = @transform_0, window_bounds = array<i64: 16, 128>}, {pipeline_mode = #tpu.pipeline_mode<synchronous>, transform_indices = @transform_1, window_bounds = array<i64: 1, 128>}, {pipeline_mode = #tpu.pipeline_mode<synchronous>, transform_indices = @transform_2, window_bounds = array<i64: 1, 128>}, {pipeline_mode = #tpu.pipeline_mode<synchronous>, transform_indices = @transform_3, window_bounds = array<i64: 16, 128>}]} {
    %c0 = arith.constant 0 : index
    %c0_0 = arith.constant 0 : index
    %0 = vector.load %arg1[%c0, %c0_0] : memref<16x128xf32, #tpu.memory_space<vmem>>, vector<16x128xf32>
    %c0_1 = arith.constant 0 : index
    %c0_2 = arith.constant 0 : index
    %1 = vector.load %arg2[%c0_1, %c0_2] : memref<1x128xf32, #tpu.memory_space<vmem>>, vector<1x128xf32>
    %c0_3 = arith.constant 0 : index
    %c0_4 = arith.constant 0 : index
    %2 = vector.load %arg3[%c0_3, %c0_4] : memref<1x128xf32, #tpu.memory_space<vmem>>, vector<1x128xf32>
    %cst = arith.constant dense<0.000000e+00> : vector<16xf32>
    %3 = vector.multi_reduction <add>, %0, %cst [1] : vector<16x128xf32> to vector<16xf32>
    %4 = vector.shape_cast %3 : vector<16xf32> to vector<16x1xf32>
    %cst_5 = arith.constant 1.280000e+02 : f32
    %5 = vector.broadcast %cst_5 : f32 to vector<16x1xf32>
    %6 = arith.divf %4, %5 : vector<16x1xf32>
    %7 = vector.broadcast %6 : vector<16x1xf32> to vector<16x128xf32>
    %8 = arith.subf %0, %7 : vector<16x128xf32>
    %9 = arith.mulf %8, %8 : vector<16x128xf32>
    %cst_6 = arith.constant dense<0.000000e+00> : vector<16xf32>
    %10 = vector.multi_reduction <add>, %9, %cst_6 [1] : vector<16x128xf32> to vector<16xf32>
    %11 = vector.shape_cast %10 : vector<16xf32> to vector<16x1xf32>
    %cst_7 = arith.constant 1.280000e+02 : f32
    %12 = vector.broadcast %cst_7 : f32 to vector<16x1xf32>
    %13 = arith.divf %11, %12 : vector<16x1xf32>
    %cst_8 = arith.constant 9.99999996E-13 : f32
    %14 = vector.broadcast %cst_8 : f32 to vector<16x1xf32>
    %15 = arith.addf %13, %14 : vector<16x1xf32>
    %16 = math.rsqrt %15 : vector<16x1xf32>
    %17 = vector.broadcast %16 : vector<16x1xf32> to vector<16x128xf32>
    %18 = arith.mulf %8, %17 : vector<16x128xf32>
    %19 = vector.broadcast %1 : vector<1x128xf32> to vector<16x128xf32>
    %20 = arith.mulf %18, %19 : vector<16x128xf32>
    %21 = vector.broadcast %2 : vector<1x128xf32> to vector<16x128xf32>
    %22 = arith.addf %20, %21 : vector<16x128xf32>
    %c0_9 = arith.constant 0 : index
    %c0_10 = arith.constant 0 : index
    %23 = vector.load %arg4[%c0_9, %c0_10] : memref<16x128xf32, #tpu.memory_space<vmem>>, vector<16x128xf32>
    tpu.vector_store %arg4[%c0_9, %c0_10], %22 {strides = array<i32>} : memref<16x128xf32, #tpu.memory_space<vmem>>, vector<16x128xf32>,
    return
  }
  func.func @transform_0(%arg0: i32) -> (i32, i32) {
    %c0_i32 = arith.constant 0 : i32
    %c0_i32_0 = arith.constant 0 : i32
    %c0_i32_1 = arith.constant 0 : i32
    return %c0_i32, %c0_i32_0 : i32, i32
  }
  func.func @transform_1(%arg0: i32) -> (i32, i32) {
    %c0_i32 = arith.constant 0 : i32
    %c0_i32_0 = arith.constant 0 : i32
    %c0_i32_1 = arith.constant 0 : i32
    return %c0_i32, %c0_i32_0 : i32, i32
  }
  func.func @transform_2(%arg0: i32) -> (i32, i32) {
    %c0_i32 = arith.constant 0 : i32
    %c0_i32_0 = arith.constant 0 : i32
    %c0_i32_1 = arith.constant 0 : i32
    return %c0_i32, %c0_i32_0 : i32, i32
  }
  func.func @transform_3(%arg0: i32) -> (i32, i32) {
    %c0_i32 = arith.constant 0 : i32
    %c0_i32_0 = arith.constant 0 : i32
    %c0_i32_1 = arith.constant 0 : i32
    return %c0_i32, %c0_i32_0 : i32, i32
  }
}

module attributes {stable_mosaic.version = 11 : i64} {
  func.func @_layer_kernel(%arg0: i32, %arg1: memref<1x8x128xf32, #tpu.memory_space<vmem>>, %arg2: memref<128x384xbf16, #tpu.memory_space<vmem>>, %arg3: memref<1x384xf32, #tpu.memory_space<vmem>>, %arg4: memref<128x128xbf16, #tpu.memory_space<vmem>>, %arg5: memref<1x128xf32, #tpu.memory_space<vmem>>, %arg6: memref<1x128xf32, #tpu.memory_space<vmem>>, %arg7: memref<1x128xf32, #tpu.memory_space<vmem>>, %arg8: memref<128x256xbf16, #tpu.memory_space<vmem>>, %arg9: memref<1x256xf32, #tpu.memory_space<vmem>>, %arg10: memref<256x128xbf16, #tpu.memory_space<vmem>>, %arg11: memref<1x128xf32, #tpu.memory_space<vmem>>, %arg12: memref<1x128xf32, #tpu.memory_space<vmem>>, %arg13: memref<1x128xf32, #tpu.memory_space<vmem>>, %arg14: memref<1x8x128xf32, #tpu.memory_space<vmem>>) attributes {dimension_semantics = [#tpu.dimension_semantics<parallel>], iteration_bounds = array<i64: 2>, scalar_prefetch = 0 : i64, scratch_operands = 0 : i64, tpu.core_type = #tpu.core_type<tc>, window_params = [{transform_indices = @transform_0, window_bounds = array<i64: 1, 8, 128>}, {pipeline_mode = #tpu.pipeline_mode<synchronous>, transform_indices = @transform_1, window_bounds = array<i64: 128, 384>}, {pipeline_mode = #tpu.pipeline_mode<synchronous>, transform_indices = @transform_2, window_bounds = array<i64: 1, 384>}, {pipeline_mode = #tpu.pipeline_mode<synchronous>, transform_indices = @transform_3, window_bounds = array<i64: 128, 128>}, {pipeline_mode = #tpu.pipeline_mode<synchronous>, transform_indices = @transform_4, window_bounds = array<i64: 1, 128>}, {pipeline_mode = #tpu.pipeline_mode<synchronous>, transform_indices = @transform_5, window_bounds = array<i64: 1, 128>}, {pipeline_mode = #tpu.pipeline_mode<synchronous>, transform_indices = @transform_6, window_bounds = array<i64: 1, 128>}, {pipeline_mode = #tpu.pipeline_mode<synchronous>, transform_indices = @transform_7, window_bounds = array<i64: 128, 256>}, {pipeline_mode = #tpu.pipeline_mode<synchronous>, transform_indices = @transform_8, window_bounds = array<i64: 1, 256>}, {pipeline_mode = #tpu.pipeline_mode<synchronous>, transform_indices = @transform_9, window_bounds = array<i64: 256, 128>}, {pipeline_mode = #tpu.pipeline_mode<synchronous>, transform_indices = @transform_10, window_bounds = array<i64: 1, 128>}, {pipeline_mode = #tpu.pipeline_mode<synchronous>, transform_indices = @transform_11, window_bounds = array<i64: 1, 128>}, {pipeline_mode = #tpu.pipeline_mode<synchronous>, transform_indices = @transform_12, window_bounds = array<i64: 1, 128>}, {transform_indices = @transform_13, window_bounds = array<i64: 1, 8, 128>}]} {
    %c0 = arith.constant 0 : index
    %c0_0 = arith.constant 0 : index
    %c0_1 = arith.constant 0 : index
    %0 = vector.load %arg1[%c0, %c0_0, %c0_1] : memref<1x8x128xf32, #tpu.memory_space<vmem>>, vector<1x8x128xf32>
    %1 = vector.shape_cast %0 : vector<1x8x128xf32> to vector<8x128xf32>
    %2 = arith.truncf %1 : vector<8x128xf32> to vector<8x128xbf16>
    %c0_2 = arith.constant 0 : index
    %c0_3 = arith.constant 0 : index
    %3 = vector.load %arg2[%c0_2, %c0_3] : memref<128x384xbf16, #tpu.memory_space<vmem>>, vector<128x384xbf16>
    %cst = arith.constant dense<0.000000e+00> : vector<8x384xf32>
    %4 = tpu.matmul %2, %3, %cst {dimension_numbers = #tpu.dot_dimension_numbers<[1], [0], [0], [1], [0, 0, 1, 1], [], []>} : vector<8x128xbf16>, vector<128x384xbf16>, vector<8x384xf32> -> vector<8x384xf32>
    %c0_4 = arith.constant 0 : index
    %c0_5 = arith.constant 0 : index
    %5 = vector.load %arg3[%c0_4, %c0_5] : memref<1x384xf32, #tpu.memory_space<vmem>>, vector<1x384xf32>
    %6 = vector.broadcast %5 : vector<1x384xf32> to vector<8x384xf32>
    %7 = arith.addf %4, %6 : vector<8x384xf32>
    %8 = vector.extract_strided_slice %7 {offsets = [0, 0], sizes = [8, 32], strides = [1, 1]} : vector<8x384xf32> to vector<8x32xf32>
    %9 = vector.extract_strided_slice %7 {offsets = [0, 128], sizes = [8, 32], strides = [1, 1]} : vector<8x384xf32> to vector<8x32xf32>
    %10 = vector.extract_strided_slice %7 {offsets = [0, 256], sizes = [8, 32], strides = [1, 1]} : vector<8x384xf32> to vector<8x32xf32>
    %11 = tpu.transpose %9, [1, 0] : vector<8x32xf32> -> vector<32x8xf32>
    %cst_6 = arith.constant dense<0.000000e+00> : vector<8x8xf32>
    %12 = tpu.matmul %8, %11, %cst_6 {dimension_numbers = #tpu.dot_dimension_numbers<[1], [0], [0], [1], [0, 0, 1, 1], [], []>} : vector<8x32xf32>, vector<32x8xf32>, vector<8x8xf32> -> vector<8x8xf32>
    %cst_7 = arith.constant 0.176776692 : f32
    %13 = vector.broadcast %cst_7 : f32 to vector<8x8xf32>
    %14 = arith.mulf %12, %13 : vector<8x8xf32>
    %cst_8 = arith.constant dense<0xFF800000> : vector<8xf32>
    %15 = vector.multi_reduction <maximumf>, %14, %cst_8 [1] : vector<8x8xf32> to vector<8xf32>
    %16 = vector.shape_cast %15 : vector<8xf32> to vector<8x1xf32>
    %17 = vector.broadcast %16 : vector<8x1xf32> to vector<8x8xf32>
    %18 = arith.subf %14, %17 : vector<8x8xf32>
    %19 = math.exp %18 : vector<8x8xf32>
    %cst_9 = arith.constant dense<0.000000e+00> : vector<8xf32>
    %20 = vector.multi_reduction <add>, %19, %cst_9 [1] : vector<8x8xf32> to vector<8xf32>
    %21 = vector.shape_cast %20 : vector<8xf32> to vector<8x1xf32>
    %22 = tpu.reciprocal %21 {approx = true} : vector<8x1xf32> -> vector<8x1xf32>
    %23 = vector.broadcast %22 : vector<8x1xf32> to vector<8x8xf32>
    %24 = arith.mulf %19, %23 : vector<8x8xf32>
    %cst_10 = arith.constant dense<0.000000e+00> : vector<8x32xf32>
    %25 = tpu.matmul %24, %10, %cst_10 {dimension_numbers = #tpu.dot_dimension_numbers<[1], [0], [0], [1], [0, 0, 1, 1], [], []>} : vector<8x8xf32>, vector<8x32xf32>, vector<8x32xf32> -> vector<8x32xf32>
    %26 = arith.truncf %25 : vector<8x32xf32> to vector<8x32xbf16>
    %c0_11 = arith.constant 0 : index
    %c0_12 = arith.constant 0 : index
    %27 = vector.load %arg4[%c0_11, %c0_12] : memref<128x128xbf16, #tpu.memory_space<vmem>>, vector<32x128xbf16>
    %cst_13 = arith.constant dense<0.000000e+00> : vector<8x128xf32>
    %28 = tpu.matmul %26, %27, %cst_13 {dimension_numbers = #tpu.dot_dimension_numbers<[1], [0], [0], [1], [0, 0, 1, 1], [], []>} : vector<8x32xbf16>, vector<32x128xbf16>, vector<8x128xf32> -> vector<8x128xf32>
    %29 = vector.extract_strided_slice %7 {offsets = [0, 32], sizes = [8, 32], strides = [1, 1]} : vector<8x384xf32> to vector<8x32xf32>
    %30 = vector.extract_strided_slice %7 {offsets = [0, 160], sizes = [8, 32], strides = [1, 1]} : vector<8x384xf32> to vector<8x32xf32>
    %31 = vector.extract_strided_slice %7 {offsets = [0, 288], sizes = [8, 32], strides = [1, 1]} : vector<8x384xf32> to vector<8x32xf32>
    %32 = tpu.transpose %30, [1, 0] : vector<8x32xf32> -> vector<32x8xf32>
    %cst_14 = arith.constant dense<0.000000e+00> : vector<8x8xf32>
    %33 = tpu.matmul %29, %32, %cst_14 {dimension_numbers = #tpu.dot_dimension_numbers<[1], [0], [0], [1], [0, 0, 1, 1], [], []>} : vector<8x32xf32>, vector<32x8xf32>, vector<8x8xf32> -> vector<8x8xf32>
    %cst_15 = arith.constant 0.176776692 : f32
    %34 = vector.broadcast %cst_15 : f32 to vector<8x8xf32>
    %35 = arith.mulf %33, %34 : vector<8x8xf32>
    %cst_16 = arith.constant dense<0xFF800000> : vector<8xf32>
    %36 = vector.multi_reduction <maximumf>, %35, %cst_16 [1] : vector<8x8xf32> to vector<8xf32>
    %37 = vector.shape_cast %36 : vector<8xf32> to vector<8x1xf32>
    %38 = vector.broadcast %37 : vector<8x1xf32> to vector<8x8xf32>
    %39 = arith.subf %35, %38 : vector<8x8xf32>
    %40 = math.exp %39 : vector<8x8xf32>
    %cst_17 = arith.constant dense<0.000000e+00> : vector<8xf32>
    %41 = vector.multi_reduction <add>, %40, %cst_17 [1] : vector<8x8xf32> to vector<8xf32>
    %42 = vector.shape_cast %41 : vector<8xf32> to vector<8x1xf32>
    %43 = tpu.reciprocal %42 {approx = true} : vector<8x1xf32> -> vector<8x1xf32>
    %44 = vector.broadcast %43 : vector<8x1xf32> to vector<8x8xf32>
    %45 = arith.mulf %40, %44 : vector<8x8xf32>
    %cst_18 = arith.constant dense<0.000000e+00> : vector<8x32xf32>
    %46 = tpu.matmul %45, %31, %cst_18 {dimension_numbers = #tpu.dot_dimension_numbers<[1], [0], [0], [1], [0, 0, 1, 1], [], []>} : vector<8x8xf32>, vector<8x32xf32>, vector<8x32xf32> -> vector<8x32xf32>
    %47 = arith.truncf %46 : vector<8x32xf32> to vector<8x32xbf16>
    %c32 = arith.constant 32 : index
    %c0_19 = arith.constant 0 : index
    %48 = vector.load %arg4[%c32, %c0_19] : memref<128x128xbf16, #tpu.memory_space<vmem>>, vector<32x128xbf16>
    %cst_20 = arith.constant dense<0.000000e+00> : vector<8x128xf32>
    %49 = tpu.matmul %47, %48, %cst_20 {dimension_numbers = #tpu.dot_dimension_numbers<[1], [0], [0], [1], [0, 0, 1, 1], [], []>} : vector<8x32xbf16>, vector<32x128xbf16>, vector<8x128xf32> -> vector<8x128xf32>
    %50 = arith.addf %28, %49 : vector<8x128xf32>
    %51 = vector.extract_strided_slice %7 {offsets = [0, 64], sizes = [8, 32], strides = [1, 1]} : vector<8x384xf32> to vector<8x32xf32>
    %52 = vector.extract_strided_slice %7 {offsets = [0, 192], sizes = [8, 32], strides = [1, 1]} : vector<8x384xf32> to vector<8x32xf32>
    %53 = vector.extract_strided_slice %7 {offsets = [0, 320], sizes = [8, 32], strides = [1, 1]} : vector<8x384xf32> to vector<8x32xf32>
    %54 = tpu.transpose %52, [1, 0] : vector<8x32xf32> -> vector<32x8xf32>
    %cst_21 = arith.constant dense<0.000000e+00> : vector<8x8xf32>
    %55 = tpu.matmul %51, %54, %cst_21 {dimension_numbers = #tpu.dot_dimension_numbers<[1], [0], [0], [1], [0, 0, 1, 1], [], []>} : vector<8x32xf32>, vector<32x8xf32>, vector<8x8xf32> -> vector<8x8xf32>
    %cst_22 = arith.constant 0.176776692 : f32
    %56 = vector.broadcast %cst_22 : f32 to vector<8x8xf32>
    %57 = arith.mulf %55, %56 : vector<8x8xf32>
    %cst_23 = arith.constant dense<0xFF800000> : vector<8xf32>
    %58 = vector.multi_reduction <maximumf>, %57, %cst_23 [1] : vector<8x8xf32> to vector<8xf32>
    %59 = vector.shape_cast %58 : vector<8xf32> to vector<8x1xf32>
    %60 = vector.broadcast %59 : vector<8x1xf32> to vector<8x8xf32>
    %61 = arith.subf %57, %60 : vector<8x8xf32>
    %62 = math.exp %61 : vector<8x8xf32>
    %cst_24 = arith.constant dense<0.000000e+00> : vector<8xf32>
    %63 = vector.multi_reduction <add>, %62, %cst_24 [1] : vector<8x8xf32> to vector<8xf32>
    %64 = vector.shape_cast %63 : vector<8xf32> to vector<8x1xf32>
    %65 = tpu.reciprocal %64 {approx = true} : vector<8x1xf32> -> vector<8x1xf32>
    %66 = vector.broadcast %65 : vector<8x1xf32> to vector<8x8xf32>
    %67 = arith.mulf %62, %66 : vector<8x8xf32>
    %cst_25 = arith.constant dense<0.000000e+00> : vector<8x32xf32>
    %68 = tpu.matmul %67, %53, %cst_25 {dimension_numbers = #tpu.dot_dimension_numbers<[1], [0], [0], [1], [0, 0, 1, 1], [], []>} : vector<8x8xf32>, vector<8x32xf32>, vector<8x32xf32> -> vector<8x32xf32>
    %69 = arith.truncf %68 : vector<8x32xf32> to vector<8x32xbf16>
    %c64 = arith.constant 64 : index
    %c0_26 = arith.constant 0 : index
    %70 = vector.load %arg4[%c64, %c0_26] : memref<128x128xbf16, #tpu.memory_space<vmem>>, vector<32x128xbf16>
    %cst_27 = arith.constant dense<0.000000e+00> : vector<8x128xf32>
    %71 = tpu.matmul %69, %70, %cst_27 {dimension_numbers = #tpu.dot_dimension_numbers<[1], [0], [0], [1], [0, 0, 1, 1], [], []>} : vector<8x32xbf16>, vector<32x128xbf16>, vector<8x128xf32> -> vector<8x128xf32>
    %72 = arith.addf %50, %71 : vector<8x128xf32>
    %73 = vector.extract_strided_slice %7 {offsets = [0, 96], sizes = [8, 32], strides = [1, 1]} : vector<8x384xf32> to vector<8x32xf32>
    %74 = vector.extract_strided_slice %7 {offsets = [0, 224], sizes = [8, 32], strides = [1, 1]} : vector<8x384xf32> to vector<8x32xf32>
    %75 = vector.extract_strided_slice %7 {offsets = [0, 352], sizes = [8, 32], strides = [1, 1]} : vector<8x384xf32> to vector<8x32xf32>
    %76 = tpu.transpose %74, [1, 0] : vector<8x32xf32> -> vector<32x8xf32>
    %cst_28 = arith.constant dense<0.000000e+00> : vector<8x8xf32>
    %77 = tpu.matmul %73, %76, %cst_28 {dimension_numbers = #tpu.dot_dimension_numbers<[1], [0], [0], [1], [0, 0, 1, 1], [], []>} : vector<8x32xf32>, vector<32x8xf32>, vector<8x8xf32> -> vector<8x8xf32>
    %cst_29 = arith.constant 0.176776692 : f32
    %78 = vector.broadcast %cst_29 : f32 to vector<8x8xf32>
    %79 = arith.mulf %77, %78 : vector<8x8xf32>
    %cst_30 = arith.constant dense<0xFF800000> : vector<8xf32>
    %80 = vector.multi_reduction <maximumf>, %79, %cst_30 [1] : vector<8x8xf32> to vector<8xf32>
    %81 = vector.shape_cast %80 : vector<8xf32> to vector<8x1xf32>
    %82 = vector.broadcast %81 : vector<8x1xf32> to vector<8x8xf32>
    %83 = arith.subf %79, %82 : vector<8x8xf32>
    %84 = math.exp %83 : vector<8x8xf32>
    %cst_31 = arith.constant dense<0.000000e+00> : vector<8xf32>
    %85 = vector.multi_reduction <add>, %84, %cst_31 [1] : vector<8x8xf32> to vector<8xf32>
    %86 = vector.shape_cast %85 : vector<8xf32> to vector<8x1xf32>
    %87 = tpu.reciprocal %86 {approx = true} : vector<8x1xf32> -> vector<8x1xf32>
    %88 = vector.broadcast %87 : vector<8x1xf32> to vector<8x8xf32>
    %89 = arith.mulf %84, %88 : vector<8x8xf32>
    %cst_32 = arith.constant dense<0.000000e+00> : vector<8x32xf32>
    %90 = tpu.matmul %89, %75, %cst_32 {dimension_numbers = #tpu.dot_dimension_numbers<[1], [0], [0], [1], [0, 0, 1, 1], [], []>} : vector<8x8xf32>, vector<8x32xf32>, vector<8x32xf32> -> vector<8x32xf32>
    %91 = arith.truncf %90 : vector<8x32xf32> to vector<8x32xbf16>
    %c96 = arith.constant 96 : index
    %c0_33 = arith.constant 0 : index
    %92 = vector.load %arg4[%c96, %c0_33] : memref<128x128xbf16, #tpu.memory_space<vmem>>, vector<32x128xbf16>
    %cst_34 = arith.constant dense<0.000000e+00> : vector<8x128xf32>
    %93 = tpu.matmul %91, %92, %cst_34 {dimension_numbers = #tpu.dot_dimension_numbers<[1], [0], [0], [1], [0, 0, 1, 1], [], []>} : vector<8x32xbf16>, vector<32x128xbf16>, vector<8x128xf32> -> vector<8x128xf32>
    %94 = arith.addf %72, %93 : vector<8x128xf32>
    %c0_35 = arith.constant 0 : index
    %c0_36 = arith.constant 0 : index
    %95 = vector.load %arg5[%c0_35, %c0_36] : memref<1x128xf32, #tpu.memory_space<vmem>>, vector<1x128xf32>
    %96 = vector.broadcast %95 : vector<1x128xf32> to vector<8x128xf32>
    %97 = arith.addf %94, %96 : vector<8x128xf32>
    %98 = arith.addf %97, %1 : vector<8x128xf32>
    %c0_37 = arith.constant 0 : index
    %c0_38 = arith.constant 0 : index
    %99 = vector.load %arg6[%c0_37, %c0_38] : memref<1x128xf32, #tpu.memory_space<vmem>>, vector<1x128xf32>
    %c0_39 = arith.constant 0 : index
    %c0_40 = arith.constant 0 : index
    %100 = vector.load %arg7[%c0_39, %c0_40] : memref<1x128xf32, #tpu.memory_space<vmem>>, vector<1x128xf32>
    %cst_41 = arith.constant dense<0.000000e+00> : vector<8xf32>
    %101 = vector.multi_reduction <add>, %98, %cst_41 [1] : vector<8x128xf32> to vector<8xf32>
    %102 = vector.shape_cast %101 : vector<8xf32> to vector<8x1xf32>
    %cst_42 = arith.constant 1.280000e+02 : f32
    %103 = vector.broadcast %cst_42 : f32 to vector<8x1xf32>
    %104 = arith.divf %102, %103 : vector<8x1xf32>
    %105 = vector.broadcast %104 : vector<8x1xf32> to vector<8x128xf32>
    %106 = arith.subf %98, %105 : vector<8x128xf32>
    %107 = arith.mulf %106, %106 : vector<8x128xf32>
    %cst_43 = arith.constant dense<0.000000e+00> : vector<8xf32>
    %108 = vector.multi_reduction <add>, %107, %cst_43 [1] : vector<8x128xf32> to vector<8xf32>
    %109 = vector.shape_cast %108 : vector<8xf32> to vector<8x1xf32>
    %cst_44 = arith.constant 1.280000e+02 : f32
    %110 = vector.broadcast %cst_44 : f32 to vector<8x1xf32>
    %111 = arith.divf %109, %110 : vector<8x1xf32>
    %cst_45 = arith.constant 9.99999996E-13 : f32
    %112 = vector.broadcast %cst_45 : f32 to vector<8x1xf32>
    %113 = arith.addf %111, %112 : vector<8x1xf32>
    %114 = math.rsqrt %113 : vector<8x1xf32>
    %115 = vector.broadcast %114 : vector<8x1xf32> to vector<8x128xf32>
    %116 = arith.mulf %106, %115 : vector<8x128xf32>
    %117 = vector.broadcast %99 : vector<1x128xf32> to vector<8x128xf32>
    %118 = arith.mulf %116, %117 : vector<8x128xf32>
    %119 = vector.broadcast %100 : vector<1x128xf32> to vector<8x128xf32>
    %120 = arith.addf %118, %119 : vector<8x128xf32>
    %121 = arith.truncf %120 : vector<8x128xf32> to vector<8x128xbf16>
    %c0_46 = arith.constant 0 : index
    %c0_47 = arith.constant 0 : index
    %122 = vector.load %arg8[%c0_46, %c0_47] : memref<128x256xbf16, #tpu.memory_space<vmem>>, vector<128x256xbf16>
    %cst_48 = arith.constant dense<0.000000e+00> : vector<8x256xf32>
    %123 = tpu.matmul %121, %122, %cst_48 {dimension_numbers = #tpu.dot_dimension_numbers<[1], [0], [0], [1], [0, 0, 1, 1], [], []>} : vector<8x128xbf16>, vector<128x256xbf16>, vector<8x256xf32> -> vector<8x256xf32>
    %c0_49 = arith.constant 0 : index
    %c0_50 = arith.constant 0 : index
    %124 = vector.load %arg9[%c0_49, %c0_50] : memref<1x256xf32, #tpu.memory_space<vmem>>, vector<1x256xf32>
    %125 = vector.broadcast %124 : vector<1x256xf32> to vector<8x256xf32>
    %126 = arith.addf %123, %125 : vector<8x256xf32>
    %cst_51 = arith.constant 5.000000e-01 : f32
    %127 = vector.broadcast %cst_51 : f32 to vector<8x256xf32>
    %128 = arith.mulf %127, %126 : vector<8x256xf32>
    %cst_52 = arith.constant 4.471500e-02 : f32
    %129 = vector.broadcast %cst_52 : f32 to vector<8x256xf32>
    %130 = arith.mulf %129, %126 : vector<8x256xf32>
    %131 = arith.mulf %130, %126 : vector<8x256xf32>
    %132 = arith.mulf %131, %126 : vector<8x256xf32>
    %133 = arith.addf %126, %132 : vector<8x256xf32>
    %cst_53 = arith.constant 0.797884583 : f32
    %134 = vector.broadcast %cst_53 : f32 to vector<8x256xf32>
    %135 = arith.mulf %134, %133 : vector<8x256xf32>
    %136 = math.tanh %135 : vector<8x256xf32>
    %cst_54 = arith.constant 1.000000e+00 : f32
    %137 = vector.broadcast %cst_54 : f32 to vector<8x256xf32>
    %138 = arith.addf %137, %136 : vector<8x256xf32>
    %139 = arith.mulf %128, %138 : vector<8x256xf32>
    %140 = arith.truncf %139 : vector<8x256xf32> to vector<8x256xbf16>
    %c0_55 = arith.constant 0 : index
    %c0_56 = arith.constant 0 : index
    %141 = vector.load %arg10[%c0_55, %c0_56] : memref<256x128xbf16, #tpu.memory_space<vmem>>, vector<256x128xbf16>
    %cst_57 = arith.constant dense<0.000000e+00> : vector<8x128xf32>
    %142 = tpu.matmul %140, %141, %cst_57 {dimension_numbers = #tpu.dot_dimension_numbers<[1], [0], [0], [1], [0, 0, 1, 1], [], []>} : vector<8x256xbf16>, vector<256x128xbf16>, vector<8x128xf32> -> vector<8x128xf32>
    %c0_58 = arith.constant 0 : index
    %c0_59 = arith.constant 0 : index
    %143 = vector.load %arg11[%c0_58, %c0_59] : memref<1x128xf32, #tpu.memory_space<vmem>>, vector<1x128xf32>
    %144 = vector.broadcast %143 : vector<1x128xf32> to vector<8x128xf32>
    %145 = arith.addf %142, %144 : vector<8x128xf32>
    %146 = arith.addf %145, %120 : vector<8x128xf32>
    %c0_60 = arith.constant 0 : index
    %c0_61 = arith.constant 0 : index
    %147 = vector.load %arg12[%c0_60, %c0_61] : memref<1x128xf32, #tpu.memory_space<vmem>>, vector<1x128xf32>
    %c0_62 = arith.constant 0 : index
    %c0_63 = arith.constant 0 : index
    %148 = vector.load %arg13[%c0_62, %c0_63] : memref<1x128xf32, #tpu.memory_space<vmem>>, vector<1x128xf32>
    %cst_64 = arith.constant dense<0.000000e+00> : vector<8xf32>
    %149 = vector.multi_reduction <add>, %146, %cst_64 [1] : vector<8x128xf32> to vector<8xf32>
    %150 = vector.shape_cast %149 : vector<8xf32> to vector<8x1xf32>
    %cst_65 = arith.constant 1.280000e+02 : f32
    %151 = vector.broadcast %cst_65 : f32 to vector<8x1xf32>
    %152 = arith.divf %150, %151 : vector<8x1xf32>
    %153 = vector.broadcast %152 : vector<8x1xf32> to vector<8x128xf32>
    %154 = arith.subf %146, %153 : vector<8x128xf32>
    %155 = arith.mulf %154, %154 : vector<8x128xf32>
    %cst_66 = arith.constant dense<0.000000e+00> : vector<8xf32>
    %156 = vector.multi_reduction <add>, %155, %cst_66 [1] : vector<8x128xf32> to vector<8xf32>
    %157 = vector.shape_cast %156 : vector<8xf32> to vector<8x1xf32>
    %cst_67 = arith.constant 1.280000e+02 : f32
    %158 = vector.broadcast %cst_67 : f32 to vector<8x1xf32>
    %159 = arith.divf %157, %158 : vector<8x1xf32>
    %cst_68 = arith.constant 9.99999996E-13 : f32
    %160 = vector.broadcast %cst_68 : f32 to vector<8x1xf32>
    %161 = arith.addf %159, %160 : vector<8x1xf32>
    %162 = math.rsqrt %161 : vector<8x1xf32>
    %163 = vector.broadcast %162 : vector<8x1xf32> to vector<8x128xf32>
    %164 = arith.mulf %154, %163 : vector<8x128xf32>
    %165 = vector.broadcast %147 : vector<1x128xf32> to vector<8x128xf32>
    %166 = arith.mulf %164, %165 : vector<8x128xf32>
    %167 = vector.broadcast %148 : vector<1x128xf32> to vector<8x128xf32>
    %168 = arith.addf %166, %167 : vector<8x128xf32>
    %c0_69 = arith.constant 0 : index
    %c0_70 = arith.constant 0 : index
    %c0_71 = arith.constant 0 : index
    %169 = vector.load %arg14[%c0_69, %c0_70, %c0_71] : memref<1x8x128xf32, #tpu.memory_space<vmem>>, vector<1x8x128xf32>
    %170 = vector.shape_cast %169 : vector<1x8x128xf32> to vector<8x128xf32>
    %171 = vector.shape_cast %168 : vector<8x128xf32> to vector<1x8x128xf32>
    tpu.vector_store %arg14[%c0_69, %c0_70, %c0_71], %171 {strides = array<i32>} : memref<1x8x128xf32, #tpu.memory_space<vmem>>, vector<1x8x128xf32>,
    return
  }
  func.func @transform_0(%arg0: i32) -> (i32, i32, i32) {
    %c0_i32 = arith.constant 0 : i32
    %c0_i32_0 = arith.constant 0 : i32
    %c0_i32_1 = arith.constant 0 : i32
    return %arg0, %c0_i32, %c0_i32_0 : i32, i32, i32
  }
  func.func @transform_1(%arg0: i32) -> (i32, i32) {
    %c0_i32 = arith.constant 0 : i32
    %c0_i32_0 = arith.constant 0 : i32
    %c0_i32_1 = arith.constant 0 : i32
    return %c0_i32, %c0_i32_0 : i32, i32
  }
  func.func @transform_2(%arg0: i32) -> (i32, i32) {
    %c0_i32 = arith.constant 0 : i32
    %c0_i32_0 = arith.constant 0 : i32
    %c0_i32_1 = arith.constant 0 : i32
    return %c0_i32, %c0_i32_0 : i32, i32
  }
  func.func @transform_3(%arg0: i32) -> (i32, i32) {
    %c0_i32 = arith.constant 0 : i32
    %c0_i32_0 = arith.constant 0 : i32
    %c0_i32_1 = arith.constant 0 : i32
    return %c0_i32, %c0_i32_0 : i32, i32
  }
  func.func @transform_4(%arg0: i32) -> (i32, i32) {
    %c0_i32 = arith.constant 0 : i32
    %c0_i32_0 = arith.constant 0 : i32
    %c0_i32_1 = arith.constant 0 : i32
    return %c0_i32, %c0_i32_0 : i32, i32
  }
  func.func @transform_5(%arg0: i32) -> (i32, i32) {
    %c0_i32 = arith.constant 0 : i32
    %c0_i32_0 = arith.constant 0 : i32
    %c0_i32_1 = arith.constant 0 : i32
    return %c0_i32, %c0_i32_0 : i32, i32
  }
  func.func @transform_6(%arg0: i32) -> (i32, i32) {
    %c0_i32 = arith.constant 0 : i32
    %c0_i32_0 = arith.constant 0 : i32
    %c0_i32_1 = arith.constant 0 : i32
    return %c0_i32, %c0_i32_0 : i32, i32
  }
  func.func @transform_7(%arg0: i32) -> (i32, i32) {
    %c0_i32 = arith.constant 0 : i32
    %c0_i32_0 = arith.constant 0 : i32
    %c0_i32_1 = arith.constant 0 : i32
    return %c0_i32, %c0_i32_0 : i32, i32
  }
  func.func @transform_8(%arg0: i32) -> (i32, i32) {
    %c0_i32 = arith.constant 0 : i32
    %c0_i32_0 = arith.constant 0 : i32
    %c0_i32_1 = arith.constant 0 : i32
    return %c0_i32, %c0_i32_0 : i32, i32
  }
  func.func @transform_9(%arg0: i32) -> (i32, i32) {
    %c0_i32 = arith.constant 0 : i32
    %c0_i32_0 = arith.constant 0 : i32
    %c0_i32_1 = arith.constant 0 : i32
    return %c0_i32, %c0_i32_0 : i32, i32
  }
  func.func @transform_10(%arg0: i32) -> (i32, i32) {
    %c0_i32 = arith.constant 0 : i32
    %c0_i32_0 = arith.constant 0 : i32
    %c0_i32_1 = arith.constant 0 : i32
    return %c0_i32, %c0_i32_0 : i32, i32
  }
  func.func @transform_11(%arg0: i32) -> (i32, i32) {
    %c0_i32 = arith.constant 0 : i32
    %c0_i32_0 = arith.constant 0 : i32
    %c0_i32_1 = arith.constant 0 : i32
    return %c0_i32, %c0_i32_0 : i32, i32
  }
  func.func @transform_12(%arg0: i32) -> (i32, i32) {
    %c0_i32 = arith.constant 0 : i32
    %c0_i32_0 = arith.constant 0 : i32
    %c0_i32_1 = arith.constant 0 : i32
    return %c0_i32, %c0_i32_0 : i32, i32
  }
  func.func @transform_13(%arg0: i32) -> (i32, i32, i32) {
    %c0_i32 = arith.constant 0 : i32
    %c0_i32_0 = arith.constant 0 : i32
    %c0_i32_1 = arith.constant 0 : i32
    return %arg0, %c0_i32, %c0_i32_0 : i32, i32, i32
  }
}

module attributes {stable_mosaic.version = 11 : i64} {
  func.func @_pool_cls_kernel(%arg0: i32, %arg1: memref<2x128xf32, #tpu.memory_space<vmem>>, %arg2: memref<128x128xbf16, #tpu.memory_space<vmem>>, %arg3: memref<1x128xf32, #tpu.memory_space<vmem>>, %arg4: memref<128x128xbf16, #tpu.memory_space<vmem>>, %arg5: memref<1x128xf32, #tpu.memory_space<vmem>>, %arg6: memref<2x128xf32, #tpu.memory_space<vmem>>) attributes {dimension_semantics = [#tpu.dimension_semantics<arbitrary>], iteration_bounds = array<i64: 1>, scalar_prefetch = 0 : i64, scratch_operands = 0 : i64, tpu.core_type = #tpu.core_type<tc>, window_params = [{pipeline_mode = #tpu.pipeline_mode<synchronous>, transform_indices = @transform_0, window_bounds = array<i64: 2, 128>}, {pipeline_mode = #tpu.pipeline_mode<synchronous>, transform_indices = @transform_1, window_bounds = array<i64: 128, 128>}, {pipeline_mode = #tpu.pipeline_mode<synchronous>, transform_indices = @transform_2, window_bounds = array<i64: 1, 128>}, {pipeline_mode = #tpu.pipeline_mode<synchronous>, transform_indices = @transform_3, window_bounds = array<i64: 128, 128>}, {pipeline_mode = #tpu.pipeline_mode<synchronous>, transform_indices = @transform_4, window_bounds = array<i64: 1, 128>}, {pipeline_mode = #tpu.pipeline_mode<synchronous>, transform_indices = @transform_5, window_bounds = array<i64: 2, 128>}]} {
    %c0 = arith.constant 0 : index
    %c0_0 = arith.constant 0 : index
    %0 = vector.load %arg1[%c0, %c0_0] : memref<2x128xf32, #tpu.memory_space<vmem>>, vector<2x128xf32>
    %1 = arith.truncf %0 : vector<2x128xf32> to vector<2x128xbf16>
    %c0_1 = arith.constant 0 : index
    %c0_2 = arith.constant 0 : index
    %2 = vector.load %arg2[%c0_1, %c0_2] : memref<128x128xbf16, #tpu.memory_space<vmem>>, vector<128x128xbf16>
    %cst = arith.constant dense<0.000000e+00> : vector<2x128xf32>
    %3 = tpu.matmul %1, %2, %cst {dimension_numbers = #tpu.dot_dimension_numbers<[1], [0], [0], [1], [0, 0, 1, 1], [], []>} : vector<2x128xbf16>, vector<128x128xbf16>, vector<2x128xf32> -> vector<2x128xf32>
    %c0_3 = arith.constant 0 : index
    %c0_4 = arith.constant 0 : index
    %4 = vector.load %arg3[%c0_3, %c0_4] : memref<1x128xf32, #tpu.memory_space<vmem>>, vector<1x128xf32>
    %5 = vector.broadcast %4 : vector<1x128xf32> to vector<2x128xf32>
    %6 = arith.addf %3, %5 : vector<2x128xf32>
    %7 = math.tanh %6 : vector<2x128xf32>
    %8 = arith.truncf %7 : vector<2x128xf32> to vector<2x128xbf16>
    %c0_5 = arith.constant 0 : index
    %c0_6 = arith.constant 0 : index
    %9 = vector.load %arg4[%c0_5, %c0_6] : memref<128x128xbf16, #tpu.memory_space<vmem>>, vector<128x128xbf16>
    %cst_7 = arith.constant dense<0.000000e+00> : vector<2x128xf32>
    %10 = tpu.matmul %8, %9, %cst_7 {dimension_numbers = #tpu.dot_dimension_numbers<[1], [0], [0], [1], [0, 0, 1, 1], [], []>} : vector<2x128xbf16>, vector<128x128xbf16>, vector<2x128xf32> -> vector<2x128xf32>
    %c0_8 = arith.constant 0 : index
    %c0_9 = arith.constant 0 : index
    %11 = vector.load %arg5[%c0_8, %c0_9] : memref<1x128xf32, #tpu.memory_space<vmem>>, vector<1x128xf32>
    %12 = vector.broadcast %11 : vector<1x128xf32> to vector<2x128xf32>
    %13 = arith.addf %10, %12 : vector<2x128xf32>
    %cst_10 = arith.constant 0.000000e+00 : f32
    %14 = vector.broadcast %cst_10 : f32 to vector<2x128xf32>
    %15 = arith.subf %14, %13 : vector<2x128xf32>
    %16 = math.exp %15 : vector<2x128xf32>
    %cst_11 = arith.constant 1.000000e+00 : f32
    %17 = vector.broadcast %cst_11 : f32 to vector<2x128xf32>
    %18 = arith.addf %17, %16 : vector<2x128xf32>
    %cst_12 = arith.constant 1.000000e+00 : f32
    %19 = vector.broadcast %cst_12 : f32 to vector<2x128xf32>
    %20 = arith.divf %19, %18 : vector<2x128xf32>
    %c0_13 = arith.constant 0 : index
    %c0_14 = arith.constant 0 : index
    %21 = vector.load %arg6[%c0_13, %c0_14] : memref<2x128xf32, #tpu.memory_space<vmem>>, vector<2x128xf32>
    tpu.vector_store %arg6[%c0_13, %c0_14], %20 {strides = array<i32>} : memref<2x128xf32, #tpu.memory_space<vmem>>, vector<2x128xf32>,
    return
  }
  func.func @transform_0(%arg0: i32) -> (i32, i32) {
    %c0_i32 = arith.constant 0 : i32
    %c0_i32_0 = arith.constant 0 : i32
    %c0_i32_1 = arith.constant 0 : i32
    return %c0_i32, %c0_i32_0 : i32, i32
  }
  func.func @transform_1(%arg0: i32) -> (i32, i32) {
    %c0_i32 = arith.constant 0 : i32
    %c0_i32_0 = arith.constant 0 : i32
    %c0_i32_1 = arith.constant 0 : i32
    return %c0_i32, %c0_i32_0 : i32, i32
  }
  func.func @transform_2(%arg0: i32) -> (i32, i32) {
    %c0_i32 = arith.constant 0 : i32
    %c0_i32_0 = arith.constant 0 : i32
    %c0_i32_1 = arith.constant 0 : i32
    return %c0_i32, %c0_i32_0 : i32, i32
  }
  func.func @transform_3(%arg0: i32) -> (i32, i32) {
    %c0_i32 = arith.constant 0 : i32
    %c0_i32_0 = arith.constant 0 : i32
    %c0_i32_1 = arith.constant 0 : i32
    return %c0_i32, %c0_i32_0 : i32, i32
  }
  func.func @transform_4(%arg0: i32) -> (i32, i32) {
    %c0_i32 = arith.constant 0 : i32
    %c0_i32_0 = arith.constant 0 : i32
    %c0_i32_1 = arith.constant 0 : i32
    return %c0_i32, %c0_i32_0 : i32, i32
  }
  func.func @transform_5(%arg0: i32) -> (i32, i32) {
    %c0_i32 = arith.constant 0 : i32
    %c0_i32_0 = arith.constant 0 : i32
    %c0_i32_1 = arith.constant 0 : i32
    return %c0_i32, %c0_i32_0 : i32, i32
  }
}

</mosaic_0001>

<bundles_post_ra>
// kernel: bert_encoder.4
= control target key start
LH: loop header
LB: loop body
LE: loop exit
PB: predicated region body
PF: predicated region fallthrough
CT: control target
= control target key end

     0   :  { %v90_v2 = vmov 128.0   ;;  %s129_s0 = inlined_call_operand.vmem [shape: f32[16,128], index: 0, kind: input, shape index: {}]   ;;  %s130_s1 = inlined_call_operand.vmem [shape: f32[1,128], index: 1, kind: input, shape index: {}]   ;;  %s131_s2 = inlined_call_operand.vmem [shape: f32[1,128], index: 2, kind: input, shape index: {}]   ;;  %s132_s3 = inlined_call_operand.vmem [shape: f32[16,128], index: 3, kind: output, shape index: {}]  }
   0x1   :  { %v14_v0 = vld [vmem:[%s129_s0] sm:$0xff]  ;;  %v15_v1 = vld [vmem:[%s129_s0 + $0x8] sm:$0xff]  ;;  %84 = vrcp.f32 %v90_v2 }
   0x2   :  { %18 = vadd.xlane.f32.xlu0 %v14_v0  ;;  %v82_v31 = vld [vmem:[%s130_s1] ss:$0 sm:$0xff] }
   0x3   :  { %v83_v34 = vld [vmem:[%s131_s2] ss:$0 sm:$0xff] }
   0x7   :  { %v85_v3 = vpop.eup %84 }
   0x8   :  { %v23_v4 = vmul.f32 128.0, %v85_v3  ;;  %vm27_vm0 = vweird.f32 %v85_v3 }
   0xa   :  { %20 = vadd.xlane.f32.xlu0 %v15_v1  ;;  %v24_v5 = vsub.f32 1.0, %v23_v4 }
   0xc   :  { %v25_v6 = vmul.f32 %v85_v3, %v24_v5 }
   0xe   :  { %v26_v7 = vadd.f32 %v85_v3, %v25_v6 }
  0x10   :  { %v28_v8 = vsel %vm27_vm0, %v85_v3, %v26_v7 }
  0x75   :  { %v19_v9 = vpop.xlane.xlu0 %18 }
  0x76   :  { %v29_v10 = vmul.f32 %v28_v8, %v19_v9 }
  0x78   :  { %v31_v11 = vsub.f32 %v14_v0, %v29_v10 }
  0x7a   :  { %v33_v12 = vmul.f32 %v31_v11, %v31_v11 }
  0x7c   :  { %35 = vadd.xlane.f32.xlu1 %v33_v12 }
  0x7d   :  { %v21_v13 = vpop.xlane.xlu0 %20 }
  0x7e   :  { %v30_v14 = vmul.f32 %v28_v8, %v21_v13 }
  0x80   :  { %v32_v15 = vsub.f32 %v15_v1, %v30_v14 }
  0x82   :  { %v34_v16 = vmul.f32 %v32_v15, %v32_v15 }
  0x84   :  { %37 = vadd.xlane.f32.xlu1 %v34_v16 }
  0xef   :  { %v36_v17 = vpop.xlane.xlu1 %35 }
  0xf0   :  { %v39_v18 = vmul.f32 %v36_v17, %v28_v8 }
  0xf2   :  { %v41_v19 = vadd.f32 1e-12, %v39_v18 }
  0xf4   :  { %86 = vrsqrt.f32 %v41_v19  ;;  %vm49_vm2 = vweird.f32 %v41_v19 }
  0xf7   :  { %v38_v20 = vpop.xlane.xlu1 %37 }
  0xf8   :  { %v40_v21 = vmul.f32 %v38_v20, %v28_v8 }
  0xfa   :  { %v87_v22 = vpop.eup %86  ;;  %v42_v23 = vadd.f32 1e-12, %v40_v21 }
  0xfb   :  { %v44_v24 = vmul.f32 %v87_v22, %v41_v19  ;;  %vm50_vm1 = vweird.f32 %v87_v22 }
  0xfc   :  { %88 = vrsqrt.f32 %v42_v23  ;;  %vm51_vm3 = vmor %vm49_vm2, %vm50_vm1  ;;  %vm59_vm5 = vweird.f32 %v42_v23 }
  0xfd   :  { %v45_v25 = vmul.f32 %v87_v22, %v44_v24 }
  0xff   :  { %v46_v26 = vmul.f32 0.5, %v45_v25 }
 0x101   :  { %v47_v27 = vsub.f32 1.5, %v46_v26 }
 0x102   :  { %v89_v28 = vpop.eup %88 }
 0x103   :  { %v48_v29 = vmul.f32 %v87_v22, %v47_v27  ;;  %v54_v30 = vmul.f32 %v89_v28, %v42_v23  ;;  %vm60_vm4 = vweird.f32 %v89_v28 }
 0x104   :  { %vm61_vm6 = vmor %vm59_vm5, %vm60_vm4 }
 0x105   :  { %v52_v32 = vsel %vm51_vm3, %v87_v22, %v48_v29  ;;  %v55_v33 = vmul.f32 %v89_v28, %v54_v30 }
 0x106   :  { %v63_v35 = vmul.f32 %v52_v32, %v31_v11 }
 0x107   :  { %v56_v36 = vmul.f32 0.5, %v55_v33 }
 0x108   :  { %v68_v37 = vmul.f32 %v82_v31, %v63_v35 }
 0x109   :  { %v57_v38 = vsub.f32 1.5, %v56_v36 }
 0x10a   :  { %v73_v39 = vadd.f32 %v83_v34, %v68_v37 }
 0x10b   :  { %v58_v40 = vmul.f32 %v89_v28, %v57_v38 }
 0x10c   :  { %75 = vst [vmem:[%s132_s3] sm:$0xff] %v73_v39 }
 0x10d   :  { %v62_v41 = vsel %vm61_vm6, %v89_v28, %v58_v40 }
 0x10e   :  { %v64_v42 = vmul.f32 %v62_v41, %v32_v15 }
 0x110   :  { %v69_v43 = vmul.f32 %v82_v31, %v64_v42 }
 0x112   :  { %v74_v44 = vadd.f32 %v83_v34, %v69_v43 }
 0x114   :  { %76 = vst [vmem:[%s132_s3 + $0x8] sm:$0xff] %v74_v44 }

// kernel: bert_encoder.7
= control target key start
LH: loop header
LB: loop body
LE: loop exit
PB: predicated region body
PF: predicated region fallthrough
CT: control target
= control target key end

     0   :  { %10 = vsyncpa [#allocation3], 0  ;;  %s440_s0 = inlined_call_operand.vmem [shape: f32[2,128], index: 0, kind: input, shape index: {}]   ;;  %s441_s1 = inlined_call_operand.hbm [shape: bf16[128,128], index: 1, kind: input, shape index: {}]   ;;  %s442_s2 = inlined_call_operand.vmem [shape: f32[1,128], index: 2, kind: input, shape index: {}]   ;;  %s443_s3 = inlined_call_operand.hbm [shape: bf16[128,128], index: 3, kind: input, shape index: {}]   ;;  %s444_s4 = inlined_call_operand.vmem [shape: f32[1,128], index: 4, kind: input, shape index: {}]   ;;  %s445_s5 = inlined_call_operand.vmem [shape: f32[2,128], index: 5, kind: output, shape index: {}]  }
   0x1   :  { %s18_s20 = sshll.u32 %s441_s1, 4  ;;  %s19_s20 = int_to_ptr.hbm [resolvable:$true] %s18_s20 }
   0x2   :  { %11 = vsyncpa [#allocation5], 0  ;;  %s388_s21 = smov [#allocation2]   ;;  %s33_s25 = sshll.u32 %s443_s3, 4  ;;  %s34_s25 = int_to_ptr.hbm [resolvable:$true] %s33_s25 }
   0x3   :  { %s20_s22 = sshll.u32 %s388_s21, 4  ;;  %s389_s26 = smov 64   ;;  %s21_s22 = int_to_ptr.vmem [resolvable:$true] %s20_s22 }
   0x4   :  { %s390_s27 = smov 4   ;;  %s391_s28 = smov [#allocation4]  }
   0x5   :  { %26 = dma.hbm_to_vmem [thread:$0]  %s19_s20, 1024, %s21_s22, [#allocation3], %s389_s26, %s389_s26, %s390_s27  }
   0x6   :  { %s35_s29 = sshll.u32 %s391_s28, 4  ;;  %s36_s29 = int_to_ptr.vmem [resolvable:$true] %s35_s29 }
   0x7   :  { %41 = dma.hbm_to_vmem [thread:$0]  %s34_s25, 1024, %s36_s29, [#allocation5], %s389_s26, %s389_s26, %s390_s27  }
   0x8   :  { %384 = dma.done.wait [#allocation3], 1024  }
   0x9   :  { %385 = vsyncadd [#allocation3], 4294966272 }
   0xa   :  { %386 = dma.done.wait [#allocation5], 1024  }
   0xb   :  { %387 = vsyncadd [#allocation5], 4294966272  ;;  %v315_v0 = vld [vmem:[#allocation2 + $0x38] sm:$0xff]  ;;  %v314_v1 = vld [vmem:[#allocation2 + $0x30] sm:$0xff] }
   0xc   :  { %122 = vmatpush.bf16.msra.mxu0 %v315_v0  ;;  %v323_v2 = vld [vmem:[#allocation4 + $0x38] sm:$0xff]  ;;  %v322_v3 = vld [vmem:[#allocation4 + $0x30] sm:$0xff]  ;;  %v313_v4 = vld [vmem:[#allocation2 + $0x28] sm:$0xff] }
   0xd   :  { %205 = vmatpush.bf16.msra.mxu1 %v323_v2  ;;  %v321_v5 = vld [vmem:[#allocation4 + $0x28] sm:$0xff]  ;;  %v312_v6 = vld [vmem:[#allocation2 + $0x20] sm:$0xff]  ;;  %v311_v8 = vld [vmem:[#allocation2 + $0x18] sm:$0xff] }
   0xe   :  { %v320_v7 = vld [vmem:[#allocation4 + $0x20] sm:$0xff]  ;;  %v319_v9 = vld [vmem:[#allocation4 + $0x18] sm:$0xff]  ;;  %v310_v10 = vld [vmem:[#allocation2 + $0x10] sm:$0xff] }
   0xf   :  { %v309_v11 = vld [vmem:[#allocation2 + $0x8] sm:$0xff]  ;;  %v308_v12 = vld [vmem:[#allocation2] sm:$0xff]  ;;  %v318_v15 = vld [vmem:[#allocation4 + $0x10] sm:$0xff] }
  0x10   :  { %123 = vmatpush.bf16.msra.mxu0 %v314_v1  ;;  %v52_v13 = vld [vmem:[%s440_s0] sm:$0x3]  ;;  %v317_v16 = vld [vmem:[#allocation4 + $0x8] sm:$0xff] }
  0x11   :  { %206 = vmatpush.bf16.msra.mxu1 %v322_v3  ;;  %v53_v14 = vpack.c.bf16 %v52_v13, %v52_v13  ;;  %v316_v17 = vld [vmem:[#allocation4] sm:$0xff] }
  0x12   :  { %v328_v18 = vld [vmem:[%s442_s2] ss:$0 sm:$0xff] }
  0x13   :  { %v329_v24 = vld [vmem:[%s444_s4] ss:$0 sm:$0xff] }
  0x14   :  { %124 = vmatpush.bf16.msra.mxu0 %v313_v4 }
  0x15   :  { %207 = vmatpush.bf16.msra.mxu1 %v321_v5 }
  0x18   :  { %125 = vmatpush.bf16.msra.mxu0 %v312_v6 }
  0x19   :  { %208 = vmatpush.bf16.msra.mxu1 %v320_v7 }
  0x1c   :  { %126 = vmatpush.bf16.msra.mxu0 %v311_v8 }
  0x1d   :  { %209 = vmatpush.bf16.msra.mxu1 %v319_v9 }
  0x20   :  { %127 = vmatpush.bf16.msra.mxu0 %v310_v10 }
  0x21   :  { %210 = vmatpush.bf16.msra.mxu1 %v318_v15 }
  0x24   :  { %128 = vmatpush.bf16.msra.mxu0 %v309_v11 }
  0x25   :  { %211 = vmatpush.bf16.msra.mxu1 %v317_v16 }
  0x28   :  { %129 = vmatpush.bf16.msra.mxu0 %v308_v12 }
  0x29   :  { %212 = vmatpush.bf16.msra.mxu1 %v316_v17 }
  0x2b   :  { %130 = vmatmul.bf16.vlgmr.msra.gmra.mxu0 %v53_v14 }
  0xa8   :  { %v131_v19 = vpop.f32.mrf.mxu0 }
  0xa9   :  { %v132_v20 = vadd.f32 %v328_v18, %v131_v19 }
  0xab   :  { %330 = vtanh.f32 %v132_v20 }
  0xb0   :  { %v133_v21 = vpop.f32.mrf.mxu0 }
  0xb1   :  { %v331_v22 = vpop.eup %330 }
  0xb2   :  { %v136_v23 = vpack.c.bf16 %v331_v22, %v331_v22 }
  0xb4   :  { %213 = vmatmul.bf16.vlgmr.msra.gmra.mxu1 %v136_v23 }
 0x131   :  { %v214_v25 = vpop.f32.mrf.mxu1 }
 0x132   :  { %v215_v26 = vadd.f32 %v329_v24, %v214_v25 }
 0x134   :  { %v218_v27 = vsub.f32 0.0, %v215_v26 }
 0x136   :  { %v219_v28 = vmul.f32 1.442695, %v218_v27 }
 0x138   :  { %332 = vpow2.f32 %v219_v28 }
 0x139   :  { %v216_v29 = vpop.f32.mrf.mxu1 }
 0x13e   :  { %v333_v30 = vpop.eup %332 }
 0x13f   :  { %v221_v31 = vadd.f32 1.0, %v333_v30 }
 0x141   :  { %334 = vrcp.f32 %v221_v31  ;;  %v233_v35 = vand.u32 2147483648, %v221_v31  ;;  %v231_v37 = vand.u32 2147483647, %v221_v31  ;;  %vm227_vm1 = vweird.f32 %v221_v31 }
 0x143   :  { %v234_v39 = vor.u32 1.1754944e-38, %v233_v35  ;;  %vm232_vm3 = vcmp.eq.f32.partialorder %v231_v37, 8.507059e+37 }
 0x147   :  { %v335_v32 = vpop.eup %334 }
 0x148   :  { %v223_v33 = vmul.f32 %v335_v32, %v221_v31  ;;  %vm228_vm0 = vweird.f32 %v335_v32 }
 0x149   :  { %vm229_vm2 = vmor %vm227_vm1, %vm228_vm0 }
 0x14a   :  { %v224_v34 = vsub.f32 1.0, %v223_v33 }
 0x14c   :  { %v225_v36 = vmul.f32 %v335_v32, %v224_v34 }
 0x14e   :  { %v226_v38 = vadd.f32 %v335_v32, %v225_v36 }
 0x150   :  { %v230_v40 = vsel %vm229_vm2, %v335_v32, %v226_v38 }
 0x151   :  { %v235_v41 = vsel %vm232_vm3, %v234_v39, %v230_v40 }
 0x152   :  { %237 = vst [vmem:[%s445_s5] sm:$0x3] %v235_v41 }
 0x153   :  { %242 = vsyncpa [#allocation3], 1 }
 0x154   :  { %243 = vsyncpa [#allocation5], 1 }

// kernel: bert_encoder.6
= control target key start
LH: loop header
LB: loop body
LE: loop exit
PB: predicated region body
PF: predicated region fallthrough
CT: control target
= control target key end

     0   :  { %s2414_s0 = inlined_call_operand.vmem [shape: f32[2,8,128], index: 0, kind: input, shape index: {}]   ;;  %s2415_s1 = inlined_call_operand.hbm [shape: bf16[128,384], index: 1, kind: input, shape index: {}]   ;;  %s2416_s2 = inlined_call_operand.vmem [shape: f32[1,384], index: 2, kind: input, shape index: {}]   ;;  %s2417_s3 = inlined_call_operand.hbm [shape: bf16[128,128], index: 3, kind: input, shape index: {}]   ;;  %s2418_s4 = inlined_call_operand.vmem [shape: f32[1,128], index: 4, kind: input, shape index: {}]   ;;  %s2419_s5 = inlined_call_operand.vmem [shape: f32[1,128], index: 5, kind: input, shape index: {}]   ;;  %s2420_s6 = inlined_call_operand.vmem [shape: f32[1,128], index: 6, kind: input, shape index: {}]   ;;  %s2421_s7 = inlined_call_operand.hbm [shape: bf16[128,256], index: 7, kind: input, shape index: {}]   ;;  %s2422_s8 = inlined_call_operand.vmem [shape: f32[1,256], index: 8, kind: input, shape index: {}]   ;;  %s2423_s9 = inlined_call_operand.hbm [shape: bf16[256,128], index: 9, kind: input, shape index: {}]   ;;  %s2424_s10 = inlined_call_operand.vmem [shape: f32[1,128], index: 10, kind: input, shape index: {}]   ;;  %s2425_s11 = inlined_call_operand.vmem [shape: f32[1,128], index: 11, kind: input, shape index: {}]   ;;  %s2426_s12 = inlined_call_operand.vmem [shape: f32[1,128], index: 12, kind: input, shape index: {}]   ;;  %s2427_s13 = inlined_call_operand.vmem [shape: f32[2,8,128], index: 13, kind: output, shape index: {}]  }
   0x1   :  { %2429 = sst [smem:[#allocation13_spill]] %s2415_s1 }
   0x2   :  { %2430 = sst [smem:[#allocation14_spill]] %s2417_s3 }
   0x3   :  { %2431 = sst [smem:[#allocation15_spill]] %s2427_s13 }
   0x4   :  { %18 = vsyncpa [#allocation3], 0 }
   0x5   :  { %19 = vsyncpa [#allocation5], 0 }
   0x6   :  { %20 = vsyncpa [#allocation8], 0  ;;  %s2253_s25 = smov 0  }
   0x7 LB: > { %2432 = sst [smem:[#allocation12_spill]] %s2167_s25  ;;  %s2262_s29 = sadd.s32 4294967295, %s2167_s25   ;;  %s2167_s25 = sphi %s2253_s25, %s26_s25  }
   0x8   : > { %s2433_s3 = sld [smem:[#allocation14_spill]]  ;;  %p1587_p0 = scmp.ge.s32.totalorder %s2167_s25, 1 }
   0x9   : > { %p335_p1 = scmp.lt.s32.totalorder %s2167_s25, 3  ;;  %p1967_p2 = scmp.eq.s32.totalorder %s2262_s29, 0 }
   0xa   : > { %s2169_s14 = smov [#allocation4]   ;;  %s2435_s1 = sld [smem:[#allocation13_spill]] }
   0xb   : > { %p2267_p3 = pnand %p1587_p0, %p335_p1  ;;  %s365_s15 = sshll.u32 %s2169_s14, 4  ;;  %s366_s15 = int_to_ptr.vmem [resolvable:$true] %s365_s15 }
   0xc   : > { %s2170_s20 = smov [#allocation2]   ;;  %s2171_s22 = smov 64  }
   0xd   : > { %p1954_p4 = pneg %p2267_p3  ;;  %s348_s21 = sshll.u32 %s2170_s20, 4  ;;  %s349_s21 = int_to_ptr.vmem [resolvable:$true] %s348_s21 }
   0xe   : > { %s363_s28 = sshll.u32 %s2433_s3, 4  ;;  %s2172_s23 = smov 4   ;;  %s364_s28 = int_to_ptr.hbm [resolvable:$true] %s363_s28 }
   0xf   : > { %p2278_p5 = pnand %p1967_p2, %p1954_p4  ;;  %s386_s27 = sshll.u32 %s2421_s7, 4  ;;  %s387_s27 = int_to_ptr.hbm [resolvable:$true] %s386_s27 }
  0x10   : > { %s346_s18 = sshll.u32 %s2435_s1, 4  ;;  %s2173_s14 = smov 192   ;;  %s347_s18 = int_to_ptr.hbm [resolvable:$true] %s346_s18 }
  0x11   : > { %1960 = dma.hbm_to_vmem [thread:$0]  (!%p2278_p5), %s364_s28, 1024, %s366_s15, [#allocation5], %s2171_s22, %s2171_s22, %s2172_s23  }
  0x12   : > { %s2174_s16 = smov 12   ;;  %s2175_s17 = smov [#allocation6]  }
  0x13   : > { %1957 = dma.hbm_to_vmem [thread:$0]  (!%p2278_p5), %s347_s18, 3072, %s349_s21, [#allocation3], %s2173_s14, %s2173_s14, %s2174_s16  }
  0x14   : > { %s388_s1 = sshll.u32 %s2175_s17, 4  ;;  %s2176_s3 = smov 128   ;;  %s389_s1 = int_to_ptr.vmem [resolvable:$true] %s388_s1 }
  0x15   : > { %s2177_s20 = smov 8   ;;  %s403_s28 = sshll.u32 %s2423_s9, 4  ;;  %s404_s28 = int_to_ptr.hbm [resolvable:$true] %s403_s28 }
  0x16   : > { %1963 = dma.hbm_to_vmem [thread:$0]  (!%p2278_p5), %s387_s27, 2048, %s389_s1, [#allocation5], %s2176_s3, %s2176_s3, %s2177_s20  }
  0x17   : > { %s2178_s15 = smov [#allocation7]   ;;  %437 = sbr.rel (%p2267_p3) target bundleno = 2104 (0x838), region = 72 }
  0x18   : > { %s405_s24 = sshll.u32 %s2178_s15, 4  ;;  %s406_s24 = int_to_ptr.vmem [resolvable:$true] %s405_s24 }
  0x19   : > { %1966 = dma.hbm_to_vmem [thread:$0]  (!%p2278_p5), %s404_s28, 2048, %s406_s24, [#allocation8], %s2171_s22, %s2171_s22, %s2172_s23  }
  0x1c   : > { %2154 = dma.done.wait (%p1967_p2), [#allocation3], 3072  }
  0x1d   : > { %2156 = vsyncadd (%p1967_p2), [#allocation3], 4294964224 }
  0x1e   : > { %2158 = dma.done.wait (%p1967_p2), [#allocation5], 3072  }
  0x1f   : > { %2160 = vsyncadd (%p1967_p2), [#allocation5], 4294964224 }
  0x20   : > { %2162 = dma.done.wait (%p1967_p2), [#allocation8], 2048  }
  0x21   : > { %2164 = vsyncadd (%p1967_p2), [#allocation8], 4294965248  ;;  %v1686_v0 = vld [vmem:[#allocation2 + $0xa8] sm:$0xf]  ;;  %v1896_v1 = vld [vmem:[#allocation2 + $0xb0] sm:$0xf0] }
  0x22   : > { %v1895_v2 = vld [vmem:[#allocation2 + $0xac] sm:$0xf]  ;;  %v1687_v3 = vor.u32 %v1896_v1, %v1686_v0  ;;  %v1688_v4 = vld [vmem:[#allocation2 + $0xb4] sm:$0xf0]  ;;  %v1674_v5 = vld [vmem:[#allocation2 + $0x90] sm:$0xf] }
  0x23   : > { %v1893_v6 = vld [vmem:[#allocation2 + $0x98] sm:$0xf0]  ;;  %v1691_v7 = vor.u32 %v1895_v2, %v1688_v4  ;;  %v1892_v8 = vld [vmem:[#allocation2 + $0x94] sm:$0xf]  ;;  %v1676_v9 = vld [vmem:[#allocation2 + $0x9c] sm:$0xf0] }
  0x24   : > { %674 = vmatpush.bf16.msra.mxu0 %v1687_v3  ;;  %v1675_v10 = vor.u32 %v1893_v6, %v1674_v5  ;;  %v1679_v11 = vor.u32 %v1892_v8, %v1676_v9  ;;  %v1662_v12 = vld [vmem:[#allocation2 + $0x78] sm:$0xf]  ;;  %v1890_v13 = vld [vmem:[#allocation2 + $0x80] sm:$0xf0]  ;;  %v1889_v14 = vld [vmem:[#allocation2 + $0x7c] sm:$0xf] }
  0x25   : > { %687 = vmatpush.bf16.msra.mxu1 %v1691_v7  ;;  %v1664_v15 = vld [vmem:[#allocation2 + $0x84] sm:$0xf0]  ;;  %v1663_v16 = vor.u32 %v1890_v13, %v1662_v12  ;;  %v1650_v18 = vld [vmem:[#allocation2 + $0x60] sm:$0xf]  ;;  %v1887_v19 = vld [vmem:[#allocation2 + $0x68] sm:$0xf0] }
  0x26   : > { %v1667_v17 = vor.u32 %v1889_v14, %v1664_v15  ;;  %v1886_v20 = vld [vmem:[#allocation2 + $0x64] sm:$0xf]  ;;  %v1652_v21 = vld [vmem:[#allocation2 + $0x6c] sm:$0xf0]  ;;  %p495_p6 = scmp.lt.s32.totalorder %s2262_s29, 1  ;;  %v1651_v22 = vor.u32 %v1887_v19, %v1650_v18  ;;  %vm713_vm0 = vcmask 261120  }
  0x27   : > { %v1694_v23 = vld [vmem:[#allocation2 + $0xb0] sm:$0xf]  ;;  %v1897_v24 = vld [vmem:[#allocation2 + $0xb8] sm:$0xf0]  ;;  %v1682_v25 = vld [vmem:[#allocation2 + $0x98] sm:$0xf]  ;;  %v1655_v26 = vor.u32 %v1886_v20, %v1652_v21 }
  0x28   : > { %675 = vmatpush.bf16.msra.mxu0 %v1675_v10  ;;  %v1638_v27 = vld [vmem:[#allocation2 + $0x48] sm:$0xf]  ;;  %v1884_v28 = vld [vmem:[#allocation2 + $0x50] sm:$0xf0]  ;;  %v1695_v29 = vor.u32 %v1897_v24, %v1694_v23  ;;  %v1894_v30 = vld [vmem:[#allocation2 + $0xa0] sm:$0xf0] }
  0x29   : > { %688 = vmatpush.bf16.msra.mxu1 %v1679_v11  ;;  %v1883_v31 = vld [vmem:[#allocation2 + $0x4c] sm:$0xf]  ;;  %v1640_v32 = vld [vmem:[#allocation2 + $0x54] sm:$0xf0]  ;;  %s2440_s29 = smov (!%p495_p6, %s2262_s29), 1  ;;  %v1683_v33 = vor.u32 %v1894_v30, %v1682_v25  ;;  %v1639_v34 = vor.u32 %v1884_v28, %v1638_v27  ;;  %s2179_s19 = smov 64  }
  0x2a   : > { %700 = vmatpush.bf16.msra.mxu2 %v1695_v29  ;;  %v1626_v35 = vld [vmem:[#allocation2 + $0x30] sm:$0xf]  ;;  %v1670_v36 = vld [vmem:[#allocation2 + $0x80] sm:$0xf]  ;;  %v1891_v37 = vld [vmem:[#allocation2 + $0x88] sm:$0xf0]  ;;  %v1643_v38 = vor.u32 %v1883_v31, %v1640_v32 }
  0x2b   : > { %v1881_v39 = vld [vmem:[#allocation2 + $0x38] sm:$0xf0]  ;;  %v1880_v40 = vld [vmem:[#allocation2 + $0x34] sm:$0xf]  ;;  %v1628_v41 = vld [vmem:[#allocation2 + $0x3c] sm:$0xf0]  ;;  %v1671_v42 = vor.u32 %v1891_v37, %v1670_v36 }
  0x2c   : > { %676 = vmatpush.bf16.msra.mxu0 %v1663_v16  ;;  %v1627_v43 = vor.u32 %v1881_v39, %v1626_v35  ;;  %v1658_v44 = vld [vmem:[#allocation2 + $0x68] sm:$0xf]  ;;  %v1888_v45 = vld [vmem:[#allocation2 + $0x70] sm:$0xf0]  ;;  %v1631_v46 = vor.u32 %v1880_v40, %v1628_v41  ;;  %v1614_v47 = vld [vmem:[#allocation2 + $0x18] sm:$0xf] }
  0x2d   : > { %689 = vmatpush.bf16.msra.mxu1 %v1667_v17  ;;  %v1878_v48 = vld [vmem:[#allocation2 + $0x20] sm:$0xf0]  ;;  %v1877_v49 = vld [vmem:[#allocation2 + $0x1c] sm:$0xf]  ;;  %v1616_v50 = vld [vmem:[#allocation2 + $0x24] sm:$0xf0]  ;;  %v1659_v51 = vor.u32 %v1888_v45, %v1658_v44 }
  0x2e   : > { %701 = vmatpush.bf16.msra.mxu2 %v1683_v33  ;;  %s1598_s1 = sshll.u32 %s2440_s29, 3  ;;  %v1615_v52 = vor.u32 %v1878_v48, %v1614_v47  ;;  %v1646_v53 = vld [vmem:[#allocation2 + $0x50] sm:$0xf]  ;;  %v1885_v54 = vld [vmem:[#allocation2 + $0x58] sm:$0xf0]  ;;  %v1619_v55 = vor.u32 %v1877_v49, %v1616_v50  ;;  %s2180_s21 = smov 96  }
  0x2f   : > { %v1602_v56 = vld [vmem:[#allocation2] sm:$0xf]  ;;  %v1875_v57 = vld [vmem:[#allocation2 + $0x8] sm:$0xf0]  ;;  %s498_s25 = scalar_lea.vmem %s2414_s0, %s1598_s1  ;;  %v1874_v58 = vld [vmem:[#allocation2 + $0x4] sm:$0xf]  ;;  %v1647_v60 = vor.u32 %v1885_v54, %v1646_v53 }
  0x30   : > { %677 = vmatpush.bf16.msra.mxu0 %v1651_v22  ;;  %v1604_v59 = vld [vmem:[#allocation2 + $0xc] sm:$0xf0]  ;;  %v1603_v61 = vor.u32 %v1875_v57, %v1602_v56  ;;  %v2322_v62 = vld [vmem:[%s498_s25] sm:$0xff]  ;;  %v1634_v63 = vld [vmem:[#allocation2 + $0x38] sm:$0xf]  ;;  %s2181_s22 = smov 32  }
  0x31   : > { %690 = vmatpush.bf16.msra.mxu1 %v1655_v26  ;;  %v1882_v0 = vld [vmem:[#allocation2 + $0x40] sm:$0xf0]  ;;  %v1607_v1 = vor.u32 %v1874_v58, %v1604_v59  ;;  %v505_v2 = vpack.c.bf16 %v2322_v62, %v2322_v62  ;;  %v1622_v4 = vld [vmem:[#allocation2 + $0x20] sm:$0xf]  ;;  %v1879_v5 = vld [vmem:[#allocation2 + $0x28] sm:$0xf0] }
  0x32   : > { %702 = vmatpush.bf16.msra.mxu2 %v1671_v42  ;;  %v1635_v3 = vor.u32 %v1882_v0, %v1634_v63  ;;  %v1623_v6 = vor.u32 %v1879_v5, %v1622_v4  ;;  %v1610_v7 = vld [vmem:[#allocation2 + $0x8] sm:$0xf]  ;;  %v1876_v8 = vld [vmem:[#allocation2 + $0x10] sm:$0xf0]  ;;  %v538_v10 = vld [vmem:[%s2416_s2] sm:$0x7] }
  0x33   : > { %v1611_v9 = vor.u32 %v1876_v8, %v1610_v7  ;;  %v541_v11 = vperm.slane %v538_v10, 1  ;;  %v540_v12 = vperm.slane %v538_v10, 0  ;;  %v542_v19 = vperm.slane %v538_v10, 2  ;;  %v1899_v48 = vld [vmem:[#allocation4 + $0x8] sm:$0xff]  ;;  %v1898_v49 = vld [vmem:[#allocation4] sm:$0xff] }
  0x34   : > { %678 = vmatpush.bf16.msra.mxu0 %v1639_v34  ;;  %vm741_vm1 = vcmask 64512  }
  0x35   : > { %691 = vmatpush.bf16.msra.mxu1 %v1643_v38 }
  0x36   : > { %703 = vmatpush.bf16.msra.mxu2 %v1659_v51 }
  0x38   : > { %679 = vmatpush.bf16.msra.mxu0 %v1627_v43 }
  0x39   : > { %692 = vmatpush.bf16.msra.mxu1 %v1631_v46 }
  0x3a   : > { %704 = vmatpush.bf16.msra.mxu2 %v1647_v60 }
  0x3c   : > { %680 = vmatpush.bf16.msra.mxu0 %v1615_v52 }
  0x3d   : > { %693 = vmatpush.bf16.msra.mxu1 %v1619_v55 }
  0x3e   : > { %705 = vmatpush.bf16.msra.mxu2 %v1635_v3 }
  0x40   : > { %681 = vmatpush.bf16.msra.mxu0 %v1603_v61 }
  0x41   : > { %694 = vmatpush.bf16.msra.mxu1 %v1607_v1 }
  0x42   : > { %706 = vmatpush.bf16.msra.mxu2 %v1623_v6 }
  0x43   : > { %682 = vmatmul.bf16.vlgmr.msra.gmra.mxu0 %v505_v2 }
  0x44   : > { %695 = vmatmul.bf16.vlgmr.msra.gmra.mxu1 %v505_v2  ;;  %902 = vmatpush.bf16.msrb.mxu0 %v1899_v48  ;;  %v1804_v48 = vld [vmem:[#allocation6 + $0x78] sm:$0xf0] }
  0x46   : > { %707 = vmatpush.bf16.msra.mxu2 %v1611_v9 }
  0x48   : > { %903 = vmatpush.bf16.msrb.mxu0 %v1898_v49 }
  0x49   : > { %708 = vmatmul.bf16.vlgmr.msra.gmra.mxu2 %v505_v2 }
  0xc0   : > { %v683_v13 = vpop.f32.mrf.mxu0 }
  0xc1   : > { %v696_v14 = vpop.f32.mrf.mxu1  ;;  %v684_v16 = vadd.f32 %v683_v13, %v540_v12  ;;  %v1901_v13 = vld [vmem:[#allocation4 + $0x18] sm:$0xff] }
  0xc2   : > { %v697_v15 = vadd.f32 %v696_v14, %v541_v11 }
  0xc4   : > { %911 = vrot.lane.b32.xlu2 %v697_v15, %s2179_s19  ;;  %783 = vrot.lane.b32.xlu1 %v697_v15, %s2180_s21 }
  0xc5   : > { %1696 = vmatpush.xpose.msk.msra.mxu3 %vm713_vm0, %v697_v15 }
  0xc8   : > { %1697 = vmatmul.msk.f32.vlgmr.msra.gmra.mxu3 %vm713_vm0, %v684_v16  ;;  %v685_v17 = vpop.f32.mrf.mxu0 }
  0xc9   : > { %v698_v18 = vpop.f32.mrf.mxu1 }
  0xcc   : > { %909 = vrot.lane.b32.xlu2 %v684_v16, %s2179_s19  ;;  %781 = vrot.lane.b32.xlu1 %v684_v16, %s2180_s21  ;;  %v709_v20 = vpop.f32.mrf.mxu2 }
  0xcd   : > { %v2336_v21 = vadd.f32 %v709_v20, %v542_v19  ;;  %v1900_v20 = vld [vmem:[#allocation4 + $0x10] sm:$0xff] }
  0xcf   : > { %771 = vmatpush.msrb.mxu3 %v2336_v21 }
  0xd4   : > { %1009 = vrot.lane.b32.xlu1 %v684_v16, %s2181_s22  ;;  %v711_v22 = vpop.f32.mrf.mxu2 }
  0xd5   : > { %v1905_v22 = vld [vmem:[#allocation4 + $0x38] sm:$0xff] }
  0xd6   : > { %1101 = vmatpush.bf16.msra.mxu0 %v1905_v22  ;;  %v1910_v22 = vld [vmem:[#allocation6 + $0x24] sm:$0xf] }
 0x11e   : > { %v912_v23 = vpop.permute.xlu2 %911 }
 0x11f   : > { %1720 = vmatpush.xpose.msk.msrb.mxu1 %vm713_vm0, %v912_v23  ;;  %v1904_v23 = vld [vmem:[#allocation4 + $0x30] sm:$0xff] }
 0x120   : > { %1102 = vmatpush.bf16.msra.mxu0 %v1904_v23 }
 0x126   : > { %v910_v24 = vpop.permute.xlu2 %909 }
 0x127   : > { %1721 = vmatmul.msk.f32.vlgmr.msrb.gmra.mxu1 %vm713_vm0, %v910_v24  ;;  %v1902_v24 = vld [vmem:[#allocation4 + $0x20] sm:$0xff] }
 0x136   : > { %v784_v25 = vpop.permute.xlu1 %783 }
 0x137   : > { %1699 = vmatpush.xpose.msk.msra.mxu3 %vm713_vm0, %v784_v25 }
 0x13e   : > { %v782_v37 = vpop.permute.xlu1 %781 }
 0x146   : > { %v1010_v38 = vpop.permute.xlu1 %1009 }
 0x14b   : > { %v737_v26 = vpop.f32.mrf.mxu3 }
 0x14c   : > { %v740_v27 = vmul.f32 0.17677669, %v737_v26 }
 0x14e   : > { %v742_v28 = vsel %vm741_vm1, %v740_v27, -inf }
 0x14f   : > { %743 = vmax.xlane.f32.xlu0 %v742_v28 }
 0x1a4   : > { %v934_v29 = vpop.f32.mrf.mxu1 }
 0x1a5   : > { %v937_v30 = vmul.f32 0.17677669, %v934_v29 }
 0x1a7   : > { %v938_v31 = vsel %vm741_vm1, %v937_v30, -inf }
 0x1a8   : > { %939 = vmax.xlane.f32.xlu1 %v938_v31 }
 0x1c2   : > { %v744_v32 = vpop.xlane.xlu0 %743 }
 0x1c3   : > { %v745_v33 = vsub.f32 %v740_v27, %v744_v32 }
 0x1c5   : > { %v746_v34 = vmul.f32 1.442695, %v745_v33 }
 0x1c7   : > { %2003 = vpow2.f32 %v746_v34 }
 0x1cd   : > { %v2004_v35 = vpop.eup %2003 }
 0x1ce   : > { %v748_v36 = vsel %vm741_vm1, %v2004_v35, 0.0 }
 0x1cf   : > { %749 = vadd.xlane.f32.xlu0 %v748_v36 }
 0x1e3   : > { %1011 = vrot.lane.b32.xlu0 %v697_v15, %s2181_s22 }
 0x21b   : > { %v940_v39 = vpop.xlane.xlu1 %939 }
 0x21c   : > { %v941_v40 = vsub.f32 %v937_v30, %v940_v39 }
 0x21e   : > { %v942_v41 = vmul.f32 1.442695, %v941_v40 }
 0x220   : > { %2005 = vpow2.f32 %v942_v41 }
 0x226   : > { %v2006_v42 = vpop.eup %2005 }
 0x227   : > { %v944_v43 = vsel %vm741_vm1, %v2006_v42, 0.0 }
 0x228   : > { %945 = vadd.xlane.f32.xlu1 %v944_v43  ;;  %v2182_v43 = vmov 128.0  }
 0x242   : > { %v750_v44 = vpop.xlane.xlu0 %749 }
 0x243   : > { %2007 = vrcp.f32 %v750_v44  ;;  %v1802_v44 = vld [vmem:[#allocation6 + $0x70] sm:$0xf] }
 0x249   : > { %v2008_v45 = vpop.eup %2007 }
 0x24a   : > { %v752_v46 = vmul.f32 %v2008_v45, %v2004_v35  ;;  %v1921_v45 = vld [vmem:[#allocation6 + $0x74] sm:$0xf0] }
 0x24c   : > { %1698 = vmatmul.msk.f32.vlgmr.msrb.gmra.mxu3 %vm741_vm1, %v752_v46  ;;  %v1920_v46 = vld [vmem:[#allocation6 + $0x74] sm:$0xf] }
 0x24d   : > { %v1807_v49 = vor.u32 %v1920_v46, %v1804_v48 }
 0x254   : > { %1700 = vmatmul.msk.f32.vlgmr.msra.gmra.mxu3 %vm713_vm0, %v782_v37 }
 0x255   : > { %v1012_v47 = vpop.permute.xlu0 %1011 }
 0x256   : > { %1732 = vmatpush.xpose.msk.msra.mxu1 %vm713_vm0, %v1012_v47  ;;  %v1803_v47 = vor.u32 %v1921_v45, %v1802_v44 }
 0x259   : > { %1733 = vmatmul.msk.f32.vlgmr.msra.gmra.mxu1 %vm713_vm0, %v1010_v38  ;;  %v1997_v38 = vld [vmem:[%s2418_s4] ss:$0 sm:$0xff] }
 0x25a   : > { %1268 = vmatpush.bf16.msrb.mxu1 %v1807_v49  ;;  %v1998_v49 = vld [vmem:[%s2419_s5] ss:$0 sm:$0xff] }
 0x29b   : > { %v946_v2 = vpop.xlane.xlu1 %945 }
 0x2cf   : > { %v773_v50 = vpop.f32.mrf.mxu3 }
 0x2d0   : > { %v776_v51 = vpack.c.bf16 %v773_v50, %v773_v50 }
 0x2d2   : > { %1719 = vmatmul.msk.bf16.vlgmr.msrb.gmra.mxu0 %vm713_vm0, %v776_v51 }
 0x2d6   : > { %v1034_v52 = vpop.f32.mrf.mxu1 }
 0x2d7   : > { %v1037_v53 = vmul.f32 0.17677669, %v1034_v52  ;;  %v806_v54 = vpop.f32.mrf.mxu3 }
 0x2d8   : > { %v809_v55 = vmul.f32 0.17677669, %v806_v54 }
 0x2d9   : > { %v1038_v56 = vsel %vm741_vm1, %v1037_v53, -inf }
 0x2da   : > { %1039 = vmax.xlane.f32.xlu0 %v1038_v56  ;;  %v810_v57 = vsel %vm741_vm1, %v809_v55, -inf }
 0x2db   : > { %811 = vmax.xlane.f32.xlu2 %v810_v57 }
 0x2ee   : > { %949 = vrot.lane.b32.xlu0 %v2336_v21, %s2179_s19 }
 0x34d   : > { %v1040_v58 = vpop.xlane.xlu0 %1039 }
 0x34e   : > { %v1041_v59 = vsub.f32 %v1037_v53, %v1040_v58  ;;  %v812_v60 = vpop.xlane.xlu2 %811 }
 0x34f   : > { %v813_v61 = vsub.f32 %v809_v55, %v812_v60  ;;  %v905_v63 = vpop.f32.mrf.mxu0  ;;  %v1919_v60 = vld [vmem:[#allocation6 + $0x64] sm:$0xf0] }
 0x350   : > { %v1042_v0 = vmul.f32 1.442695, %v1041_v59  ;;  %v1794_v59 = vld [vmem:[#allocation6 + $0x60] sm:$0xf] }
 0x351   : > { %v814_v1 = vmul.f32 1.442695, %v813_v61  ;;  %v1918_v61 = vld [vmem:[#allocation6 + $0x64] sm:$0xf] }
 0x352   : > { %2009 = vpow2.f32 %v1042_v0  ;;  %v1796_v0 = vld [vmem:[#allocation6 + $0x68] sm:$0xf0] }
 0x353   : > { %2011 = vpow2.f32 %v814_v1  ;;  %v1799_v1 = vor.u32 %v1918_v61, %v1796_v0  ;;  %v1933_v61 = vld [vmem:[#allocation7 + $0x58] sm:$0xff]  ;;  %v1932_v0 = vld [vmem:[#allocation7 + $0x50] sm:$0xff] }
 0x354   : > { %2013 = vrcp.f32 %v946_v2  ;;  %v1786_v2 = vld [vmem:[#allocation6 + $0x50] sm:$0xf] }
 0x355   : > { %1269 = vmatpush.bf16.msrb.mxu1 %v1799_v1  ;;  %v1925_v1 = vld [vmem:[#allocation7 + $0x18] sm:$0xff] }
 0x357   : > { %v907_v3 = vpop.f32.mrf.mxu0 }
 0x358   : > { %v2010_v4 = vpop.eup %2009  ;;  %v1917_v3 = vld [vmem:[#allocation6 + $0x54] sm:$0xf0] }
 0x359   : > { %v2012_v5 = vpop.eup %2011  ;;  %v1044_v6 = vsel %vm741_vm1, %v2010_v4, 0.0 }
 0x35a   : > { %1045 = vadd.xlane.f32.xlu1 %v1044_v6  ;;  %v816_v7 = vsel %vm741_vm1, %v2012_v5, 0.0  ;;  %v2014_v8 = vpop.eup %2013  ;;  %v1788_v6 = vld [vmem:[#allocation6 + $0x58] sm:$0xf0] }
 0x35b   : > { %817 = vadd.xlane.f32.xlu2 %v816_v7  ;;  %v948_v10 = vmul.f32 %v2014_v8, %v2006_v42  ;;  %v1778_v8 = vld [vmem:[#allocation6 + $0x40] sm:$0xf] }
 0x360   : > { %v950_v9 = vpop.permute.xlu0 %949 }
 0x361   : > { %970 = vmatpush.msrb.mxu2 %v950_v9  ;;  %v1915_v9 = vld [vmem:[#allocation6 + $0x44] sm:$0xf0] }
 0x362   : > { %1722 = vmatmul.msk.f32.vlgmr.msrb.gmra.mxu2 %vm741_vm1, %v948_v10  ;;  %v1914_v10 = vld [vmem:[#allocation6 + $0x44] sm:$0xf] }
 0x373   : > { %822 = vrot.lane.b32.xlu2 %v2336_v21, %s2180_s21  ;;  %1049 = vrot.lane.b32.xlu1 %v2336_v21, %s2181_s22  ;;  %v1903_v21 = vld [vmem:[#allocation4 + $0x28] sm:$0xff]  ;;  %s2437_s21 = sld [smem:[#allocation15_spill]] }
 0x379   : > { %s502_s22 = scalar_lea.vmem %s2437_s21, %s1598_s1 }
 0x3cd   : > { %v1046_v16 = vpop.xlane.xlu1 %1045 }
 0x3ce   : > { %v818_v11 = vpop.xlane.xlu2 %817 }
 0x3cf   : > { %2015 = vrcp.f32 %v818_v11  ;;  %v1779_v11 = vor.u32 %v1915_v9, %v1778_v8 }
 0x3d0   : > { %2017 = vrcp.f32 %v1046_v16  ;;  %v1912_v16 = vld [vmem:[#allocation6 + $0x34] sm:$0xf] }
 0x3d1   : > { %2019 = vrcp.f32 %v2182_v43 }
 0x3d5   : > { %v2016_v12 = vpop.eup %2015 }
 0x3d6   : > { %v820_v14 = vmul.f32 %v2016_v12, %v2012_v5  ;;  %v823_v15 = vpop.permute.xlu2 %822  ;;  %v2018_v17 = vpop.eup %2017  ;;  %v1787_v5 = vor.u32 %v1917_v3, %v1786_v2  ;;  %v1780_v12 = vld [vmem:[#allocation6 + $0x48] sm:$0xf0]  ;;  %v1924_v3 = vld [vmem:[#allocation7 + $0x10] sm:$0xff] }
 0x3d7   : > { %843 = vmatpush.msrb.mxu3 %v823_v15  ;;  %v1048_v18 = vmul.f32 %v2018_v17, %v2010_v4  ;;  %v2020_v50 = vpop.eup %2019  ;;  %v1916_v4 = vld [vmem:[#allocation6 + $0x54] sm:$0xf]  ;;  %v1913_v15 = vld [vmem:[#allocation6 + $0x34] sm:$0xf0]  ;;  %v1931_v2 = vld [vmem:[#allocation7 + $0x48] sm:$0xff] }
 0x3d8   : > { %1701 = vmatmul.msk.f32.vlgmr.msrb.gmra.mxu3 %vm741_vm1, %v820_v14  ;;  %v1120_v51 = vmul.f32 128.0, %v2020_v50  ;;  %vm1124_vm2 = vweird.f32 %v2020_v50  ;;  %v1791_v7 = vor.u32 %v1916_v4, %v1788_v6  ;;  %v1770_v14 = vld [vmem:[#allocation6 + $0x30] sm:$0xf]  ;;  %v1930_v4 = vld [vmem:[#allocation7 + $0x40] sm:$0xff] }
 0x3d9   : > { %874 = vmatpush.bf16.msra.mxu3 %v1901_v13  ;;  %v1783_v13 = vor.u32 %v1914_v10, %v1780_v12  ;;  %v1771_v17 = vor.u32 %v1913_v15, %v1770_v14  ;;  %v1169_v6 = vld [vmem:[%s2422_s8] sm:$0x3] }
 0x3da   : > { %v1121_v52 = vsub.f32 1.0, %v1120_v51  ;;  %1270 = vmatpush.bf16.msrb.mxu1 %v1791_v7  ;;  %v1922_v7 = vld [vmem:[#allocation7] sm:$0xff]  ;;  %v1172_v8 = vperm.slane %v1169_v6, 1  ;;  %v1171_v12 = vperm.slane %v1169_v6, 0 }
 0x3dc   : > { %v1122_v53 = vmul.f32 %v2020_v50, %v1121_v52  ;;  %v1999_v52 = vld [vmem:[%s2420_s6] ss:$0 sm:$0xff] }
 0x3dd   : > { %875 = vmatpush.bf16.msra.mxu3 %v1900_v20  ;;  %v1762_v20 = vld [vmem:[#allocation6 + $0x20] sm:$0xf] }
 0x3de   : > { %v1123_v54 = vadd.f32 %v2020_v50, %v1122_v53  ;;  %1271 = vmatpush.bf16.msrb.mxu1 %v1783_v13 }
 0x3e0   : > { %v2372_v55 = vsel %vm1124_vm2, %v2020_v50, %v1123_v54 }
 0x3e1   : > { %1001 = vmatpush.bf16.msrb.mxu3 %v1903_v21  ;;  %v1911_v21 = vld [vmem:[#allocation6 + $0x24] sm:$0xf0] }
 0x3e2   : > { %v1763_v23 = vor.u32 %v1911_v21, %v1762_v20 }
 0x3e5   : > { %v1050_v19 = vpop.permute.xlu1 %1049  ;;  %1002 = vmatpush.bf16.msrb.mxu3 %v1902_v24  ;;  %v972_v27 = vpop.f32.mrf.mxu2  ;;  %v1764_v24 = vld [vmem:[#allocation6 + $0x28] sm:$0xf0] }
 0x3e6   : > { %1070 = vmatpush.msra.mxu2 %v1050_v19  ;;  %v975_v30 = vpack.c.bf16 %v972_v27, %v972_v27  ;;  %v1909_v27 = vld [vmem:[#allocation6 + $0x14] sm:$0xf0] }
 0x3e7   : > { %1734 = vmatmul.msk.f32.vlgmr.msra.gmra.mxu2 %vm741_vm1, %v1048_v18  ;;  %v1772_v18 = vld [vmem:[#allocation6 + $0x38] sm:$0xf0] }
 0x3e8   : > { %v1775_v19 = vor.u32 %v1912_v16, %v1772_v18 }
 0x3ea   : > { %1272 = vmatpush.bf16.msrb.mxu1 %v1775_v19 }
 0x45b   : > { %v845_v25 = vpop.f32.mrf.mxu3 }
 0x45c   : > { %v848_v26 = vpack.c.bf16 %v845_v25, %v845_v25  ;;  %v1767_v25 = vor.u32 %v1910_v22, %v1764_v24 }
 0x45e   : > { %1710 = vmatmul.msk.bf16.vlgmr.msra.gmra.mxu3 %vm713_vm0, %v848_v26  ;;  %1273 = vmatpush.bf16.msrb.mxu1 %v1767_v25  ;;  %v1754_v26 = vld [vmem:[#allocation6 + $0x10] sm:$0xf] }
 0x45f   : > { %1255 = vmatpush.bf16.msra.mxu3 %v1803_v47 }
 0x46a   : > { %v1072_v28 = vpop.f32.mrf.mxu2 }
 0x46b   : > { %v1075_v29 = vpack.c.bf16 %v1072_v28, %v1072_v28  ;;  %v1908_v28 = vld [vmem:[#allocation6 + $0x14] sm:$0xf] }
 0x46d   : > { %1743 = vmatmul.msk.bf16.vlgmr.msra.gmra.mxu0 %vm713_vm0, %v1075_v29  ;;  %v1755_v29 = vor.u32 %v1909_v27, %v1754_v26 }
 0x46e   : > { %1731 = vmatmul.msk.bf16.vlgmr.msrb.gmra.mxu3 %vm713_vm0, %v975_v30  ;;  %v1756_v30 = vld [vmem:[#allocation6 + $0x18] sm:$0xf0] }
 0x4e1   : > { %v877_v31 = vpop.f32.mrf.mxu3 }
 0x4e2   : > { %v906_v34 = vadd.f32 %v905_v63, %v877_v31  ;;  %v1795_v63 = vor.u32 %v1919_v60, %v1794_v59  ;;  %v1759_v31 = vor.u32 %v1908_v28, %v1756_v30  ;;  %v1928_v59 = vld [vmem:[#allocation7 + $0x30] sm:$0xff]  ;;  %v1934_v60 = vld [vmem:[#allocation7 + $0x60] sm:$0xff] }
 0x4e4   : > { %1256 = vmatpush.bf16.msra.mxu3 %v1795_v63  ;;  %1274 = vmatpush.bf16.msrb.mxu1 %v1759_v31  ;;  %v1926_v63 = vld [vmem:[#allocation7 + $0x20] sm:$0xff] }
 0x4e8   : > { %1257 = vmatpush.bf16.msra.mxu3 %v1787_v5  ;;  %v1923_v5 = vld [vmem:[#allocation7 + $0x8] sm:$0xff] }
 0x4e9   : > { %v879_v32 = vpop.f32.mrf.mxu3 }
 0x4ea   : > { %v1104_v33 = vpop.f32.mrf.mxu0  ;;  %v1746_v32 = vld [vmem:[#allocation6] sm:$0xf] }
 0x4ec   : > { %1258 = vmatpush.bf16.msra.mxu3 %v1779_v11 }
 0x4f0   : > { %1259 = vmatpush.bf16.msra.mxu3 %v1771_v17 }
 0x4f1   : > { %v1004_v35 = vpop.f32.mrf.mxu3 }
 0x4f2   : > { %v1008_v36 = vadd.f32 %v1004_v35, %v906_v34  ;;  %v1106_v37 = vpop.f32.mrf.mxu0  ;;  %v1906_v34 = vld [vmem:[#allocation6 + $0x4] sm:$0xf] }
 0x4f4   : > { %v1108_v39 = vadd.f32 %v1104_v33, %v1008_v36  ;;  %1260 = vmatpush.bf16.msra.mxu3 %v1763_v23  ;;  %v1907_v33 = vld [vmem:[#allocation6 + $0x4] sm:$0xf0]  ;;  %v1748_v36 = vld [vmem:[#allocation6 + $0x8] sm:$0xf0] }
 0x4f5   : > { %v1747_v35 = vor.u32 %v1907_v33, %v1746_v32  ;;  %v1751_v37 = vor.u32 %v1906_v34, %v1748_v36 }
 0x4f6   : > { %v1113_v40 = vadd.f32 %v1997_v38, %v1108_v39  ;;  %v1937_v38 = vld [vmem:[#allocation7 + $0x78] sm:$0xff] }
 0x4f7   : > { %1275 = vmatpush.bf16.msrb.mxu1 %v1751_v37  ;;  %1446 = vmatpush.bf16.msrb.mxu0 %v1937_v38  ;;  %v2000_v38 = vld [vmem:[%s2424_s10] ss:$0 sm:$0xff] }
 0x4f8   : > { %v1114_v41 = vadd.f32 %v1113_v40, %v2322_v62  ;;  %1261 = vmatpush.bf16.msra.mxu3 %v1755_v29 }
 0x4f9   : > { %v1006_v42 = vpop.f32.mrf.mxu3 }
 0x4fa   : > { %1117 = vadd.xlane.f32.xlu2 %v1114_v41 }
 0x4fc   : > { %1262 = vmatpush.bf16.msra.mxu3 %v1747_v35 }
 0x56d   : > { %v1118_v62 = vpop.xlane.xlu2 %1117 }
 0x56e   : > { %v1126_v56 = vmul.f32 %v2372_v55, %v1118_v62 }
 0x570   : > { %v2375_v57 = vsub.f32 %v1114_v41, %v1126_v56  ;;  %v1936_v41 = vld [vmem:[#allocation7 + $0x70] sm:$0xff]  ;;  %v1929_v56 = vld [vmem:[#allocation7 + $0x38] sm:$0xff] }
 0x571   : > { %1447 = vmatpush.bf16.msrb.mxu0 %v1936_v41  ;;  %1433 = vmatpush.bf16.msrb.mxu2 %v1929_v56 }
 0x572   : > { %v1128_v58 = vmul.f32 %v2375_v57, %v2375_v57 }
 0x574   : > { %1129 = vadd.xlane.f32.xlu0 %v1128_v58  ;;  %v1935_v58 = vld [vmem:[#allocation7 + $0x68] sm:$0xff] }
 0x575   : > { %1448 = vmatpush.bf16.msrb.mxu0 %v1935_v58  ;;  %1434 = vmatpush.bf16.msrb.mxu2 %v1928_v59  ;;  %v2001_v58 = vld [vmem:[%s2425_s11] ss:$0 sm:$0xff] }
 0x579   : > { %1449 = vmatpush.bf16.msrb.mxu0 %v1934_v60 }
 0x57d   : > { %1450 = vmatpush.bf16.msrb.mxu0 %v1933_v61 }
 0x581   : > { %1451 = vmatpush.bf16.msrb.mxu0 %v1932_v0 }
 0x585   : > { %1452 = vmatpush.bf16.msrb.mxu0 %v1931_v2 }
 0x589   : > { %1453 = vmatpush.bf16.msrb.mxu0 %v1930_v4 }
 0x5e7   : > { %v1130_v39 = vpop.xlane.xlu0 %1129 }
 0x5e8   : > { %v1131_v40 = vmul.f32 %v1130_v39, %v2372_v55 }
 0x5ea   : > { %v1132_v42 = vadd.f32 1e-12, %v1131_v40 }
 0x5ec   : > { %2021 = vrsqrt.f32 %v1132_v42  ;;  %vm1139_vm4 = vweird.f32 %v1132_v42 }
 0x5f2   : > { %v2022_v43 = vpop.eup %2021 }
 0x5f3   : > { %v1134_v44 = vmul.f32 %v2022_v43, %v1132_v42  ;;  %vm1140_vm3 = vweird.f32 %v2022_v43 }
 0x5f4   : > { %vm1141_vm5 = vmor %vm1139_vm4, %vm1140_vm3 }
 0x5f5   : > { %v1135_v45 = vmul.f32 %v2022_v43, %v1134_v44 }
 0x5f7   : > { %v1136_v46 = vmul.f32 0.5, %v1135_v45 }
 0x5f9   : > { %v1137_v47 = vsub.f32 1.5, %v1136_v46 }
 0x5fb   : > { %v1138_v48 = vmul.f32 %v2022_v43, %v1137_v47 }
 0x5fd   : > { %v1142_v50 = vsel %vm1141_vm5, %v2022_v43, %v1138_v48 }
 0x5fe   : > { %v1143_v51 = vmul.f32 %v1142_v50, %v2375_v57  ;;  %v1927_v57 = vld [vmem:[#allocation7 + $0x28] sm:$0xff] }
 0x5ff   : > { %1435 = vmatpush.bf16.msrb.mxu2 %v1927_v57 }
 0x600   : > { %v1147_v53 = vmul.f32 %v1998_v49, %v1143_v51 }
 0x602   : > { %v2387_v54 = vadd.f32 %v1999_v52, %v1147_v53 }
 0x603   : > { %1436 = vmatpush.bf16.msrb.mxu2 %v1926_v63 }
 0x604   : > { %v1152_v62 = vpack.c.bf16 %v2387_v54, %v2387_v54 }
 0x606   : > { %1263 = vmatmul.bf16.vlgmr.msra.gmra.mxu3 %v1152_v62  ;;  %1276 = vmatmul.bf16.vlgmr.msrb.gmra.mxu1 %v1152_v62 }
 0x607   : > { %1437 = vmatpush.bf16.msrb.mxu2 %v1925_v1 }
 0x60b   : > { %1438 = vmatpush.bf16.msrb.mxu2 %v1924_v3 }
 0x60f   : > { %1439 = vmatpush.bf16.msrb.mxu2 %v1923_v5 }
 0x613   : > { %1440 = vmatpush.bf16.msrb.mxu2 %v1922_v7 }
 0x683   : > { %v1277_v9 = vpop.f32.mrf.mxu1 }
 0x684   : > { %v1278_v10 = vadd.f32 %v1277_v9, %v1172_v8 }
 0x686   : > { %v1284_v11 = vmul.f32 0.044715, %v1278_v10  ;;  %v1282_v27 = vmul.f32 0.5, %v1278_v10 }
 0x688   : > { %v1286_v13 = vmul.f32 %v1284_v11, %v1278_v10 }
 0x689   : > { %v1264_v14 = vpop.f32.mrf.mxu3 }
 0x68a   : > { %v1288_v15 = vmul.f32 %v1286_v13, %v1278_v10  ;;  %v1265_v16 = vadd.f32 %v1264_v14, %v1171_v12 }
 0x68b   : > { %v1279_v17 = vpop.f32.mrf.mxu1 }
 0x68c   : > { %v1283_v18 = vmul.f32 0.044715, %v1265_v16  ;;  %v1290_v19 = vadd.f32 %v1288_v15, %v1278_v10  ;;  %v1281_v32 = vmul.f32 0.5, %v1265_v16 }
 0x68e   : > { %v1285_v20 = vmul.f32 %v1283_v18, %v1265_v16  ;;  %v1292_v21 = vmul.f32 0.7978846, %v1290_v19 }
 0x690   : > { %v1287_v22 = vmul.f32 %v1285_v20, %v1265_v16  ;;  %2023 = vtanh.f32 %v1292_v21 }
 0x691   : > { %v1266_v23 = vpop.f32.mrf.mxu3 }
 0x692   : > { %v1289_v24 = vadd.f32 %v1287_v22, %v1265_v16 }
 0x694   : > { %v1291_v25 = vmul.f32 0.7978846, %v1289_v24 }
 0x696   : > { %v2024_v26 = vpop.eup %2023  ;;  %2025 = vtanh.f32 %v1291_v25 }
 0x697   : > { %v1296_v28 = vadd.f32 1.0, %v2024_v26 }
 0x699   : > { %v1298_v29 = vmul.f32 %v1296_v28, %v1282_v27 }
 0x69b   : > { %v1300_v30 = vpack.c.bf16 %v1298_v29, %v1298_v29 }
 0x69c   : > { %v2026_v31 = vpop.eup %2025 }
 0x69d   : > { %1454 = vmatmul.bf16.vlgmr.msrb.gmra.mxu0 %v1300_v30  ;;  %v1295_v33 = vadd.f32 1.0, %v2026_v31 }
 0x69f   : > { %v1297_v34 = vmul.f32 %v1295_v33, %v1281_v32 }
 0x6a1   : > { %v1299_v35 = vpack.c.bf16 %v1297_v34, %v1297_v34 }
 0x6a3   : > { %1441 = vmatmul.bf16.vlgmr.msrb.gmra.mxu2 %v1299_v35 }
 0x71a   : > { %v1455_v36 = vpop.f32.mrf.mxu0 }
 0x722   : > { %v1457_v37 = vpop.f32.mrf.mxu0 }
 0x726   : > { %v1442_v39 = vpop.f32.mrf.mxu2 }
 0x727   : > { %v1443_v40 = vadd.f32 %v2000_v38, %v1442_v39 }
 0x729   : > { %v1456_v41 = vadd.f32 %v1455_v36, %v1443_v40 }
 0x72b   : > { %v1459_v42 = vadd.f32 %v1456_v41, %v2387_v54 }
 0x72d   : > { %1462 = vadd.xlane.f32.xlu1 %v1459_v42 }
 0x72e   : > { %v1444_v43 = vpop.f32.mrf.mxu2 }
 0x7a0   : > { %v1463_v44 = vpop.xlane.xlu1 %1462 }
 0x7a1   : > { %v1464_v45 = vmul.f32 %v1463_v44, %v2372_v55 }
 0x7a3   : > { %v1465_v46 = vsub.f32 %v1459_v42, %v1464_v45 }
 0x7a5   : > { %v1466_v47 = vmul.f32 %v1465_v46, %v1465_v46 }
 0x7a7   : > { %1467 = vadd.xlane.f32.xlu2 %v1466_v47 }
 0x81a   : > { %v1468_v48 = vpop.xlane.xlu2 %1467 }
 0x81b   : > { %v1469_v49 = vmul.f32 %v1468_v48, %v2372_v55  ;;  %v2002_v55 = vld [vmem:[%s2426_s12] ss:$0 sm:$0xff] }
 0x81d   : > { %v1470_v50 = vadd.f32 1e-12, %v1469_v49 }
 0x81f   : > { %2027 = vrsqrt.f32 %v1470_v50  ;;  %vm1477_vm7 = vweird.f32 %v1470_v50 }
 0x825   : > { %v2028_v51 = vpop.eup %2027 }
 0x826   : > { %v1472_v52 = vmul.f32 %v2028_v51, %v1470_v50  ;;  %vm1478_vm6 = vweird.f32 %v2028_v51 }
 0x827   : > { %vm1479_vm8 = vmor %vm1477_vm7, %vm1478_vm6 }
 0x828   : > { %v1473_v53 = vmul.f32 %v2028_v51, %v1472_v52 }
 0x82a   : > { %v1474_v62 = vmul.f32 0.5, %v1473_v53 }
 0x82c   : > { %v1475_v56 = vsub.f32 1.5, %v1474_v62 }
 0x82e   : > { %v1476_v54 = vmul.f32 %v2028_v51, %v1475_v56 }
 0x830   : > { %v1480_v59 = vsel %vm1479_vm8, %v2028_v51, %v1476_v54 }
 0x831   : > { %v1481_v60 = vmul.f32 %v1480_v59, %v1465_v46 }
 0x833   : > { %v1485_v57 = vmul.f32 %v2001_v58, %v1481_v60 }
 0x835   : > { %v1489_v61 = vadd.f32 %v2002_v55, %v1485_v57 }
 0x837   : > { %1490 = vst [vmem:[%s502_s22] sm:$0xff] %v1489_v61 }
 0x838 PF: > { %s2438_s23 = sld [smem:[#allocation12_spill]] }
 0x83e   : > { %s26_s25 = sadd.s32 1, %s2438_s23  }
 0x83f   : > { %p23_p7 = scmp.ge.s32.totalorder %s26_s25, 4  }
 0x841   :  { %25 = sbr.rel (!%p23_p7) target bundleno = 7 (0x7), region = 119 }
 0x846   :  { %1510 = vsyncpa [#allocation3], 1 }
 0x847   :  { %1512 = vsyncpa [#allocation3 + $0x1], 1 }
 0x848   :  { %1513 = vsyncpa [#allocation5], 1 }
 0x849   :  { %1514 = vsyncpa [#allocation8], 1 }

// kernel: bert_encoder.5
= control target key start
LH: loop header
LB: loop body
LE: loop exit
PB: predicated region body
PF: predicated region fallthrough
CT: control target
= control target key end

     0   :  { %s2423_s0 = inlined_call_operand.vmem [shape: f32[2,8,128], index: 0, kind: input, shape index: {}]   ;;  %s2424_s1 = inlined_call_operand.hbm [shape: bf16[128,384], index: 1, kind: input, shape index: {}]   ;;  %s2425_s2 = inlined_call_operand.vmem [shape: f32[1,384], index: 2, kind: input, shape index: {}]   ;;  %s2426_s3 = inlined_call_operand.hbm [shape: bf16[128,128], index: 3, kind: input, shape index: {}]   ;;  %s2427_s4 = inlined_call_operand.vmem [shape: f32[1,128], index: 4, kind: input, shape index: {}]   ;;  %s2428_s5 = inlined_call_operand.vmem [shape: f32[1,128], index: 5, kind: input, shape index: {}]   ;;  %s2429_s6 = inlined_call_operand.vmem [shape: f32[1,128], index: 6, kind: input, shape index: {}]   ;;  %s2430_s7 = inlined_call_operand.vmem [shape: bf16[128,256], index: 7, kind: input, shape index: {}]   ;;  %s2431_s8 = inlined_call_operand.vmem [shape: f32[1,256], index: 8, kind: input, shape index: {}]   ;;  %s2432_s9 = inlined_call_operand.hbm [shape: bf16[256,128], index: 9, kind: input, shape index: {}]   ;;  %s2433_s10 = inlined_call_operand.vmem [shape: f32[1,128], index: 10, kind: input, shape index: {}]   ;;  %s2434_s11 = inlined_call_operand.vmem [shape: f32[1,128], index: 11, kind: input, shape index: {}]   ;;  %s2435_s12 = inlined_call_operand.vmem [shape: f32[1,128], index: 12, kind: input, shape index: {}]   ;;  %s2436_s13 = inlined_call_operand.vmem [shape: f32[2,8,128], index: 13, kind: output, shape index: {}]  }
   0x1   :  { %2437 = sst [smem:[#allocation9_spill]] %s2424_s1 }
   0x2   :  { %18 = vsyncpa [#allocation3], 0 }
   0x3   :  { %19 = vsyncpa [#allocation5], 0  ;;  %s2175_s25 = smov 0  }
   0x4 LB: > { %s362_s28 = sshll.u32 %s2426_s3, 4  ;;  %s2184_s29 = sadd.s32 4294967295, %s2092_s25   ;;  %s2092_s25 = sphi %s2175_s25, %s25_s25   ;;  %s363_s28 = int_to_ptr.hbm [resolvable:$true] %s362_s28 }
   0x5   : > { %p1560_p0 = scmp.ge.s32.totalorder %s2092_s25, 1  ;;  %p334_p1 = scmp.lt.s32.totalorder %s2092_s25, 3 }
   0x6   : > { %p1931_p2 = scmp.eq.s32.totalorder %s2184_s29, 0  ;;  %s2094_s14 = smov [#allocation4]  }
   0x7   : > { %p2189_p3 = pnand %p1560_p0, %p334_p1  ;;  %s364_s15 = sshll.u32 %s2094_s14, 4  ;;  %s365_s15 = int_to_ptr.vmem [resolvable:$true] %s364_s15 }
   0x8   : > { %s2439_s1 = sld [smem:[#allocation9_spill]]  ;;  %s2095_s20 = smov [#allocation2]  }
   0x9   : > { %p1921_p4 = pneg %p2189_p3  ;;  %s347_s21 = sshll.u32 %s2095_s20, 4  ;;  %s348_s21 = int_to_ptr.vmem [resolvable:$true] %s347_s21 }
   0xa   : > { %s2096_s22 = smov 64   ;;  %s2097_s23 = smov 4  }
   0xb   : > { %p2200_p5 = pnand %p1931_p2, %p1921_p4  ;;  %s391_s27 = sshll.u32 %s2432_s9, 4  ;;  %s392_s27 = int_to_ptr.hbm [resolvable:$true] %s391_s27 }
   0xc   : > { %s2098_s14 = smov 192   ;;  %s2099_s16 = smov 12  }
   0xd   : > { %1927 = dma.hbm_to_vmem [thread:$0]  (!%p2200_p5), %s363_s28, 1024, %s365_s15, [#allocation5], %s2096_s22, %s2096_s22, %s2097_s23  }
   0xe   : > { %s345_s18 = sshll.u32 %s2439_s1, 4  ;;  %s2100_s17 = smov [#allocation6]   ;;  %s346_s18 = int_to_ptr.hbm [resolvable:$true] %s345_s18 }
   0xf   : > { %1924 = dma.hbm_to_vmem [thread:$0]  (!%p2200_p5), %s346_s18, 3072, %s348_s21, [#allocation3], %s2098_s14, %s2098_s14, %s2099_s16  }
  0x10   : > { %s393_s1 = sshll.u32 %s2100_s17, 4  ;;  %425 = sbr.rel (%p2189_p3) target bundleno = 2095 (0x82f), region = 72  ;;  %s394_s1 = int_to_ptr.vmem [resolvable:$true] %s393_s1 }
  0x11   : > { %1930 = dma.hbm_to_vmem [thread:$0]  (!%p2200_p5), %s392_s27, 2048, %s394_s1, [#allocation5], %s2096_s22, %s2096_s22, %s2097_s23  }
  0x15   : > { %2083 = dma.done.wait (%p1931_p2), [#allocation3], 3072  }
  0x16   : > { %2085 = vsyncadd (%p1931_p2), [#allocation3], 4294964224 }
  0x17   : > { %2087 = dma.done.wait (%p1931_p2), [#allocation5], 3072  }
  0x18   : > { %2089 = vsyncadd (%p1931_p2), [#allocation5], 4294964224  ;;  %v1657_v0 = vld [vmem:[#allocation2 + $0xa8] sm:$0xf]  ;;  %v1867_v1 = vld [vmem:[#allocation2 + $0xb0] sm:$0xf0] }
  0x19   : > { %v1866_v2 = vld [vmem:[#allocation2 + $0xac] sm:$0xf]  ;;  %v1658_v3 = vor.u32 %v1867_v1, %v1657_v0  ;;  %v1659_v4 = vld [vmem:[#allocation2 + $0xb4] sm:$0xf0]  ;;  %v1645_v5 = vld [vmem:[#allocation2 + $0x90] sm:$0xf] }
  0x1a   : > { %v1864_v6 = vld [vmem:[#allocation2 + $0x98] sm:$0xf0]  ;;  %v1662_v7 = vor.u32 %v1866_v2, %v1659_v4  ;;  %v1863_v8 = vld [vmem:[#allocation2 + $0x94] sm:$0xf]  ;;  %v1647_v9 = vld [vmem:[#allocation2 + $0x9c] sm:$0xf0] }
  0x1b   : > { %657 = vmatpush.bf16.msra.mxu0 %v1658_v3  ;;  %v1646_v10 = vor.u32 %v1864_v6, %v1645_v5  ;;  %v1650_v11 = vor.u32 %v1863_v8, %v1647_v9  ;;  %v1633_v12 = vld [vmem:[#allocation2 + $0x78] sm:$0xf]  ;;  %v1861_v13 = vld [vmem:[#allocation2 + $0x80] sm:$0xf0]  ;;  %v1860_v14 = vld [vmem:[#allocation2 + $0x7c] sm:$0xf] }
  0x1c   : > { %670 = vmatpush.bf16.msra.mxu1 %v1662_v7  ;;  %v1635_v15 = vld [vmem:[#allocation2 + $0x84] sm:$0xf0]  ;;  %v1634_v16 = vor.u32 %v1861_v13, %v1633_v12  ;;  %v1621_v18 = vld [vmem:[#allocation2 + $0x60] sm:$0xf]  ;;  %v1858_v19 = vld [vmem:[#allocation2 + $0x68] sm:$0xf0] }
  0x1d   : > { %v1638_v17 = vor.u32 %v1860_v14, %v1635_v15  ;;  %v1857_v20 = vld [vmem:[#allocation2 + $0x64] sm:$0xf]  ;;  %v1623_v21 = vld [vmem:[#allocation2 + $0x6c] sm:$0xf0]  ;;  %p478_p6 = scmp.lt.s32.totalorder %s2184_s29, 1  ;;  %v1622_v22 = vor.u32 %v1858_v19, %v1621_v18  ;;  %vm696_vm0 = vcmask 261120  }
  0x1e   : > { %v1665_v23 = vld [vmem:[#allocation2 + $0xb0] sm:$0xf]  ;;  %v1868_v24 = vld [vmem:[#allocation2 + $0xb8] sm:$0xf0]  ;;  %v1653_v25 = vld [vmem:[#allocation2 + $0x98] sm:$0xf]  ;;  %v1626_v26 = vor.u32 %v1857_v20, %v1623_v21 }
  0x1f   : > { %658 = vmatpush.bf16.msra.mxu0 %v1646_v10  ;;  %v1609_v27 = vld [vmem:[#allocation2 + $0x48] sm:$0xf]  ;;  %v1855_v28 = vld [vmem:[#allocation2 + $0x50] sm:$0xf0]  ;;  %v1666_v29 = vor.u32 %v1868_v24, %v1665_v23  ;;  %v1865_v30 = vld [vmem:[#allocation2 + $0xa0] sm:$0xf0] }
  0x20   : > { %671 = vmatpush.bf16.msra.mxu1 %v1650_v11  ;;  %v1854_v31 = vld [vmem:[#allocation2 + $0x4c] sm:$0xf]  ;;  %v1611_v32 = vld [vmem:[#allocation2 + $0x54] sm:$0xf0]  ;;  %s2442_s29 = smov (!%p478_p6, %s2184_s29), 1  ;;  %v1654_v33 = vor.u32 %v1865_v30, %v1653_v25  ;;  %v1610_v34 = vor.u32 %v1855_v28, %v1609_v27  ;;  %s2101_s20 = smov 64  }
  0x21   : > { %683 = vmatpush.bf16.msra.mxu2 %v1666_v29  ;;  %v1597_v35 = vld [vmem:[#allocation2 + $0x30] sm:$0xf]  ;;  %v1641_v36 = vld [vmem:[#allocation2 + $0x80] sm:$0xf]  ;;  %v1862_v37 = vld [vmem:[#allocation2 + $0x88] sm:$0xf0]  ;;  %v1614_v38 = vor.u32 %v1854_v31, %v1611_v32 }
  0x22   : > { %v1852_v39 = vld [vmem:[#allocation2 + $0x38] sm:$0xf0]  ;;  %v1851_v40 = vld [vmem:[#allocation2 + $0x34] sm:$0xf]  ;;  %v1599_v41 = vld [vmem:[#allocation2 + $0x3c] sm:$0xf0]  ;;  %v1642_v42 = vor.u32 %v1862_v37, %v1641_v36 }
  0x23   : > { %659 = vmatpush.bf16.msra.mxu0 %v1634_v16  ;;  %v1598_v43 = vor.u32 %v1852_v39, %v1597_v35  ;;  %v1629_v44 = vld [vmem:[#allocation2 + $0x68] sm:$0xf]  ;;  %v1859_v45 = vld [vmem:[#allocation2 + $0x70] sm:$0xf0]  ;;  %v1602_v46 = vor.u32 %v1851_v40, %v1599_v41  ;;  %v1585_v47 = vld [vmem:[#allocation2 + $0x18] sm:$0xf] }
  0x24   : > { %672 = vmatpush.bf16.msra.mxu1 %v1638_v17  ;;  %v1849_v48 = vld [vmem:[#allocation2 + $0x20] sm:$0xf0]  ;;  %v1848_v49 = vld [vmem:[#allocation2 + $0x1c] sm:$0xf]  ;;  %v1587_v50 = vld [vmem:[#allocation2 + $0x24] sm:$0xf0]  ;;  %v1630_v51 = vor.u32 %v1859_v45, %v1629_v44 }
  0x25   : > { %684 = vmatpush.bf16.msra.mxu2 %v1654_v33  ;;  %s1569_s1 = sshll.u32 %s2442_s29, 3  ;;  %v1586_v52 = vor.u32 %v1849_v48, %v1585_v47  ;;  %v1617_v53 = vld [vmem:[#allocation2 + $0x50] sm:$0xf]  ;;  %v1856_v54 = vld [vmem:[#allocation2 + $0x58] sm:$0xf0]  ;;  %v1590_v55 = vor.u32 %v1848_v49, %v1587_v50  ;;  %s2102_s21 = smov 96  }
  0x26   : > { %v1573_v56 = vld [vmem:[#allocation2] sm:$0xf]  ;;  %v1846_v57 = vld [vmem:[#allocation2 + $0x8] sm:$0xf0]  ;;  %s481_s15 = scalar_lea.vmem %s2423_s0, %s1569_s1  ;;  %v1845_v58 = vld [vmem:[#allocation2 + $0x4] sm:$0xf]  ;;  %v1618_v60 = vor.u32 %v1856_v54, %v1617_v53  ;;  %s485_s16 = scalar_lea.vmem %s2436_s13, %s1569_s1 }
  0x27   : > { %660 = vmatpush.bf16.msra.mxu0 %v1622_v22  ;;  %v1575_v59 = vld [vmem:[#allocation2 + $0xc] sm:$0xf0]  ;;  %v1574_v61 = vor.u32 %v1846_v57, %v1573_v56  ;;  %v2235_v62 = vld [vmem:[%s481_s15] sm:$0xff]  ;;  %v1605_v63 = vld [vmem:[#allocation2 + $0x38] sm:$0xf]  ;;  %s2103_s22 = smov 32  }
  0x28   : > { %673 = vmatpush.bf16.msra.mxu1 %v1626_v26  ;;  %v1853_v0 = vld [vmem:[#allocation2 + $0x40] sm:$0xf0]  ;;  %v1578_v1 = vor.u32 %v1845_v58, %v1575_v59  ;;  %v488_v2 = vpack.c.bf16 %v2235_v62, %v2235_v62  ;;  %v1593_v4 = vld [vmem:[#allocation2 + $0x20] sm:$0xf]  ;;  %v1850_v5 = vld [vmem:[#allocation2 + $0x28] sm:$0xf0] }
  0x29   : > { %685 = vmatpush.bf16.msra.mxu2 %v1642_v42  ;;  %v1606_v3 = vor.u32 %v1853_v0, %v1605_v63  ;;  %v1594_v6 = vor.u32 %v1850_v5, %v1593_v4  ;;  %v1581_v7 = vld [vmem:[#allocation2 + $0x8] sm:$0xf]  ;;  %v1847_v8 = vld [vmem:[#allocation2 + $0x10] sm:$0xf0]  ;;  %v521_v10 = vld [vmem:[%s2425_s2] sm:$0x7] }
  0x2a   : > { %v1582_v9 = vor.u32 %v1847_v8, %v1581_v7  ;;  %v524_v11 = vperm.slane %v521_v10, 1  ;;  %v523_v12 = vperm.slane %v521_v10, 0  ;;  %v525_v19 = vperm.slane %v521_v10, 2  ;;  %v1870_v48 = vld [vmem:[#allocation4 + $0x8] sm:$0xff]  ;;  %v1869_v49 = vld [vmem:[#allocation4] sm:$0xff] }
  0x2b   : > { %661 = vmatpush.bf16.msra.mxu0 %v1610_v34  ;;  %vm724_vm1 = vcmask 64512  }
  0x2c   : > { %674 = vmatpush.bf16.msra.mxu1 %v1614_v38 }
  0x2d   : > { %686 = vmatpush.bf16.msra.mxu2 %v1630_v51 }
  0x2f   : > { %662 = vmatpush.bf16.msra.mxu0 %v1598_v43 }
  0x30   : > { %675 = vmatpush.bf16.msra.mxu1 %v1602_v46 }
  0x31   : > { %687 = vmatpush.bf16.msra.mxu2 %v1618_v60 }
  0x33   : > { %663 = vmatpush.bf16.msra.mxu0 %v1586_v52 }
  0x34   : > { %676 = vmatpush.bf16.msra.mxu1 %v1590_v55 }
  0x35   : > { %688 = vmatpush.bf16.msra.mxu2 %v1606_v3 }
  0x37   : > { %664 = vmatpush.bf16.msra.mxu0 %v1574_v61 }
  0x38   : > { %677 = vmatpush.bf16.msra.mxu1 %v1578_v1 }
  0x39   : > { %689 = vmatpush.bf16.msra.mxu2 %v1594_v6 }
  0x3a   : > { %665 = vmatmul.bf16.vlgmr.msra.gmra.mxu0 %v488_v2 }
  0x3b   : > { %678 = vmatmul.bf16.vlgmr.msra.gmra.mxu1 %v488_v2  ;;  %885 = vmatpush.bf16.msrb.mxu0 %v1870_v48 }
  0x3d   : > { %690 = vmatpush.bf16.msra.mxu2 %v1582_v9 }
  0x3f   : > { %886 = vmatpush.bf16.msrb.mxu0 %v1869_v49 }
  0x40   : > { %691 = vmatmul.bf16.vlgmr.msra.gmra.mxu2 %v488_v2 }
  0xb7   : > { %v666_v13 = vpop.f32.mrf.mxu0 }
  0xb8   : > { %v679_v14 = vpop.f32.mrf.mxu1  ;;  %v667_v16 = vadd.f32 %v666_v13, %v523_v12  ;;  %v1872_v13 = vld [vmem:[#allocation4 + $0x18] sm:$0xff] }
  0xb9   : > { %v680_v15 = vadd.f32 %v679_v14, %v524_v11 }
  0xbb   : > { %894 = vrot.lane.b32.xlu2 %v680_v15, %s2101_s20  ;;  %766 = vrot.lane.b32.xlu1 %v680_v15, %s2102_s21 }
  0xbc   : > { %1667 = vmatpush.xpose.msk.msra.mxu3 %vm696_vm0, %v680_v15 }
  0xbf   : > { %1668 = vmatmul.msk.f32.vlgmr.msra.gmra.mxu3 %vm696_vm0, %v667_v16  ;;  %v668_v17 = vpop.f32.mrf.mxu0 }
  0xc0   : > { %v681_v18 = vpop.f32.mrf.mxu1 }
  0xc3   : > { %892 = vrot.lane.b32.xlu2 %v667_v16, %s2101_s20  ;;  %764 = vrot.lane.b32.xlu1 %v667_v16, %s2102_s21  ;;  %v692_v20 = vpop.f32.mrf.mxu2 }
  0xc4   : > { %v2249_v21 = vadd.f32 %v692_v20, %v525_v19  ;;  %v1871_v20 = vld [vmem:[#allocation4 + $0x10] sm:$0xff] }
  0xc6   : > { %754 = vmatpush.msrb.mxu3 %v2249_v21 }
  0xcb   : > { %992 = vrot.lane.b32.xlu1 %v667_v16, %s2103_s22  ;;  %v694_v22 = vpop.f32.mrf.mxu2 }
  0xcc   : > { %v1876_v22 = vld [vmem:[#allocation4 + $0x38] sm:$0xff] }
  0xcd   : > { %1084 = vmatpush.bf16.msra.mxu0 %v1876_v22  ;;  %v1881_v22 = vld [vmem:[%s2430_s7 + $0x24] sm:$0xf] }
 0x115   : > { %v895_v23 = vpop.permute.xlu2 %894 }
 0x116   : > { %1691 = vmatpush.xpose.msk.msrb.mxu1 %vm696_vm0, %v895_v23  ;;  %v1875_v23 = vld [vmem:[#allocation4 + $0x30] sm:$0xff] }
 0x117   : > { %1085 = vmatpush.bf16.msra.mxu0 %v1875_v23 }
 0x11d   : > { %v893_v24 = vpop.permute.xlu2 %892 }
 0x11e   : > { %1692 = vmatmul.msk.f32.vlgmr.msrb.gmra.mxu1 %vm696_vm0, %v893_v24  ;;  %v1873_v24 = vld [vmem:[#allocation4 + $0x20] sm:$0xff] }
 0x12d   : > { %v767_v25 = vpop.permute.xlu1 %766 }
 0x12e   : > { %1670 = vmatpush.xpose.msk.msra.mxu3 %vm696_vm0, %v767_v25 }
 0x135   : > { %v765_v37 = vpop.permute.xlu1 %764 }
 0x13d   : > { %v993_v38 = vpop.permute.xlu1 %992 }
 0x142   : > { %v720_v26 = vpop.f32.mrf.mxu3 }
 0x143   : > { %v723_v27 = vmul.f32 0.17677669, %v720_v26 }
 0x145   : > { %v725_v28 = vsel %vm724_vm1, %v723_v27, -inf }
 0x146   : > { %726 = vmax.xlane.f32.xlu0 %v725_v28 }
 0x19b   : > { %v917_v29 = vpop.f32.mrf.mxu1 }
 0x19c   : > { %v920_v30 = vmul.f32 0.17677669, %v917_v29 }
 0x19e   : > { %v921_v31 = vsel %vm724_vm1, %v920_v30, -inf }
 0x19f   : > { %922 = vmax.xlane.f32.xlu1 %v921_v31 }
 0x1b9   : > { %v727_v32 = vpop.xlane.xlu0 %726 }
 0x1ba   : > { %v728_v33 = vsub.f32 %v723_v27, %v727_v32 }
 0x1bc   : > { %v729_v34 = vmul.f32 1.442695, %v728_v33 }
 0x1be   : > { %1962 = vpow2.f32 %v729_v34 }
 0x1c4   : > { %v1963_v35 = vpop.eup %1962 }
 0x1c5   : > { %v731_v36 = vsel %vm724_vm1, %v1963_v35, 0.0 }
 0x1c6   : > { %732 = vadd.xlane.f32.xlu0 %v731_v36 }
 0x1da   : > { %994 = vrot.lane.b32.xlu0 %v680_v15, %s2103_s22 }
 0x212   : > { %v923_v39 = vpop.xlane.xlu1 %922 }
 0x213   : > { %v924_v40 = vsub.f32 %v920_v30, %v923_v39 }
 0x215   : > { %v925_v41 = vmul.f32 1.442695, %v924_v40 }
 0x217   : > { %1964 = vpow2.f32 %v925_v41 }
 0x21d   : > { %v1965_v42 = vpop.eup %1964 }
 0x21e   : > { %v927_v43 = vsel %vm724_vm1, %v1965_v42, 0.0 }
 0x21f   : > { %928 = vadd.xlane.f32.xlu1 %v927_v43  ;;  %v2104_v43 = vmov 128.0  }
 0x239   : > { %v733_v44 = vpop.xlane.xlu0 %732 }
 0x23a   : > { %1966 = vrcp.f32 %v733_v44  ;;  %v1773_v44 = vld [vmem:[%s2430_s7 + $0x70] sm:$0xf] }
 0x240   : > { %v1967_v45 = vpop.eup %1966 }
 0x241   : > { %v735_v46 = vmul.f32 %v1967_v45, %v1963_v35  ;;  %v1892_v45 = vld [vmem:[%s2430_s7 + $0x74] sm:$0xf0] }
 0x243   : > { %1669 = vmatmul.msk.f32.vlgmr.msrb.gmra.mxu3 %vm724_vm1, %v735_v46  ;;  %v1891_v46 = vld [vmem:[%s2430_s7 + $0x74] sm:$0xf] }
 0x24b   : > { %1671 = vmatmul.msk.f32.vlgmr.msra.gmra.mxu3 %vm696_vm0, %v765_v37 }
 0x24c   : > { %v995_v47 = vpop.permute.xlu0 %994 }
 0x24d   : > { %1703 = vmatpush.xpose.msk.msra.mxu1 %vm696_vm0, %v995_v47  ;;  %v1774_v47 = vor.u32 %v1892_v45, %v1773_v44 }
 0x250   : > { %1704 = vmatmul.msk.f32.vlgmr.msra.gmra.mxu1 %vm696_vm0, %v993_v38  ;;  %v1956_v38 = vld [vmem:[%s2427_s4] ss:$0 sm:$0xff] }
 0x292   : > { %v929_v2 = vpop.xlane.xlu1 %928 }
 0x2c6   : > { %v756_v50 = vpop.f32.mrf.mxu3 }
 0x2c7   : > { %v759_v51 = vpack.c.bf16 %v756_v50, %v756_v50 }
 0x2c9   : > { %1690 = vmatmul.msk.bf16.vlgmr.msrb.gmra.mxu0 %vm696_vm0, %v759_v51 }
 0x2cd   : > { %v1017_v52 = vpop.f32.mrf.mxu1 }
 0x2ce   : > { %v1020_v53 = vmul.f32 0.17677669, %v1017_v52  ;;  %v789_v54 = vpop.f32.mrf.mxu3 }
 0x2cf   : > { %v792_v55 = vmul.f32 0.17677669, %v789_v54 }
 0x2d0   : > { %v1021_v56 = vsel %vm724_vm1, %v1020_v53, -inf }
 0x2d1   : > { %1022 = vmax.xlane.f32.xlu0 %v1021_v56  ;;  %v793_v57 = vsel %vm724_vm1, %v792_v55, -inf }
 0x2d2   : > { %794 = vmax.xlane.f32.xlu2 %v793_v57 }
 0x2e5   : > { %932 = vrot.lane.b32.xlu0 %v2249_v21, %s2101_s20 }
 0x344   : > { %v1023_v58 = vpop.xlane.xlu0 %1022 }
 0x345   : > { %v1024_v59 = vsub.f32 %v1020_v53, %v1023_v58  ;;  %v795_v60 = vpop.xlane.xlu2 %794 }
 0x346   : > { %v796_v61 = vsub.f32 %v792_v55, %v795_v60  ;;  %v888_v63 = vpop.f32.mrf.mxu0  ;;  %v1890_v60 = vld [vmem:[%s2430_s7 + $0x64] sm:$0xf0] }
 0x347   : > { %v1025_v0 = vmul.f32 1.442695, %v1024_v59  ;;  %v1765_v59 = vld [vmem:[%s2430_s7 + $0x60] sm:$0xf] }
 0x348   : > { %v797_v1 = vmul.f32 1.442695, %v796_v61  ;;  %v1889_v61 = vld [vmem:[%s2430_s7 + $0x64] sm:$0xf] }
 0x349   : > { %1968 = vpow2.f32 %v1025_v0  ;;  %v1767_v0 = vld [vmem:[%s2430_s7 + $0x68] sm:$0xf0] }
 0x34a   : > { %1970 = vpow2.f32 %v797_v1  ;;  %v1770_v1 = vor.u32 %v1889_v61, %v1767_v0  ;;  %v1904_v61 = vld [vmem:[#allocation6 + $0x58] sm:$0xff]  ;;  %v1903_v0 = vld [vmem:[#allocation6 + $0x50] sm:$0xff] }
 0x34b   : > { %1972 = vrcp.f32 %v929_v2  ;;  %v1757_v2 = vld [vmem:[%s2430_s7 + $0x50] sm:$0xf] }
 0x34e   : > { %v890_v3 = vpop.f32.mrf.mxu0 }
 0x34f   : > { %v1969_v4 = vpop.eup %1968  ;;  %v1888_v3 = vld [vmem:[%s2430_s7 + $0x54] sm:$0xf0] }
 0x350   : > { %v1971_v5 = vpop.eup %1970  ;;  %v1027_v6 = vsel %vm724_vm1, %v1969_v4, 0.0 }
 0x351   : > { %1028 = vadd.xlane.f32.xlu1 %v1027_v6  ;;  %v799_v7 = vsel %vm724_vm1, %v1971_v5, 0.0  ;;  %v1973_v8 = vpop.eup %1972  ;;  %v1759_v6 = vld [vmem:[%s2430_s7 + $0x58] sm:$0xf0] }
 0x352   : > { %800 = vadd.xlane.f32.xlu2 %v799_v7  ;;  %v931_v10 = vmul.f32 %v1973_v8, %v1965_v42  ;;  %v1749_v8 = vld [vmem:[%s2430_s7 + $0x40] sm:$0xf] }
 0x357   : > { %v933_v9 = vpop.permute.xlu0 %932 }
 0x358   : > { %953 = vmatpush.msrb.mxu2 %v933_v9  ;;  %v1886_v9 = vld [vmem:[%s2430_s7 + $0x44] sm:$0xf0] }
 0x359   : > { %1693 = vmatmul.msk.f32.vlgmr.msrb.gmra.mxu2 %vm724_vm1, %v931_v10  ;;  %v1885_v10 = vld [vmem:[%s2430_s7 + $0x44] sm:$0xf] }
 0x36a   : > { %805 = vrot.lane.b32.xlu2 %v2249_v21, %s2102_s21  ;;  %1032 = vrot.lane.b32.xlu1 %v2249_v21, %s2103_s22  ;;  %v1874_v21 = vld [vmem:[#allocation4 + $0x28] sm:$0xff] }
 0x3c4   : > { %v1029_v16 = vpop.xlane.xlu1 %1028 }
 0x3c5   : > { %v801_v11 = vpop.xlane.xlu2 %800 }
 0x3c6   : > { %1974 = vrcp.f32 %v801_v11  ;;  %v1750_v11 = vor.u32 %v1886_v9, %v1749_v8 }
 0x3c7   : > { %1976 = vrcp.f32 %v1029_v16  ;;  %v1883_v16 = vld [vmem:[%s2430_s7 + $0x34] sm:$0xf] }
 0x3c8   : > { %1978 = vrcp.f32 %v2104_v43 }
 0x3cc   : > { %v1975_v12 = vpop.eup %1974 }
 0x3cd   : > { %v803_v14 = vmul.f32 %v1975_v12, %v1971_v5  ;;  %v806_v15 = vpop.permute.xlu2 %805  ;;  %v1977_v17 = vpop.eup %1976  ;;  %v1758_v5 = vor.u32 %v1888_v3, %v1757_v2  ;;  %v1751_v12 = vld [vmem:[%s2430_s7 + $0x48] sm:$0xf0]  ;;  %v1895_v3 = vld [vmem:[#allocation6 + $0x10] sm:$0xff] }
 0x3ce   : > { %826 = vmatpush.msrb.mxu3 %v806_v15  ;;  %v1031_v18 = vmul.f32 %v1977_v17, %v1969_v4  ;;  %v1979_v49 = vpop.eup %1978  ;;  %v1887_v4 = vld [vmem:[%s2430_s7 + $0x54] sm:$0xf]  ;;  %v1884_v15 = vld [vmem:[%s2430_s7 + $0x34] sm:$0xf0]  ;;  %v1902_v2 = vld [vmem:[#allocation6 + $0x48] sm:$0xff] }
 0x3cf   : > { %1672 = vmatmul.msk.f32.vlgmr.msrb.gmra.mxu3 %vm724_vm1, %v803_v14  ;;  %v1103_v50 = vmul.f32 128.0, %v1979_v49  ;;  %vm1107_vm2 = vweird.f32 %v1979_v49  ;;  %v1762_v7 = vor.u32 %v1887_v4, %v1759_v6  ;;  %v1741_v14 = vld [vmem:[%s2430_s7 + $0x30] sm:$0xf]  ;;  %v1901_v4 = vld [vmem:[#allocation6 + $0x40] sm:$0xff] }
 0x3d0   : > { %857 = vmatpush.bf16.msra.mxu3 %v1872_v13  ;;  %v1754_v13 = vor.u32 %v1885_v10, %v1751_v12  ;;  %v1742_v17 = vor.u32 %v1884_v15, %v1741_v14  ;;  %v1152_v6 = vld [vmem:[%s2431_s8] sm:$0x3] }
 0x3d1   : > { %v1104_v51 = vsub.f32 1.0, %v1103_v50  ;;  %v1155_v8 = vperm.slane %v1152_v6, 1  ;;  %v1154_v12 = vperm.slane %v1152_v6, 0 }
 0x3d3   : > { %v1105_v52 = vmul.f32 %v1979_v49, %v1104_v51  ;;  %v1958_v51 = vld [vmem:[%s2429_s6] ss:$0 sm:$0xff] }
 0x3d4   : > { %858 = vmatpush.bf16.msra.mxu3 %v1871_v20  ;;  %v1733_v20 = vld [vmem:[%s2430_s7 + $0x20] sm:$0xf] }
 0x3d5   : > { %v1106_v53 = vadd.f32 %v1979_v49, %v1105_v52 }
 0x3d7   : > { %v2297_v54 = vsel %vm1107_vm2, %v1979_v49, %v1106_v53 }
 0x3d8   : > { %984 = vmatpush.bf16.msrb.mxu3 %v1874_v21  ;;  %v1882_v21 = vld [vmem:[%s2430_s7 + $0x24] sm:$0xf0] }
 0x3d9   : > { %v1734_v23 = vor.u32 %v1882_v21, %v1733_v20 }
 0x3dc   : > { %v1033_v19 = vpop.permute.xlu1 %1032  ;;  %985 = vmatpush.bf16.msrb.mxu3 %v1873_v24  ;;  %v955_v27 = vpop.f32.mrf.mxu2  ;;  %v1735_v24 = vld [vmem:[%s2430_s7 + $0x28] sm:$0xf0] }
 0x3dd   : > { %1053 = vmatpush.msra.mxu2 %v1033_v19  ;;  %v958_v30 = vpack.c.bf16 %v955_v27, %v955_v27  ;;  %v1880_v27 = vld [vmem:[%s2430_s7 + $0x14] sm:$0xf0] }
 0x3de   : > { %1705 = vmatmul.msk.f32.vlgmr.msra.gmra.mxu2 %vm724_vm1, %v1031_v18  ;;  %v1743_v18 = vld [vmem:[%s2430_s7 + $0x38] sm:$0xf0] }
 0x3df   : > { %v1746_v19 = vor.u32 %v1883_v16, %v1743_v18 }
 0x452   : > { %v828_v25 = vpop.f32.mrf.mxu3 }
 0x453   : > { %v831_v26 = vpack.c.bf16 %v828_v25, %v828_v25  ;;  %v1738_v25 = vor.u32 %v1881_v22, %v1735_v24 }
 0x455   : > { %1681 = vmatmul.msk.bf16.vlgmr.msra.gmra.mxu3 %vm696_vm0, %v831_v26  ;;  %v1725_v26 = vld [vmem:[%s2430_s7 + $0x10] sm:$0xf] }
 0x456   : > { %1238 = vmatpush.bf16.msra.mxu3 %v1774_v47 }
 0x461   : > { %v1055_v28 = vpop.f32.mrf.mxu2 }
 0x462   : > { %v1058_v29 = vpack.c.bf16 %v1055_v28, %v1055_v28  ;;  %v1879_v28 = vld [vmem:[%s2430_s7 + $0x14] sm:$0xf] }
 0x464   : > { %1714 = vmatmul.msk.bf16.vlgmr.msra.gmra.mxu0 %vm696_vm0, %v1058_v29  ;;  %v1726_v29 = vor.u32 %v1880_v27, %v1725_v26 }
 0x465   : > { %1702 = vmatmul.msk.bf16.vlgmr.msrb.gmra.mxu3 %vm696_vm0, %v958_v30  ;;  %v1727_v30 = vld [vmem:[%s2430_s7 + $0x18] sm:$0xf0] }
 0x4d8   : > { %v860_v31 = vpop.f32.mrf.mxu3 }
 0x4d9   : > { %v889_v34 = vadd.f32 %v888_v63, %v860_v31  ;;  %v1766_v63 = vor.u32 %v1890_v60, %v1765_v59  ;;  %v1730_v31 = vor.u32 %v1879_v28, %v1727_v30  ;;  %v1899_v59 = vld [vmem:[#allocation6 + $0x30] sm:$0xff]  ;;  %v1905_v60 = vld [vmem:[#allocation6 + $0x60] sm:$0xff] }
 0x4db   : > { %1239 = vmatpush.bf16.msra.mxu3 %v1766_v63  ;;  %v1897_v63 = vld [vmem:[#allocation6 + $0x20] sm:$0xff] }
 0x4df   : > { %1240 = vmatpush.bf16.msra.mxu3 %v1758_v5  ;;  %v1894_v5 = vld [vmem:[#allocation6 + $0x8] sm:$0xff] }
 0x4e0   : > { %v862_v32 = vpop.f32.mrf.mxu3 }
 0x4e1   : > { %v1087_v33 = vpop.f32.mrf.mxu0  ;;  %v1717_v32 = vld [vmem:[%s2430_s7] sm:$0xf] }
 0x4e3   : > { %1241 = vmatpush.bf16.msra.mxu3 %v1750_v11 }
 0x4e7   : > { %1242 = vmatpush.bf16.msra.mxu3 %v1742_v17 }
 0x4e8   : > { %v987_v35 = vpop.f32.mrf.mxu3 }
 0x4e9   : > { %v991_v36 = vadd.f32 %v987_v35, %v889_v34  ;;  %v1089_v37 = vpop.f32.mrf.mxu0  ;;  %v1877_v34 = vld [vmem:[%s2430_s7 + $0x4] sm:$0xf] }
 0x4eb   : > { %v1091_v39 = vadd.f32 %v1087_v33, %v991_v36  ;;  %1243 = vmatpush.bf16.msra.mxu3 %v1734_v23  ;;  %v1878_v33 = vld [vmem:[%s2430_s7 + $0x4] sm:$0xf0]  ;;  %v1719_v36 = vld [vmem:[%s2430_s7 + $0x8] sm:$0xf0] }
 0x4ec   : > { %v1718_v35 = vor.u32 %v1878_v33, %v1717_v32  ;;  %v1722_v37 = vor.u32 %v1877_v34, %v1719_v36 }
 0x4ed   : > { %v1096_v40 = vadd.f32 %v1956_v38, %v1091_v39  ;;  %v1908_v38 = vld [vmem:[#allocation6 + $0x78] sm:$0xff] }
 0x4ee   : > { %1429 = vmatpush.bf16.msrb.mxu0 %v1908_v38  ;;  %v1959_v38 = vld [vmem:[%s2433_s10] ss:$0 sm:$0xff] }
 0x4ef   : > { %v1097_v41 = vadd.f32 %v1096_v40, %v2235_v62  ;;  %v1775_v62 = vld [vmem:[%s2430_s7 + $0x78] sm:$0xf0]  ;;  %1244 = vmatpush.bf16.msra.mxu3 %v1726_v29 }
 0x4f0   : > { %v989_v42 = vpop.f32.mrf.mxu3  ;;  %v1778_v48 = vor.u32 %v1891_v46, %v1775_v62 }
 0x4f1   : > { %1100 = vadd.xlane.f32.xlu2 %v1097_v41 }
 0x4f2   : > { %1251 = vmatpush.bf16.msrb.mxu1 %v1778_v48  ;;  %v1957_v48 = vld [vmem:[%s2428_s5] ss:$0 sm:$0xff] }
 0x4f3   : > { %1245 = vmatpush.bf16.msra.mxu3 %v1718_v35 }
 0x4f6   : > { %1252 = vmatpush.bf16.msrb.mxu1 %v1770_v1  ;;  %v1896_v1 = vld [vmem:[#allocation6 + $0x18] sm:$0xff] }
 0x4fa   : > { %1253 = vmatpush.bf16.msrb.mxu1 %v1762_v7  ;;  %v1893_v7 = vld [vmem:[#allocation6] sm:$0xff] }
 0x4fe   : > { %1254 = vmatpush.bf16.msrb.mxu1 %v1754_v13 }
 0x502   : > { %1255 = vmatpush.bf16.msrb.mxu1 %v1746_v19 }
 0x506   : > { %1256 = vmatpush.bf16.msrb.mxu1 %v1738_v25 }
 0x50a   : > { %1257 = vmatpush.bf16.msrb.mxu1 %v1730_v31 }
 0x50e   : > { %1258 = vmatpush.bf16.msrb.mxu1 %v1722_v37 }
 0x564   : > { %v1101_v55 = vpop.xlane.xlu2 %1100 }
 0x565   : > { %v1109_v56 = vmul.f32 %v2297_v54, %v1101_v55 }
 0x567   : > { %v2300_v57 = vsub.f32 %v1097_v41, %v1109_v56  ;;  %v1907_v41 = vld [vmem:[#allocation6 + $0x70] sm:$0xff]  ;;  %v1900_v56 = vld [vmem:[#allocation6 + $0x38] sm:$0xff] }
 0x568   : > { %1430 = vmatpush.bf16.msrb.mxu0 %v1907_v41  ;;  %1416 = vmatpush.bf16.msrb.mxu2 %v1900_v56 }
 0x569   : > { %v1111_v58 = vmul.f32 %v2300_v57, %v2300_v57 }
 0x56b   : > { %1112 = vadd.xlane.f32.xlu0 %v1111_v58  ;;  %v1906_v58 = vld [vmem:[#allocation6 + $0x68] sm:$0xff] }
 0x56c   : > { %1431 = vmatpush.bf16.msrb.mxu0 %v1906_v58  ;;  %1417 = vmatpush.bf16.msrb.mxu2 %v1899_v59  ;;  %v1960_v58 = vld [vmem:[%s2434_s11] ss:$0 sm:$0xff] }
 0x570   : > { %1432 = vmatpush.bf16.msrb.mxu0 %v1905_v60 }
 0x574   : > { %1433 = vmatpush.bf16.msrb.mxu0 %v1904_v61 }
 0x578   : > { %1434 = vmatpush.bf16.msrb.mxu0 %v1903_v0 }
 0x57c   : > { %1435 = vmatpush.bf16.msrb.mxu0 %v1902_v2 }
 0x580   : > { %1436 = vmatpush.bf16.msrb.mxu0 %v1901_v4 }
 0x5de   : > { %v1113_v39 = vpop.xlane.xlu0 %1112 }
 0x5df   : > { %v1114_v40 = vmul.f32 %v1113_v39, %v2297_v54 }
 0x5e1   : > { %v1115_v42 = vadd.f32 1e-12, %v1114_v40 }
 0x5e3   : > { %1980 = vrsqrt.f32 %v1115_v42  ;;  %vm1122_vm4 = vweird.f32 %v1115_v42 }
 0x5e9   : > { %v1981_v43 = vpop.eup %1980 }
 0x5ea   : > { %v1117_v44 = vmul.f32 %v1981_v43, %v1115_v42  ;;  %vm1123_vm3 = vweird.f32 %v1981_v43 }
 0x5eb   : > { %vm1124_vm5 = vmor %vm1122_vm4, %vm1123_vm3 }
 0x5ec   : > { %v1118_v45 = vmul.f32 %v1981_v43, %v1117_v44 }
 0x5ee   : > { %v1119_v46 = vmul.f32 0.5, %v1118_v45 }
 0x5f0   : > { %v1120_v47 = vsub.f32 1.5, %v1119_v46 }
 0x5f2   : > { %v1121_v62 = vmul.f32 %v1981_v43, %v1120_v47 }
 0x5f4   : > { %v1125_v49 = vsel %vm1124_vm5, %v1981_v43, %v1121_v62 }
 0x5f5   : > { %v1126_v50 = vmul.f32 %v1125_v49, %v2300_v57  ;;  %v1898_v57 = vld [vmem:[#allocation6 + $0x28] sm:$0xff] }
 0x5f6   : > { %1418 = vmatpush.bf16.msrb.mxu2 %v1898_v57 }
 0x5f7   : > { %v1130_v52 = vmul.f32 %v1957_v48, %v1126_v50 }
 0x5f9   : > { %v2396_v53 = vadd.f32 %v1958_v51, %v1130_v52 }
 0x5fa   : > { %1419 = vmatpush.bf16.msrb.mxu2 %v1897_v63 }
 0x5fb   : > { %v1135_v55 = vpack.c.bf16 %v2396_v53, %v2396_v53 }
 0x5fd   : > { %1246 = vmatmul.bf16.vlgmr.msra.gmra.mxu3 %v1135_v55  ;;  %1259 = vmatmul.bf16.vlgmr.msrb.gmra.mxu1 %v1135_v55 }
 0x5fe   : > { %1420 = vmatpush.bf16.msrb.mxu2 %v1896_v1 }
 0x602   : > { %1421 = vmatpush.bf16.msrb.mxu2 %v1895_v3 }
 0x606   : > { %1422 = vmatpush.bf16.msrb.mxu2 %v1894_v5 }
 0x60a   : > { %1423 = vmatpush.bf16.msrb.mxu2 %v1893_v7 }
 0x67a   : > { %v1260_v9 = vpop.f32.mrf.mxu1 }
 0x67b   : > { %v1261_v10 = vadd.f32 %v1260_v9, %v1155_v8 }
 0x67d   : > { %v1267_v11 = vmul.f32 0.044715, %v1261_v10  ;;  %v1265_v27 = vmul.f32 0.5, %v1261_v10 }
 0x67f   : > { %v1269_v13 = vmul.f32 %v1267_v11, %v1261_v10 }
 0x680   : > { %v1247_v14 = vpop.f32.mrf.mxu3 }
 0x681   : > { %v1271_v15 = vmul.f32 %v1269_v13, %v1261_v10  ;;  %v1248_v16 = vadd.f32 %v1247_v14, %v1154_v12 }
 0x682   : > { %v1262_v17 = vpop.f32.mrf.mxu1 }
 0x683   : > { %v1266_v18 = vmul.f32 0.044715, %v1248_v16  ;;  %v1273_v19 = vadd.f32 %v1271_v15, %v1261_v10  ;;  %v1264_v32 = vmul.f32 0.5, %v1248_v16 }
 0x685   : > { %v1268_v20 = vmul.f32 %v1266_v18, %v1248_v16  ;;  %v1275_v21 = vmul.f32 0.7978846, %v1273_v19 }
 0x687   : > { %v1270_v22 = vmul.f32 %v1268_v20, %v1248_v16  ;;  %1982 = vtanh.f32 %v1275_v21 }
 0x688   : > { %v1249_v23 = vpop.f32.mrf.mxu3 }
 0x689   : > { %v1272_v24 = vadd.f32 %v1270_v22, %v1248_v16 }
 0x68b   : > { %v1274_v25 = vmul.f32 0.7978846, %v1272_v24 }
 0x68d   : > { %v1983_v26 = vpop.eup %1982  ;;  %1984 = vtanh.f32 %v1274_v25 }
 0x68e   : > { %v1279_v28 = vadd.f32 1.0, %v1983_v26 }
 0x690   : > { %v1281_v29 = vmul.f32 %v1279_v28, %v1265_v27 }
 0x692   : > { %v1283_v30 = vpack.c.bf16 %v1281_v29, %v1281_v29 }
 0x693   : > { %v1985_v31 = vpop.eup %1984 }
 0x694   : > { %1437 = vmatmul.bf16.vlgmr.msrb.gmra.mxu0 %v1283_v30  ;;  %v1278_v33 = vadd.f32 1.0, %v1985_v31 }
 0x696   : > { %v1280_v34 = vmul.f32 %v1278_v33, %v1264_v32 }
 0x698   : > { %v1282_v35 = vpack.c.bf16 %v1280_v34, %v1280_v34 }
 0x69a   : > { %1424 = vmatmul.bf16.vlgmr.msrb.gmra.mxu2 %v1282_v35 }
 0x711   : > { %v1438_v36 = vpop.f32.mrf.mxu0 }
 0x719   : > { %v1440_v37 = vpop.f32.mrf.mxu0 }
 0x71d   : > { %v1425_v39 = vpop.f32.mrf.mxu2 }
 0x71e   : > { %v1426_v40 = vadd.f32 %v1959_v38, %v1425_v39 }
 0x720   : > { %v1439_v41 = vadd.f32 %v1438_v36, %v1426_v40 }
 0x722   : > { %v1442_v42 = vadd.f32 %v1439_v41, %v2396_v53 }
 0x724   : > { %1445 = vadd.xlane.f32.xlu1 %v1442_v42 }
 0x725   : > { %v1427_v43 = vpop.f32.mrf.mxu2 }
 0x797   : > { %v1446_v44 = vpop.xlane.xlu1 %1445 }
 0x798   : > { %v1447_v45 = vmul.f32 %v1446_v44, %v2297_v54 }
 0x79a   : > { %v1448_v46 = vsub.f32 %v1442_v42, %v1447_v45 }
 0x79c   : > { %v1449_v47 = vmul.f32 %v1448_v46, %v1448_v46 }
 0x79e   : > { %1450 = vadd.xlane.f32.xlu2 %v1449_v47 }
 0x811   : > { %v1451_v62 = vpop.xlane.xlu2 %1450 }
 0x812   : > { %v1452_v48 = vmul.f32 %v1451_v62, %v2297_v54  ;;  %v1961_v54 = vld [vmem:[%s2435_s12] ss:$0 sm:$0xff] }
 0x814   : > { %v1453_v49 = vadd.f32 1e-12, %v1452_v48 }
 0x816   : > { %1986 = vrsqrt.f32 %v1453_v49  ;;  %vm1460_vm7 = vweird.f32 %v1453_v49 }
 0x81c   : > { %v1987_v50 = vpop.eup %1986 }
 0x81d   : > { %v1455_v51 = vmul.f32 %v1987_v50, %v1453_v49  ;;  %vm1461_vm6 = vweird.f32 %v1987_v50 }
 0x81e   : > { %vm1462_vm8 = vmor %vm1460_vm7, %vm1461_vm6 }
 0x81f   : > { %v1456_v52 = vmul.f32 %v1987_v50, %v1455_v51 }
 0x821   : > { %v1457_v55 = vmul.f32 0.5, %v1456_v52 }
 0x823   : > { %v1458_v56 = vsub.f32 1.5, %v1457_v55 }
 0x825   : > { %v1459_v53 = vmul.f32 %v1987_v50, %v1458_v56 }
 0x827   : > { %v1463_v59 = vsel %vm1462_vm8, %v1987_v50, %v1459_v53 }
 0x828   : > { %v1464_v60 = vmul.f32 %v1463_v59, %v1448_v46 }
 0x82a   : > { %v1468_v57 = vmul.f32 %v1960_v58, %v1464_v60 }
 0x82c   : > { %v1472_v61 = vadd.f32 %v1961_v54, %v1468_v57 }
 0x82e   : > { %1473 = vst [vmem:[%s485_s16] sm:$0xff] %v1472_v61 }
 0x82f PF: > { %s25_s25 = sadd.s32 1, %s2092_s25  }
 0x830   : > { %p22_p7 = scmp.ge.s32.totalorder %s25_s25, 4  }
 0x832   :  { %24 = sbr.rel (!%p22_p7) target bundleno = 4 (0x4), region = 115 }
 0x837   :  { %1493 = vsyncpa [#allocation3], 1 }
 0x838   :  { %1495 = vsyncpa [#allocation3 + $0x1], 1 }
 0x839   :  { %1496 = vsyncpa [#allocation5], 1 }

</bundles_post_ra>
